<compile_context>
chip_gen: v7x
topology: tpu7x:2x2x1
jax: 0.10.0
libtpu: 0.0.40
codegen_flags: <defaults>
</compile_context>

<pallas_src>
import jax
import jax.numpy as jnp
from jax import lax
from jax.experimental import pallas as pl
from jax.experimental.pallas import tpu as pltpu

KH = KW = 5
STRIDE = 2
PAD = 2
BN_EPS = 1e-5
LANE = 128
VMEM_LIMIT = 32 * 1024 * 1024          # within default scoped VMEM on v6e/v7x (raises v5e's 16 MiB)
TILE_VMEM_BUDGET = 6 * 1024 * 1024     # target per-grid-step footprint (double-buffered blocks)


# ----------------------------------------------------------------------------
# Shared conv body: 25 accumulating bf16 MXU matmuls on stride-1 parity planes,
# producing the tile in transposed (cout, m) orientation for NCHW stores.
# ----------------------------------------------------------------------------
def _conv_tile_T(planes_ref, w_ref, tr, wo, cin):
    """planes_ref: (4*(tr+2), wh, cin) bf16  -- parity planes (2-row halo included)
       w_ref:      (25, cout, cin)     bf16  -- one (cout, cin) slab per (kh, kw) tap
       returns     (cout, tr*wo)       f32   -- bias-free conv of the row tile"""
    m = tr * wo
    rows = tr + 2
    acc = None
    for kh in range(KH):
        for kw in range(KW):
            p = (kh % 2) * 2 + (kw % 2)              # parity plane
            i0, j0 = kh // 2, kw // 2                # static offset inside that plane
            tap = planes_ref[pl.ds(p * rows + i0, tr), pl.ds(j0, wo), :]   # (tr, wo, cin)
            # contract cin (minor dim of both operands) -> (cout, m); accumulate in f32.
            contrib = lax.dot_general(
                w_ref[kh * KW + kw], tap.reshape(m, cin),
                dimension_numbers=(((1,), (1,)), ((), ())),
                preferred_element_type=jnp.float32)
            acc = contrib if acc is None else acc + contrib
    return acc


# ----------------------------------------------------------------------------
# Pass 1: per-tile BN partial sums (sum, sum-of-squares) of the bias-free conv.
# ----------------------------------------------------------------------------
def _make_stats_kernel(tr, wo, cin):
    def kernel(planes_ref, w_ref, stats_ref):
        conv = _conv_tile_T(planes_ref, w_ref, tr, wo, cin)          # (cout, m) f32
        stats_ref[:, pl.ds(0, 1)] = jnp.sum(conv, axis=1, keepdims=True)
        stats_ref[:, pl.ds(1, 1)] = jnp.sum(conv * conv, axis=1, keepdims=True)
    return kernel


# ----------------------------------------------------------------------------
# Pass 2: recompute conv, fused BN affine + ReLU, direct NCHW-flat store.
# ----------------------------------------------------------------------------
def _make_apply_kernel(tr, wo, cin):
    def kernel(planes_ref, w_ref, ss_ref, o_ref):
        conv = _conv_tile_T(planes_ref, w_ref, tr, wo, cin)          # (cout, m) f32
        scale = ss_ref[:, pl.ds(0, 1)]                               # (cout, 1)
        shift = ss_ref[:, pl.ds(1, 1)]                               # (cout, 1)
        o_ref[...] = jnp.maximum(conv * scale + shift, 0.0).astype(o_ref.dtype)
    return kernel


def _choose_row_tile(ho, wo, wh, cin, cout):
    """Largest divisor of ho whose (double-buffered) per-step footprint fits the budget and whose
    flat-output tile stays lane-dense (tr*wo % 128 == 0) unless a single tile covers the image."""
    lane_pad = -(-cin // LANE) * LANE            # cin padded to 128 lanes inside the planes block
    sub_pad = -(-wh // 16) * 16                  # bf16 sublane tiling of wh
    fallback = ho
    for tr in range(ho, 0, -1):
        if ho % tr:
            continue
        if ho // tr > 1 and (tr * wo) % LANE != 0:
            continue
        planes_blk = 4 * (tr + 2) * sub_pad * lane_pad * 2
        out_blk = cout * max(tr * wo, LANE) * 4
        acc_blk = cout * tr * wo * 4 + tr * wo * lane_pad * 2
        if 2 * planes_blk + 2 * out_blk + acc_blk <= TILE_VMEM_BUDGET:
            return tr
        fallback = tr
    return fallback


@jax.jit
def basic_conv_forward(x_nchw, conv_w, conv_b, bn_gamma, bn_beta):
    """Forward of BasicConv: Conv2d(5,2,2) -> BatchNorm2d (training-mode stats) -> ReLU.

    x_nchw : (N, Cin, H, W) f32;  conv_w : (Cout, Cin, 5, 5);  conv_b/bn_gamma/bn_beta : (Cout,)
    returns (N, Cout, Ho, Wo) f32.
    """
    n, cin, h, w = x_nchw.shape
    cout = conv_w.shape[0]
    ho = (h + 2 * PAD - KH) // STRIDE + 1
    wo = (w + 2 * PAD - KW) // STRIDE + 1
    hh, wh = ho + 2, wo + 2                      # parity-plane extents (== ceil(padded/2))
    hp2, wp2 = 2 * hh, 2 * wh

    # ---- XLA glue: layout only (no im2col, input-sized bf16 planes) --------------------
    x_nhwc = jnp.transpose(x_nchw, (0, 2, 3, 1))
    x_pad = jnp.pad(x_nhwc, ((0, 0), (PAD, hp2 - h - PAD), (PAD, wp2 - w - PAD), (0, 0)))
    planes = x_pad.reshape(n, hh, 2, wh, 2, cin)
    planes = jnp.transpose(planes, (0, 2, 4, 1, 3, 5)).reshape(n, 4, hh, wh, cin)
    planes = planes.astype(jnp.bfloat16)

    tr = _choose_row_tile(ho, wo, wh, cin, cout)
    n_rt = ho // tr
    # Duplicate the 2-row halo per row tile so BlockSpec blocks stay non-overlapping.
    planes_t = jnp.stack([planes[:, :, t * tr: t * tr + tr + 2] for t in range(n_rt)], axis=1)
    planes_t = planes_t.reshape(n, n_rt, 4 * (tr + 2), wh, cin)      # (n, n_rt, rows, wh, cin)

    # Weights: (Cout, Cin, 5, 5) -> (25, Cout, Cin) in (kh, kw) tap order; bf16 for the MXU.
    w_t = jnp.transpose(conv_w, (2, 3, 0, 1)).reshape(KH * KW, cout, cin).astype(jnp.bfloat16)

    m_tile = tr * wo
    m_total = n * ho * wo
    conv_flops = 2 * m_total * (KH * KW * cin) * cout
    planes_bytes = planes_t.size * 2
    w_bytes = w_t.size * 2

    planes_spec = pl.BlockSpec((None, None, 4 * (tr + 2), wh, cin),
                               lambda b, t: (b, t, 0, 0, 0))
    w_spec = pl.BlockSpec((KH * KW, cout, cin), lambda b, t: (0, 0, 0))
    cparams = pltpu.CompilerParams(dimension_semantics=("parallel", "parallel"),
                                   vmem_limit_bytes=VMEM_LIMIT)

    # ---- pass 1: conv (recomputed later) + per-tile BN partial sums --------------------
    stats = pl.pallas_call(
        _make_stats_kernel(tr, wo, cin),
        grid=(n, n_rt),
        in_specs=[planes_spec, w_spec],
        out_specs=pl.BlockSpec((None, None, cout, 2), lambda b, t: (b, t, 0, 0)),
        out_shape=jax.ShapeDtypeStruct((n, n_rt, cout, 2), jnp.float32),
        compiler_params=cparams,
        cost_estimate=pl.CostEstimate(
            flops=conv_flops, transcendentals=0,
            bytes_accessed=planes_bytes + w_bytes + n * n_rt * cout * 2 * 4),
    )(planes_t, w_t)

    # ---- tiny BN fold (XLA, O(Cout) work): Chan-style combine, fold bias/gamma/beta ----
    s = stats[..., 0]                            # (n, n_rt, cout) per-tile sums (bias-free conv)
    q = stats[..., 1]                            # per-tile sums of squares
    mu_t = s / m_tile
    m2_t = q - s * mu_t                          # per-tile centered sum of squared deviations
    mean_pre = jnp.sum(s, axis=(0, 1)) / m_total
    m2 = jnp.sum(m2_t, axis=(0, 1)) + m_tile * jnp.sum((mu_t - mean_pre) ** 2, axis=(0, 1))
    var = jnp.maximum(m2 / m_total, 0.0)         # biased variance (training-mode BN)
    mean = mean_pre + conv_b                     # BN input is conv + bias (bias only shifts mean)
    scale = bn_gamma * lax.rsqrt(var + BN_EPS)
    shift = bn_beta + (conv_b - mean) * scale    # conv bias folded into the affine shift
    scale_shift = jnp.stack([scale, shift], axis=1).astype(jnp.float32)   # (cout, 2)

    # ---- pass 2: recompute conv, fused BN affine + ReLU, NCHW-flat lane-dense store ----
    y_flat = pl.pallas_call(
        _make_apply_kernel(tr, wo, cin),
        grid=(n, n_rt),
        in_specs=[planes_spec, w_spec,
                  pl.BlockSpec((cout, 2), lambda b, t: (0, 0))],
        out_specs=pl.BlockSpec((None, cout, m_tile), lambda b, t: (b, 0, t)),
        out_shape=jax.ShapeDtypeStruct((n, cout, ho * wo), jnp.float32),
        compiler_params=cparams,
        cost_estimate=pl.CostEstimate(
            flops=conv_flops + 3 * m_total * cout, transcendentals=0,
            bytes_accessed=planes_bytes + w_bytes + cout * 2 * 4 + m_total * cout * 4),
    )(planes_t, w_t, scale_shift)

    # Already channel-major: this reshape is a free metadata change (no extra HBM pass).
    return y_flat.reshape(n, cout, ho, wo)


def _reference(x_nchw, conv_w, conv_b, bn_gamma, bn_beta):
    # Pure-JAX reference with the same bf16 MXU inputs / f32 accumulation as the kernel.
    conv = jax.lax.conv_general_dilated(
        x_nchw.astype(jnp.bfloat16), conv_w.astype(jnp.bfloat16),
        window_strides=(STRIDE, STRIDE),
        padding=((PAD, PAD), (PAD, PAD)),
        dimension_numbers=("NCHW", "OIHW", "NCHW"),
        preferred_element_type=jnp.float32,
    ) + conv_b.reshape(1, -1, 1, 1)
    mean = jnp.mean(conv, axis=(0, 2, 3), keepdims=True)
    var = jnp.mean((conv - mean) ** 2, axis=(0, 2, 3), keepdims=True)
    y = (conv - mean) * jax.lax.rsqrt(var + BN_EPS)
    y = y * bn_gamma.reshape(1, -1, 1, 1) + bn_beta.reshape(1, -1, 1, 1)
    return jnp.maximum(y, 0.0)


if __name__ == "__main__":
    N, CIN, COUT, H, W = 2, 4, 8, 16, 16

    key = jax.random.PRNGKey(0)
    k1, k2, k3, k4, k5 = jax.random.split(key, 5)

    x = jax.random.normal(k1, (N, CIN, H, W), dtype=jnp.float32)
    fan_in = CIN * KH * KW
    conv_w = jax.random.normal(k2, (COUT, CIN, KH, KW), dtype=jnp.float32) * (fan_in ** -0.5)
    conv_b = 0.1 * jax.random.normal(k3, (COUT,), dtype=jnp.float32)
    bn_gamma = 1.0 + 0.1 * jax.random.normal(k4, (COUT,), dtype=jnp.float32)
    bn_beta = 0.1 * jax.random.normal(k5, (COUT,), dtype=jnp.float32)

    out = basic_conv_forward(x, conv_w, conv_b, bn_gamma, bn_beta)
    out = jax.block_until_ready(out)

    ref = _reference(x, conv_w, conv_b, bn_gamma, bn_beta)
    assert out.shape == (N, COUT, H // 2, W // 2), out.shape
    max_err = float(jnp.max(jnp.abs(out - ref)))
    assert jnp.allclose(out, ref, rtol=1e-3, atol=2e-3), max_err

    print("KERNEL_OK")
</pallas_src>

<mosaic_0001>
module attributes {stable_mosaic.version = 11 : i64} {
  func.func @kernel(%arg0: i32, %arg1: i32, %arg2: memref<1x1x40x10x4xbf16, #tpu.memory_space<vmem>>, %arg3: memref<25x8x4xbf16, #tpu.memory_space<vmem>>, %arg4: memref<1x1x8x2xf32, #tpu.memory_space<vmem>>) attributes {dimension_semantics = [#tpu.dimension_semantics<parallel>, #tpu.dimension_semantics<parallel>], iteration_bounds = array<i64: 2, 1>, scalar_prefetch = 0 : i64, scratch_operands = 0 : i64, tpu.core_type = #tpu.core_type<tc>, window_params = [{transform_indices = @transform_0, window_bounds = array<i64: 1, 1, 40, 10, 4>}, {pipeline_mode = #tpu.pipeline_mode<synchronous>, transform_indices = @transform_1, window_bounds = array<i64: 25, 8, 4>}, {transform_indices = @transform_2, window_bounds = array<i64: 1, 1, 8, 2>}]} {
    %c0 = arith.constant 0 : index
    %c0_0 = arith.constant 0 : index
    %c0_1 = arith.constant 0 : index
    %c0_2 = arith.constant 0 : index
    %c0_3 = arith.constant 0 : index
    %0 = vector.load %arg2[%c0, %c0_0, %c0_1, %c0_2, %c0_3] : memref<1x1x40x10x4xbf16, #tpu.memory_space<vmem>>, vector<1x1x8x8x4xbf16>
    %1 = vector.shape_cast %0 : vector<1x1x8x8x4xbf16> to vector<8x8x4xbf16>
    %c0_4 = arith.constant 0 : index
    %c0_5 = arith.constant 0 : index
    %c0_6 = arith.constant 0 : index
    %2 = vector.load %arg3[%c0_4, %c0_5, %c0_6] : memref<25x8x4xbf16, #tpu.memory_space<vmem>>, vector<1x8x4xbf16>
    %3 = vector.shape_cast %2 : vector<1x8x4xbf16> to vector<8x4xbf16>
    %4 = vector.shape_cast %1 : vector<8x8x4xbf16> to vector<64x4xbf16>
    %cst = arith.constant dense<0.000000e+00> : vector<8x64xf32>
    %5 = tpu.matmul %3, %4, %cst {dimension_numbers = #tpu.dot_dimension_numbers<[1], [1], [0], [0], [0, 0, 1, 0], [], []>} : vector<8x4xbf16>, vector<64x4xbf16>, vector<8x64xf32> -> vector<8x64xf32>
    %c0_7 = arith.constant 0 : index
    %c0_8 = arith.constant 0 : index
    %c10 = arith.constant 10 : index
    %c0_9 = arith.constant 0 : index
    %c0_10 = arith.constant 0 : index
    %6 = vector.load %arg2[%c0_7, %c0_8, %c10, %c0_9, %c0_10] : memref<1x1x40x10x4xbf16, #tpu.memory_space<vmem>>, vector<1x1x8x8x4xbf16>
    %7 = vector.shape_cast %6 : vector<1x1x8x8x4xbf16> to vector<8x8x4xbf16>
    %c1 = arith.constant 1 : index
    %c0_11 = arith.constant 0 : index
    %c0_12 = arith.constant 0 : index
    %8 = vector.load %arg3[%c1, %c0_11, %c0_12] : memref<25x8x4xbf16, #tpu.memory_space<vmem>>, vector<1x8x4xbf16>
    %9 = vector.shape_cast %8 : vector<1x8x4xbf16> to vector<8x4xbf16>
    %10 = vector.shape_cast %7 : vector<8x8x4xbf16> to vector<64x4xbf16>
    %cst_13 = arith.constant dense<0.000000e+00> : vector<8x64xf32>
    %11 = tpu.matmul %9, %10, %cst_13 {dimension_numbers = #tpu.dot_dimension_numbers<[1], [1], [0], [0], [0, 0, 1, 0], [], []>} : vector<8x4xbf16>, vector<64x4xbf16>, vector<8x64xf32> -> vector<8x64xf32>
    %12 = arith.addf %5, %11 : vector<8x64xf32>
    %c0_14 = arith.constant 0 : index
    %c0_15 = arith.constant 0 : index
    %c0_16 = arith.constant 0 : index
    %c1_17 = arith.constant 1 : index
    %c0_18 = arith.constant 0 : index
    %13 = vector.load %arg2[%c0_14, %c0_15, %c0_16, %c1_17, %c0_18] : memref<1x1x40x10x4xbf16, #tpu.memory_space<vmem>>, vector<1x1x8x8x4xbf16>
    %14 = vector.shape_cast %13 : vector<1x1x8x8x4xbf16> to vector<8x8x4xbf16>
    %c2 = arith.constant 2 : index
    %c0_19 = arith.constant 0 : index
    %c0_20 = arith.constant 0 : index
    %15 = vector.load %arg3[%c2, %c0_19, %c0_20] : memref<25x8x4xbf16, #tpu.memory_space<vmem>>, vector<1x8x4xbf16>
    %16 = vector.shape_cast %15 : vector<1x8x4xbf16> to vector<8x4xbf16>
    %17 = vector.shape_cast %14 : vector<8x8x4xbf16> to vector<64x4xbf16>
    %cst_21 = arith.constant dense<0.000000e+00> : vector<8x64xf32>
    %18 = tpu.matmul %16, %17, %cst_21 {dimension_numbers = #tpu.dot_dimension_numbers<[1], [1], [0], [0], [0, 0, 1, 0], [], []>} : vector<8x4xbf16>, vector<64x4xbf16>, vector<8x64xf32> -> vector<8x64xf32>
    %19 = arith.addf %12, %18 : vector<8x64xf32>
    %c0_22 = arith.constant 0 : index
    %c0_23 = arith.constant 0 : index
    %c10_24 = arith.constant 10 : index
    %c1_25 = arith.constant 1 : index
    %c0_26 = arith.constant 0 : index
    %20 = vector.load %arg2[%c0_22, %c0_23, %c10_24, %c1_25, %c0_26] : memref<1x1x40x10x4xbf16, #tpu.memory_space<vmem>>, vector<1x1x8x8x4xbf16>
    %21 = vector.shape_cast %20 : vector<1x1x8x8x4xbf16> to vector<8x8x4xbf16>
    %c3 = arith.constant 3 : index
    %c0_27 = arith.constant 0 : index
    %c0_28 = arith.constant 0 : index
    %22 = vector.load %arg3[%c3, %c0_27, %c0_28] : memref<25x8x4xbf16, #tpu.memory_space<vmem>>, vector<1x8x4xbf16>
    %23 = vector.shape_cast %22 : vector<1x8x4xbf16> to vector<8x4xbf16>
    %24 = vector.shape_cast %21 : vector<8x8x4xbf16> to vector<64x4xbf16>
    %cst_29 = arith.constant dense<0.000000e+00> : vector<8x64xf32>
    %25 = tpu.matmul %23, %24, %cst_29 {dimension_numbers = #tpu.dot_dimension_numbers<[1], [1], [0], [0], [0, 0, 1, 0], [], []>} : vector<8x4xbf16>, vector<64x4xbf16>, vector<8x64xf32> -> vector<8x64xf32>
    %26 = arith.addf %19, %25 : vector<8x64xf32>
    %c0_30 = arith.constant 0 : index
    %c0_31 = arith.constant 0 : index
    %c0_32 = arith.constant 0 : index
    %c2_33 = arith.constant 2 : index
    %c0_34 = arith.constant 0 : index
    %27 = vector.load %arg2[%c0_30, %c0_31, %c0_32, %c2_33, %c0_34] : memref<1x1x40x10x4xbf16, #tpu.memory_space<vmem>>, vector<1x1x8x8x4xbf16>
    %28 = vector.shape_cast %27 : vector<1x1x8x8x4xbf16> to vector<8x8x4xbf16>
    %c4 = arith.constant 4 : index
    %c0_35 = arith.constant 0 : index
    %c0_36 = arith.constant 0 : index
    %29 = vector.load %arg3[%c4, %c0_35, %c0_36] : memref<25x8x4xbf16, #tpu.memory_space<vmem>>, vector<1x8x4xbf16>
    %30 = vector.shape_cast %29 : vector<1x8x4xbf16> to vector<8x4xbf16>
    %31 = vector.shape_cast %28 : vector<8x8x4xbf16> to vector<64x4xbf16>
    %cst_37 = arith.constant dense<0.000000e+00> : vector<8x64xf32>
    %32 = tpu.matmul %30, %31, %cst_37 {dimension_numbers = #tpu.dot_dimension_numbers<[1], [1], [0], [0], [0, 0, 1, 0], [], []>} : vector<8x4xbf16>, vector<64x4xbf16>, vector<8x64xf32> -> vector<8x64xf32>
    %33 = arith.addf %26, %32 : vector<8x64xf32>
    %c0_38 = arith.constant 0 : index
    %c0_39 = arith.constant 0 : index
    %c20 = arith.constant 20 : index
    %c0_40 = arith.constant 0 : index
    %c0_41 = arith.constant 0 : index
    %34 = vector.load %arg2[%c0_38, %c0_39, %c20, %c0_40, %c0_41] : memref<1x1x40x10x4xbf16, #tpu.memory_space<vmem>>, vector<1x1x8x8x4xbf16>
    %35 = vector.shape_cast %34 : vector<1x1x8x8x4xbf16> to vector<8x8x4xbf16>
    %c5 = arith.constant 5 : index
    %c0_42 = arith.constant 0 : index
    %c0_43 = arith.constant 0 : index
    %36 = vector.load %arg3[%c5, %c0_42, %c0_43] : memref<25x8x4xbf16, #tpu.memory_space<vmem>>, vector<1x8x4xbf16>
    %37 = vector.shape_cast %36 : vector<1x8x4xbf16> to vector<8x4xbf16>
    %38 = vector.shape_cast %35 : vector<8x8x4xbf16> to vector<64x4xbf16>
    %cst_44 = arith.constant dense<0.000000e+00> : vector<8x64xf32>
    %39 = tpu.matmul %37, %38, %cst_44 {dimension_numbers = #tpu.dot_dimension_numbers<[1], [1], [0], [0], [0, 0, 1, 0], [], []>} : vector<8x4xbf16>, vector<64x4xbf16>, vector<8x64xf32> -> vector<8x64xf32>
    %40 = arith.addf %33, %39 : vector<8x64xf32>
    %c0_45 = arith.constant 0 : index
    %c0_46 = arith.constant 0 : index
    %c30 = arith.constant 30 : index
    %c0_47 = arith.constant 0 : index
    %c0_48 = arith.constant 0 : index
    %41 = vector.load %arg2[%c0_45, %c0_46, %c30, %c0_47, %c0_48] : memref<1x1x40x10x4xbf16, #tpu.memory_space<vmem>>, vector<1x1x8x8x4xbf16>
    %42 = vector.shape_cast %41 : vector<1x1x8x8x4xbf16> to vector<8x8x4xbf16>
    %c6 = arith.constant 6 : index
    %c0_49 = arith.constant 0 : index
    %c0_50 = arith.constant 0 : index
    %43 = vector.load %arg3[%c6, %c0_49, %c0_50] : memref<25x8x4xbf16, #tpu.memory_space<vmem>>, vector<1x8x4xbf16>
    %44 = vector.shape_cast %43 : vector<1x8x4xbf16> to vector<8x4xbf16>
    %45 = vector.shape_cast %42 : vector<8x8x4xbf16> to vector<64x4xbf16>
    %cst_51 = arith.constant dense<0.000000e+00> : vector<8x64xf32>
    %46 = tpu.matmul %44, %45, %cst_51 {dimension_numbers = #tpu.dot_dimension_numbers<[1], [1], [0], [0], [0, 0, 1, 0], [], []>} : vector<8x4xbf16>, vector<64x4xbf16>, vector<8x64xf32> -> vector<8x64xf32>
    %47 = arith.addf %40, %46 : vector<8x64xf32>
    %c0_52 = arith.constant 0 : index
    %c0_53 = arith.constant 0 : index
    %c20_54 = arith.constant 20 : index
    %c1_55 = arith.constant 1 : index
    %c0_56 = arith.constant 0 : index
    %48 = vector.load %arg2[%c0_52, %c0_53, %c20_54, %c1_55, %c0_56] : memref<1x1x40x10x4xbf16, #tpu.memory_space<vmem>>, vector<1x1x8x8x4xbf16>
    %49 = vector.shape_cast %48 : vector<1x1x8x8x4xbf16> to vector<8x8x4xbf16>
    %c7 = arith.constant 7 : index
    %c0_57 = arith.constant 0 : index
    %c0_58 = arith.constant 0 : index
    %50 = vector.load %arg3[%c7, %c0_57, %c0_58] : memref<25x8x4xbf16, #tpu.memory_space<vmem>>, vector<1x8x4xbf16>
    %51 = vector.shape_cast %50 : vector<1x8x4xbf16> to vector<8x4xbf16>
    %52 = vector.shape_cast %49 : vector<8x8x4xbf16> to vector<64x4xbf16>
    %cst_59 = arith.constant dense<0.000000e+00> : vector<8x64xf32>
    %53 = tpu.matmul %51, %52, %cst_59 {dimension_numbers = #tpu.dot_dimension_numbers<[1], [1], [0], [0], [0, 0, 1, 0], [], []>} : vector<8x4xbf16>, vector<64x4xbf16>, vector<8x64xf32> -> vector<8x64xf32>
    %54 = arith.addf %47, %53 : vector<8x64xf32>
    %c0_60 = arith.constant 0 : index
    %c0_61 = arith.constant 0 : index
    %c30_62 = arith.constant 30 : index
    %c1_63 = arith.constant 1 : index
    %c0_64 = arith.constant 0 : index
    %55 = vector.load %arg2[%c0_60, %c0_61, %c30_62, %c1_63, %c0_64] : memref<1x1x40x10x4xbf16, #tpu.memory_space<vmem>>, vector<1x1x8x8x4xbf16>
    %56 = vector.shape_cast %55 : vector<1x1x8x8x4xbf16> to vector<8x8x4xbf16>
    %c8 = arith.constant 8 : index
    %c0_65 = arith.constant 0 : index
    %c0_66 = arith.constant 0 : index
    %57 = vector.load %arg3[%c8, %c0_65, %c0_66] : memref<25x8x4xbf16, #tpu.memory_space<vmem>>, vector<1x8x4xbf16>
    %58 = vector.shape_cast %57 : vector<1x8x4xbf16> to vector<8x4xbf16>
    %59 = vector.shape_cast %56 : vector<8x8x4xbf16> to vector<64x4xbf16>
    %cst_67 = arith.constant dense<0.000000e+00> : vector<8x64xf32>
    %60 = tpu.matmul %58, %59, %cst_67 {dimension_numbers = #tpu.dot_dimension_numbers<[1], [1], [0], [0], [0, 0, 1, 0], [], []>} : vector<8x4xbf16>, vector<64x4xbf16>, vector<8x64xf32> -> vector<8x64xf32>
    %61 = arith.addf %54, %60 : vector<8x64xf32>
    %c0_68 = arith.constant 0 : index
    %c0_69 = arith.constant 0 : index
    %c20_70 = arith.constant 20 : index
    %c2_71 = arith.constant 2 : index
    %c0_72 = arith.constant 0 : index
    %62 = vector.load %arg2[%c0_68, %c0_69, %c20_70, %c2_71, %c0_72] : memref<1x1x40x10x4xbf16, #tpu.memory_space<vmem>>, vector<1x1x8x8x4xbf16>
    %63 = vector.shape_cast %62 : vector<1x1x8x8x4xbf16> to vector<8x8x4xbf16>
    %c9 = arith.constant 9 : index
    %c0_73 = arith.constant 0 : index
    %c0_74 = arith.constant 0 : index
    %64 = vector.load %arg3[%c9, %c0_73, %c0_74] : memref<25x8x4xbf16, #tpu.memory_space<vmem>>, vector<1x8x4xbf16>
    %65 = vector.shape_cast %64 : vector<1x8x4xbf16> to vector<8x4xbf16>
    %66 = vector.shape_cast %63 : vector<8x8x4xbf16> to vector<64x4xbf16>
    %cst_75 = arith.constant dense<0.000000e+00> : vector<8x64xf32>
    %67 = tpu.matmul %65, %66, %cst_75 {dimension_numbers = #tpu.dot_dimension_numbers<[1], [1], [0], [0], [0, 0, 1, 0], [], []>} : vector<8x4xbf16>, vector<64x4xbf16>, vector<8x64xf32> -> vector<8x64xf32>
    %68 = arith.addf %61, %67 : vector<8x64xf32>
    %c0_76 = arith.constant 0 : index
    %c0_77 = arith.constant 0 : index
    %c1_78 = arith.constant 1 : index
    %c0_79 = arith.constant 0 : index
    %c0_80 = arith.constant 0 : index
    %69 = vector.load %arg2[%c0_76, %c0_77, %c1_78, %c0_79, %c0_80] : memref<1x1x40x10x4xbf16, #tpu.memory_space<vmem>>, vector<1x1x8x8x4xbf16>
    %70 = vector.shape_cast %69 : vector<1x1x8x8x4xbf16> to vector<8x8x4xbf16>
    %c10_81 = arith.constant 10 : index
    %c0_82 = arith.constant 0 : index
    %c0_83 = arith.constant 0 : index
    %71 = vector.load %arg3[%c10_81, %c0_82, %c0_83] : memref<25x8x4xbf16, #tpu.memory_space<vmem>>, vector<1x8x4xbf16>
    %72 = vector.shape_cast %71 : vector<1x8x4xbf16> to vector<8x4xbf16>
    %73 = vector.shape_cast %70 : vector<8x8x4xbf16> to vector<64x4xbf16>
    %cst_84 = arith.constant dense<0.000000e+00> : vector<8x64xf32>
    %74 = tpu.matmul %72, %73, %cst_84 {dimension_numbers = #tpu.dot_dimension_numbers<[1], [1], [0], [0], [0, 0, 1, 0], [], []>} : vector<8x4xbf16>, vector<64x4xbf16>, vector<8x64xf32> -> vector<8x64xf32>
    %75 = arith.addf %68, %74 : vector<8x64xf32>
    %c0_85 = arith.constant 0 : index
    %c0_86 = arith.constant 0 : index
    %c11 = arith.constant 11 : index
    %c0_87 = arith.constant 0 : index
    %c0_88 = arith.constant 0 : index
    %76 = vector.load %arg2[%c0_85, %c0_86, %c11, %c0_87, %c0_88] : memref<1x1x40x10x4xbf16, #tpu.memory_space<vmem>>, vector<1x1x8x8x4xbf16>
    %77 = vector.shape_cast %76 : vector<1x1x8x8x4xbf16> to vector<8x8x4xbf16>
    %c11_89 = arith.constant 11 : index
    %c0_90 = arith.constant 0 : index
    %c0_91 = arith.constant 0 : index
    %78 = vector.load %arg3[%c11_89, %c0_90, %c0_91] : memref<25x8x4xbf16, #tpu.memory_space<vmem>>, vector<1x8x4xbf16>
    %79 = vector.shape_cast %78 : vector<1x8x4xbf16> to vector<8x4xbf16>
    %80 = vector.shape_cast %77 : vector<8x8x4xbf16> to vector<64x4xbf16>
    %cst_92 = arith.constant dense<0.000000e+00> : vector<8x64xf32>
    %81 = tpu.matmul %79, %80, %cst_92 {dimension_numbers = #tpu.dot_dimension_numbers<[1], [1], [0], [0], [0, 0, 1, 0], [], []>} : vector<8x4xbf16>, vector<64x4xbf16>, vector<8x64xf32> -> vector<8x64xf32>
    %82 = arith.addf %75, %81 : vector<8x64xf32>
    %c0_93 = arith.constant 0 : index
    %c0_94 = arith.constant 0 : index
    %c1_95 = arith.constant 1 : index
    %c1_96 = arith.constant 1 : index
    %c0_97 = arith.constant 0 : index
    %83 = vector.load %arg2[%c0_93, %c0_94, %c1_95, %c1_96, %c0_97] : memref<1x1x40x10x4xbf16, #tpu.memory_space<vmem>>, vector<1x1x8x8x4xbf16>
    %84 = vector.shape_cast %83 : vector<1x1x8x8x4xbf16> to vector<8x8x4xbf16>
    %c12 = arith.constant 12 : index
    %c0_98 = arith.constant 0 : index
    %c0_99 = arith.constant 0 : index
    %85 = vector.load %arg3[%c12, %c0_98, %c0_99] : memref<25x8x4xbf16, #tpu.memory_space<vmem>>, vector<1x8x4xbf16>
    %86 = vector.shape_cast %85 : vector<1x8x4xbf16> to vector<8x4xbf16>
    %87 = vector.shape_cast %84 : vector<8x8x4xbf16> to vector<64x4xbf16>
    %cst_100 = arith.constant dense<0.000000e+00> : vector<8x64xf32>
    %88 = tpu.matmul %86, %87, %cst_100 {dimension_numbers = #tpu.dot_dimension_numbers<[1], [1], [0], [0], [0, 0, 1, 0], [], []>} : vector<8x4xbf16>, vector<64x4xbf16>, vector<8x64xf32> -> vector<8x64xf32>
    %89 = arith.addf %82, %88 : vector<8x64xf32>
    %c0_101 = arith.constant 0 : index
    %c0_102 = arith.constant 0 : index
    %c11_103 = arith.constant 11 : index
    %c1_104 = arith.constant 1 : index
    %c0_105 = arith.constant 0 : index
    %90 = vector.load %arg2[%c0_101, %c0_102, %c11_103, %c1_104, %c0_105] : memref<1x1x40x10x4xbf16, #tpu.memory_space<vmem>>, vector<1x1x8x8x4xbf16>
    %91 = vector.shape_cast %90 : vector<1x1x8x8x4xbf16> to vector<8x8x4xbf16>
    %c13 = arith.constant 13 : index
    %c0_106 = arith.constant 0 : index
    %c0_107 = arith.constant 0 : index
    %92 = vector.load %arg3[%c13, %c0_106, %c0_107] : memref<25x8x4xbf16, #tpu.memory_space<vmem>>, vector<1x8x4xbf16>
    %93 = vector.shape_cast %92 : vector<1x8x4xbf16> to vector<8x4xbf16>
    %94 = vector.shape_cast %91 : vector<8x8x4xbf16> to vector<64x4xbf16>
    %cst_108 = arith.constant dense<0.000000e+00> : vector<8x64xf32>
    %95 = tpu.matmul %93, %94, %cst_108 {dimension_numbers = #tpu.dot_dimension_numbers<[1], [1], [0], [0], [0, 0, 1, 0], [], []>} : vector<8x4xbf16>, vector<64x4xbf16>, vector<8x64xf32> -> vector<8x64xf32>
    %96 = arith.addf %89, %95 : vector<8x64xf32>
    %c0_109 = arith.constant 0 : index
    %c0_110 = arith.constant 0 : index
    %c1_111 = arith.constant 1 : index
    %c2_112 = arith.constant 2 : index
    %c0_113 = arith.constant 0 : index
    %97 = vector.load %arg2[%c0_109, %c0_110, %c1_111, %c2_112, %c0_113] : memref<1x1x40x10x4xbf16, #tpu.memory_space<vmem>>, vector<1x1x8x8x4xbf16>
    %98 = vector.shape_cast %97 : vector<1x1x8x8x4xbf16> to vector<8x8x4xbf16>
    %c14 = arith.constant 14 : index
    %c0_114 = arith.constant 0 : index
    %c0_115 = arith.constant 0 : index
    %99 = vector.load %arg3[%c14, %c0_114, %c0_115] : memref<25x8x4xbf16, #tpu.memory_space<vmem>>, vector<1x8x4xbf16>
    %100 = vector.shape_cast %99 : vector<1x8x4xbf16> to vector<8x4xbf16>
    %101 = vector.shape_cast %98 : vector<8x8x4xbf16> to vector<64x4xbf16>
    %cst_116 = arith.constant dense<0.000000e+00> : vector<8x64xf32>
    %102 = tpu.matmul %100, %101, %cst_116 {dimension_numbers = #tpu.dot_dimension_numbers<[1], [1], [0], [0], [0, 0, 1, 0], [], []>} : vector<8x4xbf16>, vector<64x4xbf16>, vector<8x64xf32> -> vector<8x64xf32>
    %103 = arith.addf %96, %102 : vector<8x64xf32>
    %c0_117 = arith.constant 0 : index
    %c0_118 = arith.constant 0 : index
    %c21 = arith.constant 21 : index
    %c0_119 = arith.constant 0 : index
    %c0_120 = arith.constant 0 : index
    %104 = vector.load %arg2[%c0_117, %c0_118, %c21, %c0_119, %c0_120] : memref<1x1x40x10x4xbf16, #tpu.memory_space<vmem>>, vector<1x1x8x8x4xbf16>
    %105 = vector.shape_cast %104 : vector<1x1x8x8x4xbf16> to vector<8x8x4xbf16>
    %c15 = arith.constant 15 : index
    %c0_121 = arith.constant 0 : index
    %c0_122 = arith.constant 0 : index
    %106 = vector.load %arg3[%c15, %c0_121, %c0_122] : memref<25x8x4xbf16, #tpu.memory_space<vmem>>, vector<1x8x4xbf16>
    %107 = vector.shape_cast %106 : vector<1x8x4xbf16> to vector<8x4xbf16>
    %108 = vector.shape_cast %105 : vector<8x8x4xbf16> to vector<64x4xbf16>
    %cst_123 = arith.constant dense<0.000000e+00> : vector<8x64xf32>
    %109 = tpu.matmul %107, %108, %cst_123 {dimension_numbers = #tpu.dot_dimension_numbers<[1], [1], [0], [0], [0, 0, 1, 0], [], []>} : vector<8x4xbf16>, vector<64x4xbf16>, vector<8x64xf32> -> vector<8x64xf32>
    %110 = arith.addf %103, %109 : vector<8x64xf32>
    %c0_124 = arith.constant 0 : index
    %c0_125 = arith.constant 0 : index
    %c31 = arith.constant 31 : index
    %c0_126 = arith.constant 0 : index
    %c0_127 = arith.constant 0 : index
    %111 = vector.load %arg2[%c0_124, %c0_125, %c31, %c0_126, %c0_127] : memref<1x1x40x10x4xbf16, #tpu.memory_space<vmem>>, vector<1x1x8x8x4xbf16>
    %112 = vector.shape_cast %111 : vector<1x1x8x8x4xbf16> to vector<8x8x4xbf16>
    %c16 = arith.constant 16 : index
    %c0_128 = arith.constant 0 : index
    %c0_129 = arith.constant 0 : index
    %113 = vector.load %arg3[%c16, %c0_128, %c0_129] : memref<25x8x4xbf16, #tpu.memory_space<vmem>>, vector<1x8x4xbf16>
    %114 = vector.shape_cast %113 : vector<1x8x4xbf16> to vector<8x4xbf16>
    %115 = vector.shape_cast %112 : vector<8x8x4xbf16> to vector<64x4xbf16>
    %cst_130 = arith.constant dense<0.000000e+00> : vector<8x64xf32>
    %116 = tpu.matmul %114, %115, %cst_130 {dimension_numbers = #tpu.dot_dimension_numbers<[1], [1], [0], [0], [0, 0, 1, 0], [], []>} : vector<8x4xbf16>, vector<64x4xbf16>, vector<8x64xf32> -> vector<8x64xf32>
    %117 = arith.addf %110, %116 : vector<8x64xf32>
    %c0_131 = arith.constant 0 : index
    %c0_132 = arith.constant 0 : index
    %c21_133 = arith.constant 21 : index
    %c1_134 = arith.constant 1 : index
    %c0_135 = arith.constant 0 : index
    %118 = vector.load %arg2[%c0_131, %c0_132, %c21_133, %c1_134, %c0_135] : memref<1x1x40x10x4xbf16, #tpu.memory_space<vmem>>, vector<1x1x8x8x4xbf16>
    %119 = vector.shape_cast %118 : vector<1x1x8x8x4xbf16> to vector<8x8x4xbf16>
    %c17 = arith.constant 17 : index
    %c0_136 = arith.constant 0 : index
    %c0_137 = arith.constant 0 : index
    %120 = vector.load %arg3[%c17, %c0_136, %c0_137] : memref<25x8x4xbf16, #tpu.memory_space<vmem>>, vector<1x8x4xbf16>
    %121 = vector.shape_cast %120 : vector<1x8x4xbf16> to vector<8x4xbf16>
    %122 = vector.shape_cast %119 : vector<8x8x4xbf16> to vector<64x4xbf16>
    %cst_138 = arith.constant dense<0.000000e+00> : vector<8x64xf32>
    %123 = tpu.matmul %121, %122, %cst_138 {dimension_numbers = #tpu.dot_dimension_numbers<[1], [1], [0], [0], [0, 0, 1, 0], [], []>} : vector<8x4xbf16>, vector<64x4xbf16>, vector<8x64xf32> -> vector<8x64xf32>
    %124 = arith.addf %117, %123 : vector<8x64xf32>
    %c0_139 = arith.constant 0 : index
    %c0_140 = arith.constant 0 : index
    %c31_141 = arith.constant 31 : index
    %c1_142 = arith.constant 1 : index
    %c0_143 = arith.constant 0 : index
    %125 = vector.load %arg2[%c0_139, %c0_140, %c31_141, %c1_142, %c0_143] : memref<1x1x40x10x4xbf16, #tpu.memory_space<vmem>>, vector<1x1x8x8x4xbf16>
    %126 = vector.shape_cast %125 : vector<1x1x8x8x4xbf16> to vector<8x8x4xbf16>
    %c18 = arith.constant 18 : index
    %c0_144 = arith.constant 0 : index
    %c0_145 = arith.constant 0 : index
    %127 = vector.load %arg3[%c18, %c0_144, %c0_145] : memref<25x8x4xbf16, #tpu.memory_space<vmem>>, vector<1x8x4xbf16>
    %128 = vector.shape_cast %127 : vector<1x8x4xbf16> to vector<8x4xbf16>
    %129 = vector.shape_cast %126 : vector<8x8x4xbf16> to vector<64x4xbf16>
    %cst_146 = arith.constant dense<0.000000e+00> : vector<8x64xf32>
    %130 = tpu.matmul %128, %129, %cst_146 {dimension_numbers = #tpu.dot_dimension_numbers<[1], [1], [0], [0], [0, 0, 1, 0], [], []>} : vector<8x4xbf16>, vector<64x4xbf16>, vector<8x64xf32> -> vector<8x64xf32>
    %131 = arith.addf %124, %130 : vector<8x64xf32>
    %c0_147 = arith.constant 0 : index
    %c0_148 = arith.constant 0 : index
    %c21_149 = arith.constant 21 : index
    %c2_150 = arith.constant 2 : index
    %c0_151 = arith.constant 0 : index
    %132 = vector.load %arg2[%c0_147, %c0_148, %c21_149, %c2_150, %c0_151] : memref<1x1x40x10x4xbf16, #tpu.memory_space<vmem>>, vector<1x1x8x8x4xbf16>
    %133 = vector.shape_cast %132 : vector<1x1x8x8x4xbf16> to vector<8x8x4xbf16>
    %c19 = arith.constant 19 : index
    %c0_152 = arith.constant 0 : index
    %c0_153 = arith.constant 0 : index
    %134 = vector.load %arg3[%c19, %c0_152, %c0_153] : memref<25x8x4xbf16, #tpu.memory_space<vmem>>, vector<1x8x4xbf16>
    %135 = vector.shape_cast %134 : vector<1x8x4xbf16> to vector<8x4xbf16>
    %136 = vector.shape_cast %133 : vector<8x8x4xbf16> to vector<64x4xbf16>
    %cst_154 = arith.constant dense<0.000000e+00> : vector<8x64xf32>
    %137 = tpu.matmul %135, %136, %cst_154 {dimension_numbers = #tpu.dot_dimension_numbers<[1], [1], [0], [0], [0, 0, 1, 0], [], []>} : vector<8x4xbf16>, vector<64x4xbf16>, vector<8x64xf32> -> vector<8x64xf32>
    %138 = arith.addf %131, %137 : vector<8x64xf32>
    %c0_155 = arith.constant 0 : index
    %c0_156 = arith.constant 0 : index
    %c2_157 = arith.constant 2 : index
    %c0_158 = arith.constant 0 : index
    %c0_159 = arith.constant 0 : index
    %139 = vector.load %arg2[%c0_155, %c0_156, %c2_157, %c0_158, %c0_159] : memref<1x1x40x10x4xbf16, #tpu.memory_space<vmem>>, vector<1x1x8x8x4xbf16>
    %140 = vector.shape_cast %139 : vector<1x1x8x8x4xbf16> to vector<8x8x4xbf16>
    %c20_160 = arith.constant 20 : index
    %c0_161 = arith.constant 0 : index
    %c0_162 = arith.constant 0 : index
    %141 = vector.load %arg3[%c20_160, %c0_161, %c0_162] : memref<25x8x4xbf16, #tpu.memory_space<vmem>>, vector<1x8x4xbf16>
    %142 = vector.shape_cast %141 : vector<1x8x4xbf16> to vector<8x4xbf16>
    %143 = vector.shape_cast %140 : vector<8x8x4xbf16> to vector<64x4xbf16>
    %cst_163 = arith.constant dense<0.000000e+00> : vector<8x64xf32>
    %144 = tpu.matmul %142, %143, %cst_163 {dimension_numbers = #tpu.dot_dimension_numbers<[1], [1], [0], [0], [0, 0, 1, 0], [], []>} : vector<8x4xbf16>, vector<64x4xbf16>, vector<8x64xf32> -> vector<8x64xf32>
    %145 = arith.addf %138, %144 : vector<8x64xf32>
    %c0_164 = arith.constant 0 : index
    %c0_165 = arith.constant 0 : index
    %c12_166 = arith.constant 12 : index
    %c0_167 = arith.constant 0 : index
    %c0_168 = arith.constant 0 : index
    %146 = vector.load %arg2[%c0_164, %c0_165, %c12_166, %c0_167, %c0_168] : memref<1x1x40x10x4xbf16, #tpu.memory_space<vmem>>, vector<1x1x8x8x4xbf16>
    %147 = vector.shape_cast %146 : vector<1x1x8x8x4xbf16> to vector<8x8x4xbf16>
    %c21_169 = arith.constant 21 : index
    %c0_170 = arith.constant 0 : index
    %c0_171 = arith.constant 0 : index
    %148 = vector.load %arg3[%c21_169, %c0_170, %c0_171] : memref<25x8x4xbf16, #tpu.memory_space<vmem>>, vector<1x8x4xbf16>
    %149 = vector.shape_cast %148 : vector<1x8x4xbf16> to vector<8x4xbf16>
    %150 = vector.shape_cast %147 : vector<8x8x4xbf16> to vector<64x4xbf16>
    %cst_172 = arith.constant dense<0.000000e+00> : vector<8x64xf32>
    %151 = tpu.matmul %149, %150, %cst_172 {dimension_numbers = #tpu.dot_dimension_numbers<[1], [1], [0], [0], [0, 0, 1, 0], [], []>} : vector<8x4xbf16>, vector<64x4xbf16>, vector<8x64xf32> -> vector<8x64xf32>
    %152 = arith.addf %145, %151 : vector<8x64xf32>
    %c0_173 = arith.constant 0 : index
    %c0_174 = arith.constant 0 : index
    %c2_175 = arith.constant 2 : index
    %c1_176 = arith.constant 1 : index
    %c0_177 = arith.constant 0 : index
    %153 = vector.load %arg2[%c0_173, %c0_174, %c2_175, %c1_176, %c0_177] : memref<1x1x40x10x4xbf16, #tpu.memory_space<vmem>>, vector<1x1x8x8x4xbf16>
    %154 = vector.shape_cast %153 : vector<1x1x8x8x4xbf16> to vector<8x8x4xbf16>
    %c22 = arith.constant 22 : index
    %c0_178 = arith.constant 0 : index
    %c0_179 = arith.constant 0 : index
    %155 = vector.load %arg3[%c22, %c0_178, %c0_179] : memref<25x8x4xbf16, #tpu.memory_space<vmem>>, vector<1x8x4xbf16>
    %156 = vector.shape_cast %155 : vector<1x8x4xbf16> to vector<8x4xbf16>
    %157 = vector.shape_cast %154 : vector<8x8x4xbf16> to vector<64x4xbf16>
    %cst_180 = arith.constant dense<0.000000e+00> : vector<8x64xf32>
    %158 = tpu.matmul %156, %157, %cst_180 {dimension_numbers = #tpu.dot_dimension_numbers<[1], [1], [0], [0], [0, 0, 1, 0], [], []>} : vector<8x4xbf16>, vector<64x4xbf16>, vector<8x64xf32> -> vector<8x64xf32>
    %159 = arith.addf %152, %158 : vector<8x64xf32>
    %c0_181 = arith.constant 0 : index
    %c0_182 = arith.constant 0 : index
    %c12_183 = arith.constant 12 : index
    %c1_184 = arith.constant 1 : index
    %c0_185 = arith.constant 0 : index
    %160 = vector.load %arg2[%c0_181, %c0_182, %c12_183, %c1_184, %c0_185] : memref<1x1x40x10x4xbf16, #tpu.memory_space<vmem>>, vector<1x1x8x8x4xbf16>
    %161 = vector.shape_cast %160 : vector<1x1x8x8x4xbf16> to vector<8x8x4xbf16>
    %c23 = arith.constant 23 : index
    %c0_186 = arith.constant 0 : index
    %c0_187 = arith.constant 0 : index
    %162 = vector.load %arg3[%c23, %c0_186, %c0_187] : memref<25x8x4xbf16, #tpu.memory_space<vmem>>, vector<1x8x4xbf16>
    %163 = vector.shape_cast %162 : vector<1x8x4xbf16> to vector<8x4xbf16>
    %164 = vector.shape_cast %161 : vector<8x8x4xbf16> to vector<64x4xbf16>
    %cst_188 = arith.constant dense<0.000000e+00> : vector<8x64xf32>
    %165 = tpu.matmul %163, %164, %cst_188 {dimension_numbers = #tpu.dot_dimension_numbers<[1], [1], [0], [0], [0, 0, 1, 0], [], []>} : vector<8x4xbf16>, vector<64x4xbf16>, vector<8x64xf32> -> vector<8x64xf32>
    %166 = arith.addf %159, %165 : vector<8x64xf32>
    %c0_189 = arith.constant 0 : index
    %c0_190 = arith.constant 0 : index
    %c2_191 = arith.constant 2 : index
    %c2_192 = arith.constant 2 : index
    %c0_193 = arith.constant 0 : index
    %167 = vector.load %arg2[%c0_189, %c0_190, %c2_191, %c2_192, %c0_193] : memref<1x1x40x10x4xbf16, #tpu.memory_space<vmem>>, vector<1x1x8x8x4xbf16>
    %168 = vector.shape_cast %167 : vector<1x1x8x8x4xbf16> to vector<8x8x4xbf16>
    %c24 = arith.constant 24 : index
    %c0_194 = arith.constant 0 : index
    %c0_195 = arith.constant 0 : index
    %169 = vector.load %arg3[%c24, %c0_194, %c0_195] : memref<25x8x4xbf16, #tpu.memory_space<vmem>>, vector<1x8x4xbf16>
    %170 = vector.shape_cast %169 : vector<1x8x4xbf16> to vector<8x4xbf16>
    %171 = vector.shape_cast %168 : vector<8x8x4xbf16> to vector<64x4xbf16>
    %cst_196 = arith.constant dense<0.000000e+00> : vector<8x64xf32>
    %172 = tpu.matmul %170, %171, %cst_196 {dimension_numbers = #tpu.dot_dimension_numbers<[1], [1], [0], [0], [0, 0, 1, 0], [], []>} : vector<8x4xbf16>, vector<64x4xbf16>, vector<8x64xf32> -> vector<8x64xf32>
    %173 = arith.addf %166, %172 : vector<8x64xf32>
    %cst_197 = arith.constant dense<0.000000e+00> : vector<8xf32>
    %174 = vector.multi_reduction <add>, %173, %cst_197 [1] : vector<8x64xf32> to vector<8xf32>
    %175 = vector.shape_cast %174 : vector<8xf32> to vector<8x1xf32>
    %c0_198 = arith.constant 0 : index
    %c0_199 = arith.constant 0 : index
    %c0_200 = arith.constant 0 : index
    %c0_201 = arith.constant 0 : index
    %176 = vector.load %arg4[%c0_198, %c0_199, %c0_200, %c0_201] : memref<1x1x8x2xf32, #tpu.memory_space<vmem>>, vector<1x1x8x1xf32>
    %177 = vector.shape_cast %176 : vector<1x1x8x1xf32> to vector<8x1xf32>
    %178 = vector.shape_cast %175 : vector<8x1xf32> to vector<1x1x8x1xf32>
    tpu.vector_store %arg4[%c0_198, %c0_199, %c0_200, %c0_201], %178 {strides = array<i32>} : memref<1x1x8x2xf32, #tpu.memory_space<vmem>>, vector<1x1x8x1xf32>,
    %179 = arith.mulf %173, %173 : vector<8x64xf32>
    %cst_202 = arith.constant dense<0.000000e+00> : vector<8xf32>
    %180 = vector.multi_reduction <add>, %179, %cst_202 [1] : vector<8x64xf32> to vector<8xf32>
    %181 = vector.shape_cast %180 : vector<8xf32> to vector<8x1xf32>
    %c0_203 = arith.constant 0 : index
    %c0_204 = arith.constant 0 : index
    %c0_205 = arith.constant 0 : index
    %c1_206 = arith.constant 1 : index
    %182 = vector.load %arg4[%c0_203, %c0_204, %c0_205, %c1_206] : memref<1x1x8x2xf32, #tpu.memory_space<vmem>>, vector<1x1x8x1xf32>
    %183 = vector.shape_cast %182 : vector<1x1x8x1xf32> to vector<8x1xf32>
    %184 = vector.shape_cast %181 : vector<8x1xf32> to vector<1x1x8x1xf32>
    tpu.vector_store %arg4[%c0_203, %c0_204, %c0_205, %c1_206], %184 {strides = array<i32>} : memref<1x1x8x2xf32, #tpu.memory_space<vmem>>, vector<1x1x8x1xf32>,
    return
  }
  func.func @transform_0(%arg0: i32, %arg1: i32) -> (i32, i32, i32, i32, i32) {
    %c0_i32 = arith.constant 0 : i32
    %c0_i32_0 = arith.constant 0 : i32
    %c0_i32_1 = arith.constant 0 : i32
    %c0_i32_2 = arith.constant 0 : i32
    return %arg0, %arg1, %c0_i32, %c0_i32_0, %c0_i32_1 : i32, i32, i32, i32, i32
  }
  func.func @transform_1(%arg0: i32, %arg1: i32) -> (i32, i32, i32) {
    %c0_i32 = arith.constant 0 : i32
    %c0_i32_0 = arith.constant 0 : i32
    %c0_i32_1 = arith.constant 0 : i32
    %c0_i32_2 = arith.constant 0 : i32
    return %c0_i32, %c0_i32_0, %c0_i32_1 : i32, i32, i32
  }
  func.func @transform_2(%arg0: i32, %arg1: i32) -> (i32, i32, i32, i32) {
    %c0_i32 = arith.constant 0 : i32
    %c0_i32_0 = arith.constant 0 : i32
    %c0_i32_1 = arith.constant 0 : i32
    return %arg0, %arg1, %c0_i32, %c0_i32_0 : i32, i32, i32, i32
  }
}

module attributes {stable_mosaic.version = 11 : i64} {
  func.func @kernel(%arg0: i32, %arg1: i32, %arg2: memref<1x1x40x10x4xbf16, #tpu.memory_space<vmem>>, %arg3: memref<25x8x4xbf16, #tpu.memory_space<vmem>>, %arg4: memref<8x2xf32, #tpu.memory_space<vmem>>, %arg5: memref<1x8x64xf32, #tpu.memory_space<vmem>>) attributes {dimension_semantics = [#tpu.dimension_semantics<parallel>, #tpu.dimension_semantics<parallel>], iteration_bounds = array<i64: 2, 1>, scalar_prefetch = 0 : i64, scratch_operands = 0 : i64, tpu.core_type = #tpu.core_type<tc>, window_params = [{transform_indices = @transform_0, window_bounds = array<i64: 1, 1, 40, 10, 4>}, {pipeline_mode = #tpu.pipeline_mode<synchronous>, transform_indices = @transform_1, window_bounds = array<i64: 25, 8, 4>}, {pipeline_mode = #tpu.pipeline_mode<synchronous>, transform_indices = @transform_2, window_bounds = array<i64: 8, 2>}, {transform_indices = @transform_3, window_bounds = array<i64: 1, 8, 64>}]} {
    %c0 = arith.constant 0 : index
    %c0_0 = arith.constant 0 : index
    %c0_1 = arith.constant 0 : index
    %c0_2 = arith.constant 0 : index
    %c0_3 = arith.constant 0 : index
    %0 = vector.load %arg2[%c0, %c0_0, %c0_1, %c0_2, %c0_3] : memref<1x1x40x10x4xbf16, #tpu.memory_space<vmem>>, vector<1x1x8x8x4xbf16>
    %1 = vector.shape_cast %0 : vector<1x1x8x8x4xbf16> to vector<8x8x4xbf16>
    %c0_4 = arith.constant 0 : index
    %c0_5 = arith.constant 0 : index
    %c0_6 = arith.constant 0 : index
    %2 = vector.load %arg3[%c0_4, %c0_5, %c0_6] : memref<25x8x4xbf16, #tpu.memory_space<vmem>>, vector<1x8x4xbf16>
    %3 = vector.shape_cast %2 : vector<1x8x4xbf16> to vector<8x4xbf16>
    %4 = vector.shape_cast %1 : vector<8x8x4xbf16> to vector<64x4xbf16>
    %cst = arith.constant dense<0.000000e+00> : vector<8x64xf32>
    %5 = tpu.matmul %3, %4, %cst {dimension_numbers = #tpu.dot_dimension_numbers<[1], [1], [0], [0], [0, 0, 1, 0], [], []>} : vector<8x4xbf16>, vector<64x4xbf16>, vector<8x64xf32> -> vector<8x64xf32>
    %c0_7 = arith.constant 0 : index
    %c0_8 = arith.constant 0 : index
    %c10 = arith.constant 10 : index
    %c0_9 = arith.constant 0 : index
    %c0_10 = arith.constant 0 : index
    %6 = vector.load %arg2[%c0_7, %c0_8, %c10, %c0_9, %c0_10] : memref<1x1x40x10x4xbf16, #tpu.memory_space<vmem>>, vector<1x1x8x8x4xbf16>
    %7 = vector.shape_cast %6 : vector<1x1x8x8x4xbf16> to vector<8x8x4xbf16>
    %c1 = arith.constant 1 : index
    %c0_11 = arith.constant 0 : index
    %c0_12 = arith.constant 0 : index
    %8 = vector.load %arg3[%c1, %c0_11, %c0_12] : memref<25x8x4xbf16, #tpu.memory_space<vmem>>, vector<1x8x4xbf16>
    %9 = vector.shape_cast %8 : vector<1x8x4xbf16> to vector<8x4xbf16>
    %10 = vector.shape_cast %7 : vector<8x8x4xbf16> to vector<64x4xbf16>
    %cst_13 = arith.constant dense<0.000000e+00> : vector<8x64xf32>
    %11 = tpu.matmul %9, %10, %cst_13 {dimension_numbers = #tpu.dot_dimension_numbers<[1], [1], [0], [0], [0, 0, 1, 0], [], []>} : vector<8x4xbf16>, vector<64x4xbf16>, vector<8x64xf32> -> vector<8x64xf32>
    %12 = arith.addf %5, %11 : vector<8x64xf32>
    %c0_14 = arith.constant 0 : index
    %c0_15 = arith.constant 0 : index
    %c0_16 = arith.constant 0 : index
    %c1_17 = arith.constant 1 : index
    %c0_18 = arith.constant 0 : index
    %13 = vector.load %arg2[%c0_14, %c0_15, %c0_16, %c1_17, %c0_18] : memref<1x1x40x10x4xbf16, #tpu.memory_space<vmem>>, vector<1x1x8x8x4xbf16>
    %14 = vector.shape_cast %13 : vector<1x1x8x8x4xbf16> to vector<8x8x4xbf16>
    %c2 = arith.constant 2 : index
    %c0_19 = arith.constant 0 : index
    %c0_20 = arith.constant 0 : index
    %15 = vector.load %arg3[%c2, %c0_19, %c0_20] : memref<25x8x4xbf16, #tpu.memory_space<vmem>>, vector<1x8x4xbf16>
    %16 = vector.shape_cast %15 : vector<1x8x4xbf16> to vector<8x4xbf16>
    %17 = vector.shape_cast %14 : vector<8x8x4xbf16> to vector<64x4xbf16>
    %cst_21 = arith.constant dense<0.000000e+00> : vector<8x64xf32>
    %18 = tpu.matmul %16, %17, %cst_21 {dimension_numbers = #tpu.dot_dimension_numbers<[1], [1], [0], [0], [0, 0, 1, 0], [], []>} : vector<8x4xbf16>, vector<64x4xbf16>, vector<8x64xf32> -> vector<8x64xf32>
    %19 = arith.addf %12, %18 : vector<8x64xf32>
    %c0_22 = arith.constant 0 : index
    %c0_23 = arith.constant 0 : index
    %c10_24 = arith.constant 10 : index
    %c1_25 = arith.constant 1 : index
    %c0_26 = arith.constant 0 : index
    %20 = vector.load %arg2[%c0_22, %c0_23, %c10_24, %c1_25, %c0_26] : memref<1x1x40x10x4xbf16, #tpu.memory_space<vmem>>, vector<1x1x8x8x4xbf16>
    %21 = vector.shape_cast %20 : vector<1x1x8x8x4xbf16> to vector<8x8x4xbf16>
    %c3 = arith.constant 3 : index
    %c0_27 = arith.constant 0 : index
    %c0_28 = arith.constant 0 : index
    %22 = vector.load %arg3[%c3, %c0_27, %c0_28] : memref<25x8x4xbf16, #tpu.memory_space<vmem>>, vector<1x8x4xbf16>
    %23 = vector.shape_cast %22 : vector<1x8x4xbf16> to vector<8x4xbf16>
    %24 = vector.shape_cast %21 : vector<8x8x4xbf16> to vector<64x4xbf16>
    %cst_29 = arith.constant dense<0.000000e+00> : vector<8x64xf32>
    %25 = tpu.matmul %23, %24, %cst_29 {dimension_numbers = #tpu.dot_dimension_numbers<[1], [1], [0], [0], [0, 0, 1, 0], [], []>} : vector<8x4xbf16>, vector<64x4xbf16>, vector<8x64xf32> -> vector<8x64xf32>
    %26 = arith.addf %19, %25 : vector<8x64xf32>
    %c0_30 = arith.constant 0 : index
    %c0_31 = arith.constant 0 : index
    %c0_32 = arith.constant 0 : index
    %c2_33 = arith.constant 2 : index
    %c0_34 = arith.constant 0 : index
    %27 = vector.load %arg2[%c0_30, %c0_31, %c0_32, %c2_33, %c0_34] : memref<1x1x40x10x4xbf16, #tpu.memory_space<vmem>>, vector<1x1x8x8x4xbf16>
    %28 = vector.shape_cast %27 : vector<1x1x8x8x4xbf16> to vector<8x8x4xbf16>
    %c4 = arith.constant 4 : index
    %c0_35 = arith.constant 0 : index
    %c0_36 = arith.constant 0 : index
    %29 = vector.load %arg3[%c4, %c0_35, %c0_36] : memref<25x8x4xbf16, #tpu.memory_space<vmem>>, vector<1x8x4xbf16>
    %30 = vector.shape_cast %29 : vector<1x8x4xbf16> to vector<8x4xbf16>
    %31 = vector.shape_cast %28 : vector<8x8x4xbf16> to vector<64x4xbf16>
    %cst_37 = arith.constant dense<0.000000e+00> : vector<8x64xf32>
    %32 = tpu.matmul %30, %31, %cst_37 {dimension_numbers = #tpu.dot_dimension_numbers<[1], [1], [0], [0], [0, 0, 1, 0], [], []>} : vector<8x4xbf16>, vector<64x4xbf16>, vector<8x64xf32> -> vector<8x64xf32>
    %33 = arith.addf %26, %32 : vector<8x64xf32>
    %c0_38 = arith.constant 0 : index
    %c0_39 = arith.constant 0 : index
    %c20 = arith.constant 20 : index
    %c0_40 = arith.constant 0 : index
    %c0_41 = arith.constant 0 : index
    %34 = vector.load %arg2[%c0_38, %c0_39, %c20, %c0_40, %c0_41] : memref<1x1x40x10x4xbf16, #tpu.memory_space<vmem>>, vector<1x1x8x8x4xbf16>
    %35 = vector.shape_cast %34 : vector<1x1x8x8x4xbf16> to vector<8x8x4xbf16>
    %c5 = arith.constant 5 : index
    %c0_42 = arith.constant 0 : index
    %c0_43 = arith.constant 0 : index
    %36 = vector.load %arg3[%c5, %c0_42, %c0_43] : memref<25x8x4xbf16, #tpu.memory_space<vmem>>, vector<1x8x4xbf16>
    %37 = vector.shape_cast %36 : vector<1x8x4xbf16> to vector<8x4xbf16>
    %38 = vector.shape_cast %35 : vector<8x8x4xbf16> to vector<64x4xbf16>
    %cst_44 = arith.constant dense<0.000000e+00> : vector<8x64xf32>
    %39 = tpu.matmul %37, %38, %cst_44 {dimension_numbers = #tpu.dot_dimension_numbers<[1], [1], [0], [0], [0, 0, 1, 0], [], []>} : vector<8x4xbf16>, vector<64x4xbf16>, vector<8x64xf32> -> vector<8x64xf32>
    %40 = arith.addf %33, %39 : vector<8x64xf32>
    %c0_45 = arith.constant 0 : index
    %c0_46 = arith.constant 0 : index
    %c30 = arith.constant 30 : index
    %c0_47 = arith.constant 0 : index
    %c0_48 = arith.constant 0 : index
    %41 = vector.load %arg2[%c0_45, %c0_46, %c30, %c0_47, %c0_48] : memref<1x1x40x10x4xbf16, #tpu.memory_space<vmem>>, vector<1x1x8x8x4xbf16>
    %42 = vector.shape_cast %41 : vector<1x1x8x8x4xbf16> to vector<8x8x4xbf16>
    %c6 = arith.constant 6 : index
    %c0_49 = arith.constant 0 : index
    %c0_50 = arith.constant 0 : index
    %43 = vector.load %arg3[%c6, %c0_49, %c0_50] : memref<25x8x4xbf16, #tpu.memory_space<vmem>>, vector<1x8x4xbf16>
    %44 = vector.shape_cast %43 : vector<1x8x4xbf16> to vector<8x4xbf16>
    %45 = vector.shape_cast %42 : vector<8x8x4xbf16> to vector<64x4xbf16>
    %cst_51 = arith.constant dense<0.000000e+00> : vector<8x64xf32>
    %46 = tpu.matmul %44, %45, %cst_51 {dimension_numbers = #tpu.dot_dimension_numbers<[1], [1], [0], [0], [0, 0, 1, 0], [], []>} : vector<8x4xbf16>, vector<64x4xbf16>, vector<8x64xf32> -> vector<8x64xf32>
    %47 = arith.addf %40, %46 : vector<8x64xf32>
    %c0_52 = arith.constant 0 : index
    %c0_53 = arith.constant 0 : index
    %c20_54 = arith.constant 20 : index
    %c1_55 = arith.constant 1 : index
    %c0_56 = arith.constant 0 : index
    %48 = vector.load %arg2[%c0_52, %c0_53, %c20_54, %c1_55, %c0_56] : memref<1x1x40x10x4xbf16, #tpu.memory_space<vmem>>, vector<1x1x8x8x4xbf16>
    %49 = vector.shape_cast %48 : vector<1x1x8x8x4xbf16> to vector<8x8x4xbf16>
    %c7 = arith.constant 7 : index
    %c0_57 = arith.constant 0 : index
    %c0_58 = arith.constant 0 : index
    %50 = vector.load %arg3[%c7, %c0_57, %c0_58] : memref<25x8x4xbf16, #tpu.memory_space<vmem>>, vector<1x8x4xbf16>
    %51 = vector.shape_cast %50 : vector<1x8x4xbf16> to vector<8x4xbf16>
    %52 = vector.shape_cast %49 : vector<8x8x4xbf16> to vector<64x4xbf16>
    %cst_59 = arith.constant dense<0.000000e+00> : vector<8x64xf32>
    %53 = tpu.matmul %51, %52, %cst_59 {dimension_numbers = #tpu.dot_dimension_numbers<[1], [1], [0], [0], [0, 0, 1, 0], [], []>} : vector<8x4xbf16>, vector<64x4xbf16>, vector<8x64xf32> -> vector<8x64xf32>
    %54 = arith.addf %47, %53 : vector<8x64xf32>
    %c0_60 = arith.constant 0 : index
    %c0_61 = arith.constant 0 : index
    %c30_62 = arith.constant 30 : index
    %c1_63 = arith.constant 1 : index
    %c0_64 = arith.constant 0 : index
    %55 = vector.load %arg2[%c0_60, %c0_61, %c30_62, %c1_63, %c0_64] : memref<1x1x40x10x4xbf16, #tpu.memory_space<vmem>>, vector<1x1x8x8x4xbf16>
    %56 = vector.shape_cast %55 : vector<1x1x8x8x4xbf16> to vector<8x8x4xbf16>
    %c8 = arith.constant 8 : index
    %c0_65 = arith.constant 0 : index
    %c0_66 = arith.constant 0 : index
    %57 = vector.load %arg3[%c8, %c0_65, %c0_66] : memref<25x8x4xbf16, #tpu.memory_space<vmem>>, vector<1x8x4xbf16>
    %58 = vector.shape_cast %57 : vector<1x8x4xbf16> to vector<8x4xbf16>
    %59 = vector.shape_cast %56 : vector<8x8x4xbf16> to vector<64x4xbf16>
    %cst_67 = arith.constant dense<0.000000e+00> : vector<8x64xf32>
    %60 = tpu.matmul %58, %59, %cst_67 {dimension_numbers = #tpu.dot_dimension_numbers<[1], [1], [0], [0], [0, 0, 1, 0], [], []>} : vector<8x4xbf16>, vector<64x4xbf16>, vector<8x64xf32> -> vector<8x64xf32>
    %61 = arith.addf %54, %60 : vector<8x64xf32>
    %c0_68 = arith.constant 0 : index
    %c0_69 = arith.constant 0 : index
    %c20_70 = arith.constant 20 : index
    %c2_71 = arith.constant 2 : index
    %c0_72 = arith.constant 0 : index
    %62 = vector.load %arg2[%c0_68, %c0_69, %c20_70, %c2_71, %c0_72] : memref<1x1x40x10x4xbf16, #tpu.memory_space<vmem>>, vector<1x1x8x8x4xbf16>
    %63 = vector.shape_cast %62 : vector<1x1x8x8x4xbf16> to vector<8x8x4xbf16>
    %c9 = arith.constant 9 : index
    %c0_73 = arith.constant 0 : index
    %c0_74 = arith.constant 0 : index
    %64 = vector.load %arg3[%c9, %c0_73, %c0_74] : memref<25x8x4xbf16, #tpu.memory_space<vmem>>, vector<1x8x4xbf16>
    %65 = vector.shape_cast %64 : vector<1x8x4xbf16> to vector<8x4xbf16>
    %66 = vector.shape_cast %63 : vector<8x8x4xbf16> to vector<64x4xbf16>
    %cst_75 = arith.constant dense<0.000000e+00> : vector<8x64xf32>
    %67 = tpu.matmul %65, %66, %cst_75 {dimension_numbers = #tpu.dot_dimension_numbers<[1], [1], [0], [0], [0, 0, 1, 0], [], []>} : vector<8x4xbf16>, vector<64x4xbf16>, vector<8x64xf32> -> vector<8x64xf32>
    %68 = arith.addf %61, %67 : vector<8x64xf32>
    %c0_76 = arith.constant 0 : index
    %c0_77 = arith.constant 0 : index
    %c1_78 = arith.constant 1 : index
    %c0_79 = arith.constant 0 : index
    %c0_80 = arith.constant 0 : index
    %69 = vector.load %arg2[%c0_76, %c0_77, %c1_78, %c0_79, %c0_80] : memref<1x1x40x10x4xbf16, #tpu.memory_space<vmem>>, vector<1x1x8x8x4xbf16>
    %70 = vector.shape_cast %69 : vector<1x1x8x8x4xbf16> to vector<8x8x4xbf16>
    %c10_81 = arith.constant 10 : index
    %c0_82 = arith.constant 0 : index
    %c0_83 = arith.constant 0 : index
    %71 = vector.load %arg3[%c10_81, %c0_82, %c0_83] : memref<25x8x4xbf16, #tpu.memory_space<vmem>>, vector<1x8x4xbf16>
    %72 = vector.shape_cast %71 : vector<1x8x4xbf16> to vector<8x4xbf16>
    %73 = vector.shape_cast %70 : vector<8x8x4xbf16> to vector<64x4xbf16>
    %cst_84 = arith.constant dense<0.000000e+00> : vector<8x64xf32>
    %74 = tpu.matmul %72, %73, %cst_84 {dimension_numbers = #tpu.dot_dimension_numbers<[1], [1], [0], [0], [0, 0, 1, 0], [], []>} : vector<8x4xbf16>, vector<64x4xbf16>, vector<8x64xf32> -> vector<8x64xf32>
    %75 = arith.addf %68, %74 : vector<8x64xf32>
    %c0_85 = arith.constant 0 : index
    %c0_86 = arith.constant 0 : index
    %c11 = arith.constant 11 : index
    %c0_87 = arith.constant 0 : index
    %c0_88 = arith.constant 0 : index
    %76 = vector.load %arg2[%c0_85, %c0_86, %c11, %c0_87, %c0_88] : memref<1x1x40x10x4xbf16, #tpu.memory_space<vmem>>, vector<1x1x8x8x4xbf16>
    %77 = vector.shape_cast %76 : vector<1x1x8x8x4xbf16> to vector<8x8x4xbf16>
    %c11_89 = arith.constant 11 : index
    %c0_90 = arith.constant 0 : index
    %c0_91 = arith.constant 0 : index
    %78 = vector.load %arg3[%c11_89, %c0_90, %c0_91] : memref<25x8x4xbf16, #tpu.memory_space<vmem>>, vector<1x8x4xbf16>
    %79 = vector.shape_cast %78 : vector<1x8x4xbf16> to vector<8x4xbf16>
    %80 = vector.shape_cast %77 : vector<8x8x4xbf16> to vector<64x4xbf16>
    %cst_92 = arith.constant dense<0.000000e+00> : vector<8x64xf32>
    %81 = tpu.matmul %79, %80, %cst_92 {dimension_numbers = #tpu.dot_dimension_numbers<[1], [1], [0], [0], [0, 0, 1, 0], [], []>} : vector<8x4xbf16>, vector<64x4xbf16>, vector<8x64xf32> -> vector<8x64xf32>
    %82 = arith.addf %75, %81 : vector<8x64xf32>
    %c0_93 = arith.constant 0 : index
    %c0_94 = arith.constant 0 : index
    %c1_95 = arith.constant 1 : index
    %c1_96 = arith.constant 1 : index
    %c0_97 = arith.constant 0 : index
    %83 = vector.load %arg2[%c0_93, %c0_94, %c1_95, %c1_96, %c0_97] : memref<1x1x40x10x4xbf16, #tpu.memory_space<vmem>>, vector<1x1x8x8x4xbf16>
    %84 = vector.shape_cast %83 : vector<1x1x8x8x4xbf16> to vector<8x8x4xbf16>
    %c12 = arith.constant 12 : index
    %c0_98 = arith.constant 0 : index
    %c0_99 = arith.constant 0 : index
    %85 = vector.load %arg3[%c12, %c0_98, %c0_99] : memref<25x8x4xbf16, #tpu.memory_space<vmem>>, vector<1x8x4xbf16>
    %86 = vector.shape_cast %85 : vector<1x8x4xbf16> to vector<8x4xbf16>
    %87 = vector.shape_cast %84 : vector<8x8x4xbf16> to vector<64x4xbf16>
    %cst_100 = arith.constant dense<0.000000e+00> : vector<8x64xf32>
    %88 = tpu.matmul %86, %87, %cst_100 {dimension_numbers = #tpu.dot_dimension_numbers<[1], [1], [0], [0], [0, 0, 1, 0], [], []>} : vector<8x4xbf16>, vector<64x4xbf16>, vector<8x64xf32> -> vector<8x64xf32>
    %89 = arith.addf %82, %88 : vector<8x64xf32>
    %c0_101 = arith.constant 0 : index
    %c0_102 = arith.constant 0 : index
    %c11_103 = arith.constant 11 : index
    %c1_104 = arith.constant 1 : index
    %c0_105 = arith.constant 0 : index
    %90 = vector.load %arg2[%c0_101, %c0_102, %c11_103, %c1_104, %c0_105] : memref<1x1x40x10x4xbf16, #tpu.memory_space<vmem>>, vector<1x1x8x8x4xbf16>
    %91 = vector.shape_cast %90 : vector<1x1x8x8x4xbf16> to vector<8x8x4xbf16>
    %c13 = arith.constant 13 : index
    %c0_106 = arith.constant 0 : index
    %c0_107 = arith.constant 0 : index
    %92 = vector.load %arg3[%c13, %c0_106, %c0_107] : memref<25x8x4xbf16, #tpu.memory_space<vmem>>, vector<1x8x4xbf16>
    %93 = vector.shape_cast %92 : vector<1x8x4xbf16> to vector<8x4xbf16>
    %94 = vector.shape_cast %91 : vector<8x8x4xbf16> to vector<64x4xbf16>
    %cst_108 = arith.constant dense<0.000000e+00> : vector<8x64xf32>
    %95 = tpu.matmul %93, %94, %cst_108 {dimension_numbers = #tpu.dot_dimension_numbers<[1], [1], [0], [0], [0, 0, 1, 0], [], []>} : vector<8x4xbf16>, vector<64x4xbf16>, vector<8x64xf32> -> vector<8x64xf32>
    %96 = arith.addf %89, %95 : vector<8x64xf32>
    %c0_109 = arith.constant 0 : index
    %c0_110 = arith.constant 0 : index
    %c1_111 = arith.constant 1 : index
    %c2_112 = arith.constant 2 : index
    %c0_113 = arith.constant 0 : index
    %97 = vector.load %arg2[%c0_109, %c0_110, %c1_111, %c2_112, %c0_113] : memref<1x1x40x10x4xbf16, #tpu.memory_space<vmem>>, vector<1x1x8x8x4xbf16>
    %98 = vector.shape_cast %97 : vector<1x1x8x8x4xbf16> to vector<8x8x4xbf16>
    %c14 = arith.constant 14 : index
    %c0_114 = arith.constant 0 : index
    %c0_115 = arith.constant 0 : index
    %99 = vector.load %arg3[%c14, %c0_114, %c0_115] : memref<25x8x4xbf16, #tpu.memory_space<vmem>>, vector<1x8x4xbf16>
    %100 = vector.shape_cast %99 : vector<1x8x4xbf16> to vector<8x4xbf16>
    %101 = vector.shape_cast %98 : vector<8x8x4xbf16> to vector<64x4xbf16>
    %cst_116 = arith.constant dense<0.000000e+00> : vector<8x64xf32>
    %102 = tpu.matmul %100, %101, %cst_116 {dimension_numbers = #tpu.dot_dimension_numbers<[1], [1], [0], [0], [0, 0, 1, 0], [], []>} : vector<8x4xbf16>, vector<64x4xbf16>, vector<8x64xf32> -> vector<8x64xf32>
    %103 = arith.addf %96, %102 : vector<8x64xf32>
    %c0_117 = arith.constant 0 : index
    %c0_118 = arith.constant 0 : index
    %c21 = arith.constant 21 : index
    %c0_119 = arith.constant 0 : index
    %c0_120 = arith.constant 0 : index
    %104 = vector.load %arg2[%c0_117, %c0_118, %c21, %c0_119, %c0_120] : memref<1x1x40x10x4xbf16, #tpu.memory_space<vmem>>, vector<1x1x8x8x4xbf16>
    %105 = vector.shape_cast %104 : vector<1x1x8x8x4xbf16> to vector<8x8x4xbf16>
    %c15 = arith.constant 15 : index
    %c0_121 = arith.constant 0 : index
    %c0_122 = arith.constant 0 : index
    %106 = vector.load %arg3[%c15, %c0_121, %c0_122] : memref<25x8x4xbf16, #tpu.memory_space<vmem>>, vector<1x8x4xbf16>
    %107 = vector.shape_cast %106 : vector<1x8x4xbf16> to vector<8x4xbf16>
    %108 = vector.shape_cast %105 : vector<8x8x4xbf16> to vector<64x4xbf16>
    %cst_123 = arith.constant dense<0.000000e+00> : vector<8x64xf32>
    %109 = tpu.matmul %107, %108, %cst_123 {dimension_numbers = #tpu.dot_dimension_numbers<[1], [1], [0], [0], [0, 0, 1, 0], [], []>} : vector<8x4xbf16>, vector<64x4xbf16>, vector<8x64xf32> -> vector<8x64xf32>
    %110 = arith.addf %103, %109 : vector<8x64xf32>
    %c0_124 = arith.constant 0 : index
    %c0_125 = arith.constant 0 : index
    %c31 = arith.constant 31 : index
    %c0_126 = arith.constant 0 : index
    %c0_127 = arith.constant 0 : index
    %111 = vector.load %arg2[%c0_124, %c0_125, %c31, %c0_126, %c0_127] : memref<1x1x40x10x4xbf16, #tpu.memory_space<vmem>>, vector<1x1x8x8x4xbf16>
    %112 = vector.shape_cast %111 : vector<1x1x8x8x4xbf16> to vector<8x8x4xbf16>
    %c16 = arith.constant 16 : index
    %c0_128 = arith.constant 0 : index
    %c0_129 = arith.constant 0 : index
    %113 = vector.load %arg3[%c16, %c0_128, %c0_129] : memref<25x8x4xbf16, #tpu.memory_space<vmem>>, vector<1x8x4xbf16>
    %114 = vector.shape_cast %113 : vector<1x8x4xbf16> to vector<8x4xbf16>
    %115 = vector.shape_cast %112 : vector<8x8x4xbf16> to vector<64x4xbf16>
    %cst_130 = arith.constant dense<0.000000e+00> : vector<8x64xf32>
    %116 = tpu.matmul %114, %115, %cst_130 {dimension_numbers = #tpu.dot_dimension_numbers<[1], [1], [0], [0], [0, 0, 1, 0], [], []>} : vector<8x4xbf16>, vector<64x4xbf16>, vector<8x64xf32> -> vector<8x64xf32>
    %117 = arith.addf %110, %116 : vector<8x64xf32>
    %c0_131 = arith.constant 0 : index
    %c0_132 = arith.constant 0 : index
    %c21_133 = arith.constant 21 : index
    %c1_134 = arith.constant 1 : index
    %c0_135 = arith.constant 0 : index
    %118 = vector.load %arg2[%c0_131, %c0_132, %c21_133, %c1_134, %c0_135] : memref<1x1x40x10x4xbf16, #tpu.memory_space<vmem>>, vector<1x1x8x8x4xbf16>
    %119 = vector.shape_cast %118 : vector<1x1x8x8x4xbf16> to vector<8x8x4xbf16>
    %c17 = arith.constant 17 : index
    %c0_136 = arith.constant 0 : index
    %c0_137 = arith.constant 0 : index
    %120 = vector.load %arg3[%c17, %c0_136, %c0_137] : memref<25x8x4xbf16, #tpu.memory_space<vmem>>, vector<1x8x4xbf16>
    %121 = vector.shape_cast %120 : vector<1x8x4xbf16> to vector<8x4xbf16>
    %122 = vector.shape_cast %119 : vector<8x8x4xbf16> to vector<64x4xbf16>
    %cst_138 = arith.constant dense<0.000000e+00> : vector<8x64xf32>
    %123 = tpu.matmul %121, %122, %cst_138 {dimension_numbers = #tpu.dot_dimension_numbers<[1], [1], [0], [0], [0, 0, 1, 0], [], []>} : vector<8x4xbf16>, vector<64x4xbf16>, vector<8x64xf32> -> vector<8x64xf32>
    %124 = arith.addf %117, %123 : vector<8x64xf32>
    %c0_139 = arith.constant 0 : index
    %c0_140 = arith.constant 0 : index
    %c31_141 = arith.constant 31 : index
    %c1_142 = arith.constant 1 : index
    %c0_143 = arith.constant 0 : index
    %125 = vector.load %arg2[%c0_139, %c0_140, %c31_141, %c1_142, %c0_143] : memref<1x1x40x10x4xbf16, #tpu.memory_space<vmem>>, vector<1x1x8x8x4xbf16>
    %126 = vector.shape_cast %125 : vector<1x1x8x8x4xbf16> to vector<8x8x4xbf16>
    %c18 = arith.constant 18 : index
    %c0_144 = arith.constant 0 : index
    %c0_145 = arith.constant 0 : index
    %127 = vector.load %arg3[%c18, %c0_144, %c0_145] : memref<25x8x4xbf16, #tpu.memory_space<vmem>>, vector<1x8x4xbf16>
    %128 = vector.shape_cast %127 : vector<1x8x4xbf16> to vector<8x4xbf16>
    %129 = vector.shape_cast %126 : vector<8x8x4xbf16> to vector<64x4xbf16>
    %cst_146 = arith.constant dense<0.000000e+00> : vector<8x64xf32>
    %130 = tpu.matmul %128, %129, %cst_146 {dimension_numbers = #tpu.dot_dimension_numbers<[1], [1], [0], [0], [0, 0, 1, 0], [], []>} : vector<8x4xbf16>, vector<64x4xbf16>, vector<8x64xf32> -> vector<8x64xf32>
    %131 = arith.addf %124, %130 : vector<8x64xf32>
    %c0_147 = arith.constant 0 : index
    %c0_148 = arith.constant 0 : index
    %c21_149 = arith.constant 21 : index
    %c2_150 = arith.constant 2 : index
    %c0_151 = arith.constant 0 : index
    %132 = vector.load %arg2[%c0_147, %c0_148, %c21_149, %c2_150, %c0_151] : memref<1x1x40x10x4xbf16, #tpu.memory_space<vmem>>, vector<1x1x8x8x4xbf16>
    %133 = vector.shape_cast %132 : vector<1x1x8x8x4xbf16> to vector<8x8x4xbf16>
    %c19 = arith.constant 19 : index
    %c0_152 = arith.constant 0 : index
    %c0_153 = arith.constant 0 : index
    %134 = vector.load %arg3[%c19, %c0_152, %c0_153] : memref<25x8x4xbf16, #tpu.memory_space<vmem>>, vector<1x8x4xbf16>
    %135 = vector.shape_cast %134 : vector<1x8x4xbf16> to vector<8x4xbf16>
    %136 = vector.shape_cast %133 : vector<8x8x4xbf16> to vector<64x4xbf16>
    %cst_154 = arith.constant dense<0.000000e+00> : vector<8x64xf32>
    %137 = tpu.matmul %135, %136, %cst_154 {dimension_numbers = #tpu.dot_dimension_numbers<[1], [1], [0], [0], [0, 0, 1, 0], [], []>} : vector<8x4xbf16>, vector<64x4xbf16>, vector<8x64xf32> -> vector<8x64xf32>
    %138 = arith.addf %131, %137 : vector<8x64xf32>
    %c0_155 = arith.constant 0 : index
    %c0_156 = arith.constant 0 : index
    %c2_157 = arith.constant 2 : index
    %c0_158 = arith.constant 0 : index
    %c0_159 = arith.constant 0 : index
    %139 = vector.load %arg2[%c0_155, %c0_156, %c2_157, %c0_158, %c0_159] : memref<1x1x40x10x4xbf16, #tpu.memory_space<vmem>>, vector<1x1x8x8x4xbf16>
    %140 = vector.shape_cast %139 : vector<1x1x8x8x4xbf16> to vector<8x8x4xbf16>
    %c20_160 = arith.constant 20 : index
    %c0_161 = arith.constant 0 : index
    %c0_162 = arith.constant 0 : index
    %141 = vector.load %arg3[%c20_160, %c0_161, %c0_162] : memref<25x8x4xbf16, #tpu.memory_space<vmem>>, vector<1x8x4xbf16>
    %142 = vector.shape_cast %141 : vector<1x8x4xbf16> to vector<8x4xbf16>
    %143 = vector.shape_cast %140 : vector<8x8x4xbf16> to vector<64x4xbf16>
    %cst_163 = arith.constant dense<0.000000e+00> : vector<8x64xf32>
    %144 = tpu.matmul %142, %143, %cst_163 {dimension_numbers = #tpu.dot_dimension_numbers<[1], [1], [0], [0], [0, 0, 1, 0], [], []>} : vector<8x4xbf16>, vector<64x4xbf16>, vector<8x64xf32> -> vector<8x64xf32>
    %145 = arith.addf %138, %144 : vector<8x64xf32>
    %c0_164 = arith.constant 0 : index
    %c0_165 = arith.constant 0 : index
    %c12_166 = arith.constant 12 : index
    %c0_167 = arith.constant 0 : index
    %c0_168 = arith.constant 0 : index
    %146 = vector.load %arg2[%c0_164, %c0_165, %c12_166, %c0_167, %c0_168] : memref<1x1x40x10x4xbf16, #tpu.memory_space<vmem>>, vector<1x1x8x8x4xbf16>
    %147 = vector.shape_cast %146 : vector<1x1x8x8x4xbf16> to vector<8x8x4xbf16>
    %c21_169 = arith.constant 21 : index
    %c0_170 = arith.constant 0 : index
    %c0_171 = arith.constant 0 : index
    %148 = vector.load %arg3[%c21_169, %c0_170, %c0_171] : memref<25x8x4xbf16, #tpu.memory_space<vmem>>, vector<1x8x4xbf16>
    %149 = vector.shape_cast %148 : vector<1x8x4xbf16> to vector<8x4xbf16>
    %150 = vector.shape_cast %147 : vector<8x8x4xbf16> to vector<64x4xbf16>
    %cst_172 = arith.constant dense<0.000000e+00> : vector<8x64xf32>
    %151 = tpu.matmul %149, %150, %cst_172 {dimension_numbers = #tpu.dot_dimension_numbers<[1], [1], [0], [0], [0, 0, 1, 0], [], []>} : vector<8x4xbf16>, vector<64x4xbf16>, vector<8x64xf32> -> vector<8x64xf32>
    %152 = arith.addf %145, %151 : vector<8x64xf32>
    %c0_173 = arith.constant 0 : index
    %c0_174 = arith.constant 0 : index
    %c2_175 = arith.constant 2 : index
    %c1_176 = arith.constant 1 : index
    %c0_177 = arith.constant 0 : index
    %153 = vector.load %arg2[%c0_173, %c0_174, %c2_175, %c1_176, %c0_177] : memref<1x1x40x10x4xbf16, #tpu.memory_space<vmem>>, vector<1x1x8x8x4xbf16>
    %154 = vector.shape_cast %153 : vector<1x1x8x8x4xbf16> to vector<8x8x4xbf16>
    %c22 = arith.constant 22 : index
    %c0_178 = arith.constant 0 : index
    %c0_179 = arith.constant 0 : index
    %155 = vector.load %arg3[%c22, %c0_178, %c0_179] : memref<25x8x4xbf16, #tpu.memory_space<vmem>>, vector<1x8x4xbf16>
    %156 = vector.shape_cast %155 : vector<1x8x4xbf16> to vector<8x4xbf16>
    %157 = vector.shape_cast %154 : vector<8x8x4xbf16> to vector<64x4xbf16>
    %cst_180 = arith.constant dense<0.000000e+00> : vector<8x64xf32>
    %158 = tpu.matmul %156, %157, %cst_180 {dimension_numbers = #tpu.dot_dimension_numbers<[1], [1], [0], [0], [0, 0, 1, 0], [], []>} : vector<8x4xbf16>, vector<64x4xbf16>, vector<8x64xf32> -> vector<8x64xf32>
    %159 = arith.addf %152, %158 : vector<8x64xf32>
    %c0_181 = arith.constant 0 : index
    %c0_182 = arith.constant 0 : index
    %c12_183 = arith.constant 12 : index
    %c1_184 = arith.constant 1 : index
    %c0_185 = arith.constant 0 : index
    %160 = vector.load %arg2[%c0_181, %c0_182, %c12_183, %c1_184, %c0_185] : memref<1x1x40x10x4xbf16, #tpu.memory_space<vmem>>, vector<1x1x8x8x4xbf16>
    %161 = vector.shape_cast %160 : vector<1x1x8x8x4xbf16> to vector<8x8x4xbf16>
    %c23 = arith.constant 23 : index
    %c0_186 = arith.constant 0 : index
    %c0_187 = arith.constant 0 : index
    %162 = vector.load %arg3[%c23, %c0_186, %c0_187] : memref<25x8x4xbf16, #tpu.memory_space<vmem>>, vector<1x8x4xbf16>
    %163 = vector.shape_cast %162 : vector<1x8x4xbf16> to vector<8x4xbf16>
    %164 = vector.shape_cast %161 : vector<8x8x4xbf16> to vector<64x4xbf16>
    %cst_188 = arith.constant dense<0.000000e+00> : vector<8x64xf32>
    %165 = tpu.matmul %163, %164, %cst_188 {dimension_numbers = #tpu.dot_dimension_numbers<[1], [1], [0], [0], [0, 0, 1, 0], [], []>} : vector<8x4xbf16>, vector<64x4xbf16>, vector<8x64xf32> -> vector<8x64xf32>
    %166 = arith.addf %159, %165 : vector<8x64xf32>
    %c0_189 = arith.constant 0 : index
    %c0_190 = arith.constant 0 : index
    %c2_191 = arith.constant 2 : index
    %c2_192 = arith.constant 2 : index
    %c0_193 = arith.constant 0 : index
    %167 = vector.load %arg2[%c0_189, %c0_190, %c2_191, %c2_192, %c0_193] : memref<1x1x40x10x4xbf16, #tpu.memory_space<vmem>>, vector<1x1x8x8x4xbf16>
    %168 = vector.shape_cast %167 : vector<1x1x8x8x4xbf16> to vector<8x8x4xbf16>
    %c24 = arith.constant 24 : index
    %c0_194 = arith.constant 0 : index
    %c0_195 = arith.constant 0 : index
    %169 = vector.load %arg3[%c24, %c0_194, %c0_195] : memref<25x8x4xbf16, #tpu.memory_space<vmem>>, vector<1x8x4xbf16>
    %170 = vector.shape_cast %169 : vector<1x8x4xbf16> to vector<8x4xbf16>
    %171 = vector.shape_cast %168 : vector<8x8x4xbf16> to vector<64x4xbf16>
    %cst_196 = arith.constant dense<0.000000e+00> : vector<8x64xf32>
    %172 = tpu.matmul %170, %171, %cst_196 {dimension_numbers = #tpu.dot_dimension_numbers<[1], [1], [0], [0], [0, 0, 1, 0], [], []>} : vector<8x4xbf16>, vector<64x4xbf16>, vector<8x64xf32> -> vector<8x64xf32>
    %173 = arith.addf %166, %172 : vector<8x64xf32>
    %c0_197 = arith.constant 0 : index
    %c0_198 = arith.constant 0 : index
    %174 = vector.load %arg4[%c0_197, %c0_198] : memref<8x2xf32, #tpu.memory_space<vmem>>, vector<8x1xf32>
    %c0_199 = arith.constant 0 : index
    %c1_200 = arith.constant 1 : index
    %175 = vector.load %arg4[%c0_199, %c1_200] : memref<8x2xf32, #tpu.memory_space<vmem>>, vector<8x1xf32>
    %176 = vector.broadcast %174 : vector<8x1xf32> to vector<8x64xf32>
    %177 = arith.mulf %173, %176 : vector<8x64xf32>
    %178 = vector.broadcast %175 : vector<8x1xf32> to vector<8x64xf32>
    %179 = arith.addf %177, %178 : vector<8x64xf32>
    %cst_201 = arith.constant 0.000000e+00 : f32
    %180 = vector.broadcast %cst_201 : f32 to vector<8x64xf32>
    %181 = arith.maximumf %179, %180 : vector<8x64xf32>
    %c0_202 = arith.constant 0 : index
    %c0_203 = arith.constant 0 : index
    %c0_204 = arith.constant 0 : index
    %182 = vector.load %arg5[%c0_202, %c0_203, %c0_204] : memref<1x8x64xf32, #tpu.memory_space<vmem>>, vector<1x8x64xf32>
    %183 = vector.shape_cast %182 : vector<1x8x64xf32> to vector<8x64xf32>
    %184 = vector.shape_cast %181 : vector<8x64xf32> to vector<1x8x64xf32>
    tpu.vector_store %arg5[%c0_202, %c0_203, %c0_204], %184 {strides = array<i32>} : memref<1x8x64xf32, #tpu.memory_space<vmem>>, vector<1x8x64xf32>,
    return
  }
  func.func @transform_0(%arg0: i32, %arg1: i32) -> (i32, i32, i32, i32, i32) {
    %c0_i32 = arith.constant 0 : i32
    %c0_i32_0 = arith.constant 0 : i32
    %c0_i32_1 = arith.constant 0 : i32
    %c0_i32_2 = arith.constant 0 : i32
    return %arg0, %arg1, %c0_i32, %c0_i32_0, %c0_i32_1 : i32, i32, i32, i32, i32
  }
  func.func @transform_1(%arg0: i32, %arg1: i32) -> (i32, i32, i32) {
    %c0_i32 = arith.constant 0 : i32
    %c0_i32_0 = arith.constant 0 : i32
    %c0_i32_1 = arith.constant 0 : i32
    %c0_i32_2 = arith.constant 0 : i32
    return %c0_i32, %c0_i32_0, %c0_i32_1 : i32, i32, i32
  }
  func.func @transform_2(%arg0: i32, %arg1: i32) -> (i32, i32) {
    %c0_i32 = arith.constant 0 : i32
    %c0_i32_0 = arith.constant 0 : i32
    %c0_i32_1 = arith.constant 0 : i32
    return %c0_i32, %c0_i32_0 : i32, i32
  }
  func.func @transform_3(%arg0: i32, %arg1: i32) -> (i32, i32, i32) {
    %c0_i32 = arith.constant 0 : i32
    %c0_i32_0 = arith.constant 0 : i32
    return %arg0, %c0_i32, %arg1 : i32, i32, i32
  }
}

</mosaic_0001>

<bundles_post_ra>
// kernel: basic_conv_forward.3
= control target key start
LH: loop header
LB: loop body
LE: loop exit
PB: predicated region body
PF: predicated region fallthrough
CT: control target
= control target key end

     0   :  { %s4865_s12 = smov 0   ;;  %s4867_s13 = smov 0   ;;  %s6137_s0 = inlined_call_operand.vmem [shape: bf16[2,1,40,10,4], index: 0, kind: input, shape index: {}]   ;;  %s6138_s1 = inlined_call_operand.vmem [shape: bf16[25,8,4], index: 1, kind: input, shape index: {}]   ;;  %s6139_s2 = inlined_call_operand.vmem [shape: f32[8,2], index: 2, kind: input, shape index: {}]   ;;  %s6140_s3 = inlined_call_operand.vmem [shape: f32[2,8,64], index: 3, kind: output, shape index: {}]  }
   0x1   :  { %s4869_s14 = smov 0  }
   0x2 LB: > { %s25_s15 = sadd.s32 1, %s4835_s13  ;;  %p3786_p0 = scmp.ge.s32.totalorder %s4839_s14, 1  ;;  %s4839_s14 = sphi %s4869_s14, %s13_s14   ;;  %s4835_s13 = sphi %s4867_s13, %s6151_s13   ;;  %s4831_s12 = sphi %s4865_s12, %s6150_s12  }
   0x3   : > { %p27_p1 = scmp.ge.s32.totalorder %s25_s15, 2  ;;  %p157_p2 = scmp.lt.s32.totalorder %s4839_s14, 3 }
   0x5   : > { %s6153_s15 = smov (%p27_p1, %s25_s15), 0  ;;  %p158_p3 = pnand %p3786_p0, %p157_p2 }
   0x6   : > { %p187_p4 = scmp.lt.s32.totalorder (!%p158_p3), %s4831_s12, 1  ;;  %v4841_v0 = vmov (!%p158_p3), 0.0   ;;  %vm4842_vm0 = vmmov (!%p158_p3), 0   ;;  %vm244_vm1 = vcmask (!%p158_p3), 31744   ;;  %vm393_vm2 = vsmask.f32 (!%p158_p3), 3328 }
   0x7   : > { %161 = sbr.rel (%p158_p3) target bundleno = 668 (0x29c), region = 32  ;;  %4353 = vmatprep.subr.bf16.mxu1 (!%p158_p3), %v4841_v0  ;;  %4497 = vmatprep.subr.bf16.mxu0 (!%p158_p3), %v4841_v0  ;;  %vm394_vm3 = vsmask.f32 (!%p158_p3), 7440  ;;  %vm800_vm5 = vcmask (!%p158_p3), 1042432   ;;  %vm801_vm6 = vcmask (!%p158_p3), 1046532   ;;  %vm3700_vm8 = vcmask (!%p158_p3), 523264  }
   0x8   : > { %4361 = vmatprep.mubr.msk.bf16.mxu1 (!%p158_p3), %vm4842_vm0, %v4841_v0  ;;  %4505 = vmatprep.mubr.msk.bf16.mxu0 (!%p158_p3), %vm4842_vm0, %v4841_v0  ;;  %vm4921_vm4 = vmor (!%p158_p3), %vm393_vm2, %vm394_vm3  ;;  %v4198_v28 = vld [vmem:[%s6138_s1 + $0x5c] sm:$0xf] (!%p158_p3) }
   0x9   : > { %vm5062_vm7 = vmor (!%p158_p3), %vm800_vm5, %vm801_vm6 }
   0xe   : > { %s6155_s12 = smov (!%p187_p4, %s4831_s12), 1 }
   0xf   : > { %s4746_s16 = smul.u32 320, %s6155_s12  ;;  %s3788_s27 = sshll.u32 %s6155_s12, 3 }
  0x10   : > { %s202_s30 = scalar_lea.vmem %s6140_s3, %s3788_s27 }
  0x11   : > { %s4895_s19 = scalar_lea.vmem %s6137_s0, %s4746_s16 }
  0x12   : > { %v4777_v1 = vld [vmem:[%s4895_s19 + $0x50] ss:$8 sps:$4 sm:$0xff]   ;;  %v4778_v2 = vld [vmem:[%s4895_s19 + $0x60] ss:$8 sps:$4 sm:$0xff]   ;;  %v4902_v5 = vld [vmem:[%s4895_s19 + $0xc] sm:$0x1] }
  0x13   : > { %v249_v3 = vsel %vm244_vm1, %v4777_v1, 0  ;;  %v3972_v4 = vld [vmem:[%s4895_s19 + $0x8] sm:$0xf]  ;;  %v3974_v6 = vld [vmem:[%s4895_s19 + $0x10] sm:$0xf]  ;;  %v1801_v10 = vshll.u32 %v4902_v5, 16 }
  0x14   : > { %4354 = vmatpush3.bf16.xpose.msra.mxu1 %v249_v3  ;;  %v4906_v7 = vld [vmem:[%s4895_s19 + $0x14] sm:$0x1]  ;;  %v1792_v8 = vshrl.u32 %v3972_v4, 16  ;;  %v1795_v9 = vshll.u32 %v3972_v4, 16  ;;  %v1806_v11 = vshrl.u32 %v3974_v6, 16  ;;  %v1809_v12 = vshll.u32 %v3974_v6, 16 }
  0x15   : > { %4355 = vmatprep.subr.bf16.mxu1 %v4841_v0  ;;  %v1815_v14 = vshll.u32 %v4906_v7, 16  ;;  %v252_v18 = vsel %vm244_vm1, %v4778_v2, 0  ;;  %v1803_v19 = vrot.slane %v1801_v10, 5  ;;  %v3976_v20 = vld [vmem:[%s4895_s19 + $0x18] sm:$0xf] }
  0x16   : > { %v1794_v13 = vrot.slane %v1792_v8, 4  ;;  %v1797_v15 = vrot.slane %v1795_v9, 5  ;;  %v1808_v16 = vrot.slane %v1806_v11, 4  ;;  %v1811_v17 = vrot.slane %v1809_v12, 5  ;;  %v4914_v21 = vld [vmem:[%s4895_s19 + $0x1c] sm:$0x1] }
  0x17   : > { %v1817_v24 = vrot.slane %v1815_v14, 5  ;;  %v3978_v25 = vld [vmem:[%s4895_s19 + $0x20] sm:$0xf]  ;;  %v4918_v26 = vld [vmem:[%s4895_s19 + $0x24] sm:$0x1]  ;;  %v1820_v27 = vshrl.u32 %v3976_v20, 16 }
  0x18   : > { %v1798_v22 = vor.u32 %v1797_v15, %v1794_v13  ;;  %v1812_v23 = vor.u32 %v1811_v17, %v1808_v16  ;;  %v1823_v29 = vshll.u32 %v3976_v20, 16  ;;  %v1829_v30 = vshll.u32 %v4914_v21, 16  ;;  %v4779_v37 = vld [vmem:[%s4895_s19 + $0x70] ss:$8 sps:$4 sm:$0xff]   ;;  %v3980_v44 = vld [vmem:[%s4895_s19 + $0x28] sm:$0xf] }
  0x19   : > { %v1834_v31 = vshrl.u32 %v3978_v25, 16  ;;  %v1837_v32 = vshll.u32 %v3978_v25, 16  ;;  %v1822_v35 = vrot.slane %v1820_v27, 4  ;;  %v1843_v36 = vshll.u32 %v4918_v26, 16  ;;  %v4935_v45 = vld [vmem:[%s4895_s19 + $0x2c] sm:$0x1] }
  0x1a   : > { %v1799_v33 = vrot.slane %v1798_v22, 4  ;;  %v1813_v34 = vrot.slane %v1812_v23, 4  ;;  %v1825_v38 = vrot.slane %v1823_v29, 5  ;;  %v1831_v43 = vrot.slane %v1829_v30, 5  ;;  %v3982_v50 = vld [vmem:[%s4895_s19 + $0x30] sm:$0xf] }
  0x1b   : > { %v1836_v39 = vrot.slane %v1834_v31, 4  ;;  %v1839_v40 = vrot.slane %v1837_v32, 5  ;;  %v1845_v49 = vrot.slane %v1843_v36, 5  ;;  %v4939_v51 = vld [vmem:[%s4895_s19 + $0x34] sm:$0x1]  ;;  %v1848_v52 = vshrl.u32 %v3980_v44, 16 }
  0x1c   : > { %4356 = vmatpush3.bf16.xpose.msra.mxu1 %v252_v18  ;;  %v1804_v41 = vsel %vm4921_vm4, %v1799_v33, %v1803_v19  ;;  %v1818_v42 = vsel %vm4921_vm4, %v1813_v34, %v1817_v24  ;;  %v1826_v47 = vor.u32 %v1825_v38, %v1822_v35  ;;  %v1851_v53 = vshll.u32 %v3980_v44, 16  ;;  %v4780_v61 = vld [vmem:[%s4895_s19 + $0x80] ss:$8 sps:$4 sm:$0xff]   ;;  %v3984_v8 = vld [vmem:[%s4895_s19 + $0x38] sm:$0xf] }
  0x1d   : > { %4357 = vmatprep.subr.bf16.mxu1 %v4841_v0  ;;  %v3989_v46 = vcombine.low %v1804_v41, %v1818_v42  ;;  %v1840_v48 = vor.u32 %v1839_v40, %v1836_v39  ;;  %v1857_v54 = vshll.u32 %v4935_v45, 16  ;;  %v1862_v55 = vshrl.u32 %v3982_v50, 16  ;;  %v4953_v9 = vld [vmem:[%s4895_s19 + $0x3c] sm:$0x1]  ;;  %v3986_v13 = vld [vmem:[%s4895_s19 + $0x40] sm:$0xf] }
  0x1e   : > { %v1827_v57 = vrot.slane %v1826_v47, 4  ;;  %v1865_v59 = vshll.u32 %v3982_v50, 16  ;;  %v255_v60 = vsel %vm244_vm1, %v4779_v37, 0  ;;  %v1850_v62 = vrot.slane %v1848_v52, 4  ;;  %v4957_v14 = vld [vmem:[%s4895_s19 + $0x44] sm:$0x1] }
  0x1f   : > { %v1919_v56 = vsel %vm244_vm1, %v3989_v46, 0  ;;  %v1841_v58 = vrot.slane %v1840_v48, 4  ;;  %v1853_v63 = vrot.slane %v1851_v53, 5  ;;  %v1864_v1 = vrot.slane %v1862_v55, 4  ;;  %v3994_v35 = vld [vmem:[%s4895_s19 + $0x58] sm:$0xf] }
  0x20   : > { %4498 = vmatpush3.bf16.xpose.msra.mxu0 %v1919_v56  ;;  %v1832_v2 = vsel %vm4921_vm4, %v1827_v57, %v1831_v43  ;;  %v1867_v4 = vrot.slane %v1865_v59, 5  ;;  %v1871_v6 = vshll.u32 %v4939_v51, 16  ;;  %v1859_v12 = vrot.slane %v1857_v54, 5  ;;  %v3995_v40 = vld [vmem:[%s4895_s19 + $0x5c] sm:$0x1] }
  0x21   : > { %4499 = vmatprep.subr.bf16.mxu0 %v4841_v0  ;;  %v1846_v3 = vsel %vm4921_vm4, %v1841_v58, %v1845_v49  ;;  %v1854_v11 = vor.u32 %v1853_v63, %v1850_v62  ;;  %v1876_v15 = vshrl.u32 %v3984_v8, 16  ;;  %v1879_v18 = vshll.u32 %v3984_v8, 16  ;;  %v3996_v41 = vld [vmem:[%s4895_s19 + $0x60] sm:$0xf]  ;;  %v3997_v43 = vld [vmem:[%s4895_s19 + $0x64] sm:$0x1] }
  0x22   : > { %v3990_v10 = vcombine.low %v1832_v2, %v1846_v3  ;;  %v1868_v16 = vor.u32 %v1867_v4, %v1864_v1  ;;  %v1873_v17 = vrot.slane %v1871_v6, 5  ;;  %v1885_v19 = vshll.u32 %v4953_v9, 16  ;;  %v4781_v56 = vld [vmem:[%s4895_s19] ss:$8 sps:$4 sm:$0xff]   ;;  %v3999_v2 = vld [vmem:[%s4895_s19 + $0x6c] sm:$0x1] }
  0x23   : > { %v2197_v20 = vrot.slane %v4902_v5, 5  ;;  %v1855_v22 = vrot.slane %v1854_v11, 4  ;;  %v1878_v23 = vrot.slane %v1876_v15, 4  ;;  %v1890_v24 = vshrl.u32 %v3986_v13, 16  ;;  %v4000_v4 = vld [vmem:[%s4895_s19 + $0x70] sm:$0xf] }
  0x24   : > { %4358 = vmatpush3.bf16.xpose.msra.mxu1 %v255_v60  ;;  %v1922_v25 = vsel %vm244_vm1, %v3990_v10, 0  ;;  %v1869_v27 = vrot.slane %v1868_v16, 4  ;;  %v1881_v29 = vrot.slane %v1879_v18, 5  ;;  %v1893_v30 = vshll.u32 %v3986_v13, 16  ;;  %v3998_v60 = vld [vmem:[%s4895_s19 + $0x68] sm:$0xf] }
  0x25   : > { %4359 = vmatprep.subr.bf16.mxu1 %v4841_v0  ;;  %v258_v31 = vsel %vm244_vm1, %v4780_v61, 0  ;;  %v1860_v32 = vsel %vm4921_vm4, %v1855_v22, %v1859_v12  ;;  %v1892_v33 = vrot.slane %v1890_v24, 4  ;;  %v1899_v34 = vshll.u32 %v4957_v14, 16  ;;  %v4001_v6 = vld [vmem:[%s4895_s19 + $0x74] sm:$0x1] }
  0x26   : > { %v1874_v36 = vsel %vm4921_vm4, %v1869_v27, %v1873_v17  ;;  %v1882_v37 = vor.u32 %v1881_v29, %v1878_v23  ;;  %v1887_v38 = vrot.slane %v1885_v19, 5  ;;  %v1895_v39 = vrot.slane %v1893_v30, 5  ;;  %v3797_v16 = vld [vmem:[%s6138_s1 + $0x4] sm:$0xf]  ;;  %v4002_v29 = vld [vmem:[%s4895_s19 + $0x78] sm:$0xf] }
  0x27   : > { %v3991_v42 = vcombine.low %v1860_v32, %v1874_v36  ;;  %v1990_v44 = vshrl.u32 %v3994_v35, 16  ;;  %v1993_v46 = vshll.u32 %v3994_v35, 16  ;;  %v1901_v49 = vrot.slane %v1899_v34, 5  ;;  %v4782_v34 = vld [vmem:[%s4895_s19 + $0x10] ss:$8 sps:$4 sm:$0xff]  }
  0x28   : > { %4500 = vmatpush3.bf16.xpose.msra.mxu0 %v1922_v25  ;;  %v1883_v47 = vrot.slane %v1882_v37, 4  ;;  %v1896_v48 = vor.u32 %v1895_v39, %v1892_v33  ;;  %v2004_v50 = vshrl.u32 %v3996_v41, 16  ;;  %v1999_v54 = vshll.u32 %v3995_v40, 16  ;;  %v4783_v35 = vld [vmem:[%s4895_s19 + $0x20] ss:$8 sps:$4 sm:$0xff]  }
  0x29   : > { %4501 = vmatprep.subr.bf16.mxu0 %v4841_v0  ;;  %v1992_v52 = vrot.slane %v1990_v44, 4  ;;  %v1995_v53 = vrot.slane %v1993_v46, 5  ;;  %v2007_v55 = vshll.u32 %v3996_v41, 16  ;;  %v1925_v61 = vsel %vm244_vm1, %v3991_v42, 0  ;;  %v4004_v37 = vld [vmem:[%s4895_s19 + $0x80] sm:$0xf] }
  0x2a   : > { %v1888_v57 = vsel %vm4921_vm4, %v1883_v47, %v1887_v38  ;;  %v1897_v58 = vrot.slane %v1896_v48, 4  ;;  %v2006_v59 = vrot.slane %v2004_v50, 4  ;;  %v2013_v1 = vshll.u32 %v3997_v43, 16  ;;  %v4784_v42 = vld [vmem:[%s4895_s19 + $0x30] ss:$8 sps:$4 sm:$0xff]  }
  0x2b   : > { %v1996_v62 = vor.u32 %v1995_v53, %v1992_v52  ;;  %v2009_v63 = vrot.slane %v2007_v55, 5  ;;  %v2018_v8 = vshrl.u32 %v3998_v60, 16  ;;  %v2021_v10 = vshll.u32 %v3998_v60, 16  ;;  %v4003_v43 = vld [vmem:[%s4895_s19 + $0x7c] sm:$0x1] }
  0x2c   : > { %4360 = vmatpush3.bf16.xpose.msra.mxu1 %v258_v31  ;;  %v1902_v3 = vsel %vm4921_vm4, %v1897_v58, %v1901_v49  ;;  %v2001_v13 = vrot.slane %v1999_v54, 5  ;;  %v2027_v19 = vshll.u32 %v3999_v2, 16  ;;  %v2032_v22 = vshrl.u32 %v4000_v4, 16  ;;  %v4005_v48 = vld [vmem:[%s4895_s19 + $0x84] sm:$0x1] }
  0x2d   : > { %4365 = vmatprep.subr.bf16.mxu1 %v4841_v0  ;;  %v3992_v11 = vcombine.low %v1888_v57, %v1902_v3  ;;  %v1997_v12 = vrot.slane %v1996_v62, 4  ;;  %v2010_v15 = vor.u32 %v2009_v63, %v2006_v59  ;;  %v2020_v17 = vrot.slane %v2018_v8, 4  ;;  %v375_v52 = vld [vmem:[%s4895_s19] sm:$0xf]  ;;  %v377_v57 = vld [vmem:[%s4895_s19 + $0x8] sm:$0xf] }
  0x2e   : > { %v2023_v18 = vrot.slane %v2021_v10, 5  ;;  %v324_v23 = vsel %vm244_vm1, %v4781_v56, 0  ;;  %v2015_v25 = vrot.slane %v2013_v1, 5  ;;  %v2035_v27 = vshll.u32 %v4000_v4, 16  ;;  %v5013_v8 = vld [vmem:[%s4895_s19 + $0x4] sm:$0x1] }
  0x2f   : > { %v2011_v24 = vrot.slane %v2010_v15, 4  ;;  %v2201_v30 = vrot.slane %v4906_v7, 5  ;;  %v2034_v32 = vrot.slane %v2032_v22, 4  ;;  %v2041_v33 = vshll.u32 %v4001_v6, 16 }
  0x30   : > { %4502 = vmatpush3.bf16.xpose.msra.mxu0 %v1925_v61  ;;  %v2024_v31 = vor.u32 %v2023_v18, %v2020_v17  ;;  %v2037_v36 = vrot.slane %v2035_v27, 5  ;;  %v2205_v38 = vrot.slane %v4914_v21, 5  ;;  %v1928_v39 = vsel %vm244_vm1, %v3992_v11, 0  ;;  %v3988_v17 = vld [vmem:[%s6138_s1 + $0x30] sm:$0xf] }
  0x31   : > { %4503 = vmatprep.subr.bf16.mxu0 %v4841_v0  ;;  %v2002_v40 = vsel %vm4921_vm4, %v1997_v12, %v2001_v13  ;;  %v2029_v41 = vrot.slane %v2027_v19, 5  ;;  %v2046_v44 = vshrl.u32 %v4002_v29, 16  ;;  %v2016_v46 = vsel %vm4921_vm4, %v2011_v24, %v2015_v25  ;;  %v5028_v25 = vld [vmem:[%s4895_s19 + $0xc] sm:$0x1] }
  0x32   : > { %v2038_v47 = vor.u32 %v2037_v36, %v2034_v32  ;;  %v2049_v49 = vshll.u32 %v4002_v29, 16  ;;  %v2060_v50 = vshrl.u32 %v4004_v37, 16  ;;  %v2025_v53 = vrot.slane %v2024_v31, 4 }
  0x33   : > { %4362 = vmatmul.mubr.msk.bf16.vlgmr.msra.gmra.mrb[0].mxu1 %vm244_vm1, %v3797_v16  ;;  %v2043_v54 = vrot.slane %v2041_v33, 5  ;;  %v2048_v55 = vrot.slane %v2046_v44, 4  ;;  %v2063_v56 = vshll.u32 %v4004_v37, 16  ;;  %v2055_v60 = vshll.u32 %v4003_v43, 16  ;;  %v4006_v16 = vld [vmem:[%s4895_s19 + $0x88] sm:$0xf] }
  0x34   : > { %4366 = vmatpush3.bf16.xpose.msra.mxu1 %v324_v23  ;;  %4373 = vmatprep.mubr.msk.bf16.mxu1 %vm4842_vm0, %v4841_v0  ;;  %v2039_v58 = vrot.slane %v2038_v47, 4  ;;  %v2051_v59 = vrot.slane %v2049_v49, 5  ;;  %v2062_v61 = vrot.slane %v2060_v50, 4  ;;  %v2069_v63 = vshll.u32 %v4005_v48, 16  ;;  %v379_v48 = vld [vmem:[%s4895_s19 + $0x10] sm:$0xf] }
  0x35   : > { %4367 = vmatprep.subr.bf16.mxu1 %v4841_v0  ;;  %v2065_v62 = vrot.slane %v2063_v56, 5  ;;  %v397_v1 = vshrl.u32 %v375_v52, 16  ;;  %v400_v2 = vshll.u32 %v375_v52, 16  ;;  %v327_v3 = vsel %vm244_vm1, %v4782_v34, 0  ;;  %v4008_v34 = vld [vmem:[%s4895_s19 + $0x90] sm:$0xf] }
  0x36   : > { %v330_v4 = vsel %vm244_vm1, %v4783_v35, 0  ;;  %v2052_v6 = vor.u32 %v2051_v59, %v2048_v55  ;;  %v411_v10 = vshrl.u32 %v377_v57, 16  ;;  %v4011_v11 = vcombine.low %v2002_v40, %v2016_v46 }
  0x37   : > { %v2030_v12 = vsel %vm4921_vm4, %v2025_v53, %v2029_v41  ;;  %v5019_v13 = vsel %vm244_vm1, %v4784_v42, 0  ;;  %v2066_v15 = vor.u32 %v2065_v62, %v2062_v61  ;;  %v2044_v18 = vsel %vm4921_vm4, %v2039_v58, %v2043_v54  ;;  %v4007_v41 = vld [vmem:[%s4895_s19 + $0x8c] sm:$0x1]  ;;  %v4009_v42 = vld [vmem:[%s4895_s19 + $0x94] sm:$0x1] }
  0x38   : > { %4504 = vmatpush3.bf16.xpose.msra.mxu0 %v1928_v39  ;;  %v2057_v19 = vrot.slane %v2055_v60, 5  ;;  %v399_v22 = vrot.slane %v397_v1, 4  ;;  %v402_v23 = vrot.slane %v400_v2, 5  ;;  %v2071_v24 = vrot.slane %v2069_v63, 5  ;;  %v381_v58 = vld [vmem:[%s4895_s19 + $0x18] sm:$0xf] }
  0x39   : > { %4509 = vmatprep.subr.bf16.mxu0 %v4841_v0  ;;  %v406_v27 = vshll.u32 %v5013_v8, 16  ;;  %v413_v29 = vrot.slane %v411_v10, 4  ;;  %v414_v31 = vshll.u32 %v377_v57, 16  ;;  %v2053_v32 = vrot.slane %v2052_v6, 4  ;;  %v5050_v62 = vld [vmem:[%s4895_s19 + $0x14] sm:$0x1] }
  0x3a   : > { %v2067_v33 = vrot.slane %v2066_v15, 4  ;;  %v2074_v35 = vshrl.u32 %v4006_v16, 16  ;;  %v2077_v36 = vshll.u32 %v4006_v16, 16  ;;  %v2117_v37 = vsel %vm244_vm1, %v4011_v11, 0  ;;  %v5054_v6 = vld [vmem:[%s4895_s19 + $0x1c] sm:$0x1] }
  0x3b   : > { %v4012_v39 = vcombine.low %v2030_v12, %v2044_v18  ;;  %v416_v40 = vrot.slane %v414_v31, 5  ;;  %v403_v43 = vor.u32 %v402_v23, %v399_v22  ;;  %v420_v44 = vshll.u32 %v5028_v25, 16  ;;  %v4017_v18 = vld [vmem:[%s4895_s19 + $0x10] sm:$0xe] }
  0x3c   : > { %4368 = vmatpush3.bf16.xpose.msra.mxu1 %v327_v3  ;;  %v2076_v46 = vrot.slane %v2074_v35, 4  ;;  %v2079_v47 = vrot.slane %v2077_v36, 5  ;;  %v5039_v49 = vrot.slane %v406_v27, 5  ;;  %v2088_v52 = vshrl.u32 %v4008_v34, 16  ;;  %v383_v27 = vld [vmem:[%s4895_s19 + $0x20] sm:$0xf] }
  0x3d   : > { %4369 = vmatprep.subr.bf16.mxu1 %v4841_v0  ;;  %v417_v50 = vor.u32 %v416_v40, %v413_v29  ;;  %v2091_v53 = vshll.u32 %v4008_v34, 16  ;;  %v2058_v54 = vsel %vm4921_vm4, %v2053_v32, %v2057_v19  ;;  %v2072_v55 = vsel %vm4921_vm4, %v2067_v33, %v2071_v24 }
  0x3e   : > { %v2080_v56 = vor.u32 %v2079_v47, %v2076_v46  ;;  %v2083_v57 = vshll.u32 %v4007_v41, 16  ;;  %v2090_v59 = vrot.slane %v2088_v52, 4  ;;  %v2097_v61 = vshll.u32 %v4009_v42, 16  ;;  %v385_v42 = vld [vmem:[%s4895_s19 + $0x28] sm:$0xf] }
  0x3f   : > { %4506 = vmatmul.mubr.msk.bf16.vlgmr.msra.gmra.mrb[0].mxu0 %vm244_vm1, %v3988_v17  ;;  %v2093_v60 = vrot.slane %v2091_v53, 5  ;;  %v425_v63 = vshrl.u32 %v379_v48, 16  ;;  %v2120_v1 = vsel %vm244_vm1, %v4012_v39, 0  ;;  %v404_v2 = vrot.slane %v403_v43, 4  ;;  %v4016_v17 = vld [vmem:[%s4895_s19 + $0x8] sm:$0xe] }
  0x40   : > { %4510 = vmatpush3.bf16.xpose.msra.mxu0 %v2117_v37  ;;  %4517 = vmatprep.mubr.msk.bf16.mxu0 %vm4842_vm0, %v4841_v0  ;;  %v422_v3 = vrot.slane %v420_v44, 5  ;;  %v428_v10 = vshll.u32 %v379_v48, 16  ;;  %v4013_v11 = vcombine.low %v2058_v54, %v2072_v55  ;;  %v418_v12 = vrot.slane %v417_v50, 4  ;;  %v5094_v52 = vld [vmem:[%s4895_s19 + $0x24] sm:$0x1] }
  0x41   : > { %4511 = vmatprep.subr.bf16.mxu0 %v4841_v0  ;;  %v2094_v15 = vor.u32 %v2093_v60, %v2090_v59  ;;  %v439_v16 = vshrl.u32 %v381_v58, 16  ;;  %v2081_v19 = vrot.slane %v2080_v56, 4  ;;  %v2085_v22 = vrot.slane %v2083_v57, 5  ;;  %v4018_v53 = vld [vmem:[%s4895_s19 + $0x18] sm:$0xe] }
  0x42   : > { %v427_v23 = vrot.slane %v425_v63, 4  ;;  %v430_v24 = vrot.slane %v428_v10, 5  ;;  %v2099_v31 = vrot.slane %v2097_v61, 5  ;;  %v442_v33 = vshll.u32 %v381_v58, 16  ;;  %v4019_v56 = vld [vmem:[%s4895_s19 + $0x20] sm:$0xe] }
  0x43   : > { %v2095_v29 = vrot.slane %v2094_v15, 4  ;;  %v441_v32 = vrot.slane %v439_v16, 4  ;;  %v409_v34 = vsel %vm4921_vm4, %v404_v2, %v5039_v49  ;;  %v434_v35 = vshll.u32 %v5050_v62, 16  ;;  %v5101_v59 = vld [vmem:[%s4895_s19 + $0x2c] sm:$0x1] }
  0x44   : > { %4370 = vmatpush3.bf16.xpose.msra.mxu1 %v330_v4  ;;  %v4025_v36 = vrot.slane %v4016_v17, 9  ;;  %v4026_v37 = vrot.slane %v4017_v18, 9  ;;  %v423_v39 = vsel %vm4921_vm4, %v418_v12, %v422_v3  ;;  %v444_v40 = vrot.slane %v442_v33, 5  ;;  %v387_v10 = vld [vmem:[%s4895_s19 + $0x30] sm:$0xf] }
  0x45   : > { %4371 = vmatprep.subr.bf16.mxu1 %v4841_v0  ;;  %v448_v41 = vshll.u32 %v5054_v6, 16  ;;  %v453_v43 = vshrl.u32 %v383_v27, 16  ;;  %v2086_v44 = vsel %vm4921_vm4, %v2081_v19, %v2085_v22  ;;  %v431_v46 = vor.u32 %v430_v24, %v427_v23  ;;  %v389_v16 = vld [vmem:[%s4895_s19 + $0x38] sm:$0xf]  ;;  %v212_v23 = vld [vmem:[%s6138_s1] sm:$0xf] }
  0x46   : > { %v5080_v47 = vsel %vm5062_vm7, %v4025_v36, %v2197_v20  ;;  %v5086_v48 = vsel %vm5062_vm7, %v4026_v37, %v2201_v30  ;;  %v2100_v49 = vsel %vm4921_vm4, %v2095_v29, %v2099_v31  ;;  %v445_v50 = vor.u32 %v444_v40, %v441_v32  ;;  %v4020_v33 = vld [vmem:[%s4895_s19 + $0x28] sm:$0xe]  ;;  %v4021_v40 = vld [vmem:[%s4895_s19 + $0x30] sm:$0xe] }
  0x47   : > { %v4033_v5 = vcombine.low %v5080_v47, %v5086_v48  ;;  %v456_v20 = vshll.u32 %v383_v27, 16  ;;  %v2123_v7 = vsel %vm244_vm1, %v4013_v11, 0  ;;  %v3809_v54 = vcombine.low %v409_v34, %v423_v39  ;;  %v5136_v39 = vld [vmem:[%s4895_s19 + $0x3c] sm:$0x1] }
  0x48   : > { %4512 = vmatpush3.bf16.xpose.msra.mxu0 %v2120_v1  ;;  %v455_v30 = vrot.slane %v453_v43, 4  ;;  %v467_v55 = vshrl.u32 %v385_v42, 16  ;;  %v436_v57 = vrot.slane %v434_v35, 5  ;;  %v450_v58 = vrot.slane %v448_v41, 5 }
  0x49   : > { %4513 = vmatprep.subr.bf16.mxu0 %v4841_v0  ;;  %v458_v60 = vrot.slane %v456_v20, 5  ;;  %v470_v61 = vshll.u32 %v385_v42, 16  ;;  %v4014_v63 = vcombine.low %v2086_v44, %v2100_v49  ;;  %v432_v1 = vrot.slane %v431_v46, 4  ;;  %v3814_v46 = vld [vmem:[%s4895_s19 + $0x50] sm:$0xf] }
  0x4a   : > { %v469_v2 = vrot.slane %v467_v55, 4  ;;  %v4027_v3 = vrot.slane %v4018_v53, 9  ;;  %v446_v11 = vrot.slane %v445_v50, 4  ;;  %v462_v12 = vshll.u32 %v5094_v52, 16 }
  0x4b   : > { %v472_v15 = vrot.slane %v470_v61, 5  ;;  %v459_v17 = vor.u32 %v458_v60, %v455_v30  ;;  %v476_v18 = vshll.u32 %v5101_v59, 16  ;;  %v2209_v22 = vrot.slane %v4918_v26, 5  ;;  %v5125_v26 = vld [vmem:[%s4895_s19 + $0x34] sm:$0x1] }
  0x4c   : > { %4372 = vmatpush3.bf16.xpose.msra.mxu1 %v5019_v13  ;;  %v4028_v13 = vrot.slane %v4019_v56, 9  ;;  %v5112_v19 = vsel %vm5062_vm7, %v4027_v3, %v2205_v38  ;;  %v481_v27 = vshrl.u32 %v387_v10, 16  ;;  %v484_v29 = vshll.u32 %v387_v10, 16  ;;  %v4022_v10 = vld [vmem:[%s4895_s19 + $0x38] sm:$0xe] }
  0x4d   : > { %4377 = vmatprep.subr.bf16.mxu1 %v4841_v0  ;;  %v473_v24 = vor.u32 %v472_v15, %v469_v2  ;;  %v524_v31 = vsel %vm244_vm1, %v3809_v54, 0  ;;  %v2126_v21 = vsel %vm244_vm1, %v4014_v63, 0  ;;  %v495_v32 = vshrl.u32 %v389_v16, 16 }
  0x4e   : > { %v5122_v38 = vsel %vm5062_vm7, %v4028_v13, %v2209_v22  ;;  %v437_v34 = vsel %vm4921_vm4, %v432_v1, %v436_v57  ;;  %v451_v35 = vsel %vm4921_vm4, %v446_v11, %v450_v58  ;;  %v464_v36 = vrot.slane %v462_v12, 5  ;;  %v3816_v57 = vld [vmem:[%s4895_s19 + $0x58] sm:$0xf]  ;;  %v4023_v11 = vld [vmem:[%s4895_s19 + $0x40] sm:$0xe] }
  0x4f   : > { %v4034_v37 = vcombine.low %v5112_v19, %v5122_v38  ;;  %v460_v41 = vrot.slane %v459_v17, 4  ;;  %v474_v42 = vrot.slane %v473_v24, 4  ;;  %v478_v43 = vrot.slane %v476_v18, 5 }
  0x50   : > { %4514 = vmatpush3.bf16.xpose.msra.mxu0 %v2123_v7  ;;  %v498_v44 = vshll.u32 %v389_v16, 16  ;;  %v483_v47 = vrot.slane %v481_v27, 4  ;;  %v486_v48 = vrot.slane %v484_v29, 5  ;;  %v497_v49 = vrot.slane %v495_v32, 4  ;;  %v3817_v29 = vld [vmem:[%s4895_s19 + $0x5c] sm:$0x1] }
  0x51   : > { %4515 = vmatprep.subr.bf16.mxu0 %v4841_v0  ;;  %v4029_v50 = vrot.slane %v4020_v33, 9  ;;  %v3810_v20 = vcombine.low %v437_v34, %v451_v35  ;;  %v2243_v53 = vsel %vm244_vm1, %v4033_v5, 0  ;;  %v2213_v54 = vrot.slane %v4935_v45, 5  ;;  %v3815_v45 = vld [vmem:[%s4895_s19 + $0x54] sm:$0x1] }
  0x52   : > { %v500_v7 = vrot.slane %v498_v44, 5  ;;  %v490_v30 = vshll.u32 %v5125_v26, 16  ;;  %v4030_v55 = vrot.slane %v4021_v40, 9  ;;  %v2217_v56 = vrot.slane %v4939_v51, 5 }
  0x53   : > { %4374 = vmatmul.mubr.msk.bf16.vlgmr.msra.gmra.mrb[0].mxu1 %vm244_vm1, %v212_v23  ;;  %v595_v58 = vshrl.u32 %v3814_v46, 16  ;;  %v465_v60 = vsel %vm4921_vm4, %v460_v41, %v464_v36  ;;  %v479_v61 = vsel %vm4921_vm4, %v474_v42, %v478_v43  ;;  %v504_v5 = vshll.u32 %v5136_v39, 16  ;;  %v3818_v23 = vld [vmem:[%s4895_s19 + $0x60] sm:$0xf] }
  0x54   : > { %4378 = vmatpush3.bf16.xpose.msra.mxu1 %v524_v31  ;;  %4385 = vmatprep.mubr.msk.bf16.mxu1 %vm4842_vm0, %v4841_v0  ;;  %v5156_v63 = vsel %vm5062_vm7, %v4029_v50, %v2213_v54  ;;  %v487_v1 = vor.u32 %v486_v48, %v483_v47  ;;  %v501_v2 = vor.u32 %v500_v7, %v497_v49  ;;  %v598_v3 = vshll.u32 %v3814_v46, 16  ;;  %v3820_v48 = vld [vmem:[%s4895_s19 + $0x68] sm:$0xf] }
  0x55   : > { %4379 = vmatprep.subr.bf16.mxu1 %v4841_v0  ;;  %v5161_v51 = vsel %vm5062_vm7, %v4030_v55, %v2217_v56  ;;  %v527_v12 = vsel %vm244_vm1, %v3810_v20, 0  ;;  %v609_v13 = vshrl.u32 %v3816_v57, 16  ;;  %v492_v16 = vrot.slane %v490_v30, 5  ;;  %v3821_v55 = vld [vmem:[%s4895_s19 + $0x6c] sm:$0x1] }
  0x56   : > { %v4035_v15 = vcombine.low %v5156_v63, %v5161_v51  ;;  %v597_v17 = vrot.slane %v595_v58, 4  ;;  %v600_v18 = vrot.slane %v598_v3, 5  ;;  %v612_v22 = vshll.u32 %v3816_v57, 16  ;;  %v3822_v56 = vld [vmem:[%s4895_s19 + $0x70] sm:$0xf] }
  0x57   : > { %v3811_v24 = vcombine.low %v465_v60, %v479_v61  ;;  %v506_v27 = vrot.slane %v504_v5, 5  ;;  %v611_v31 = vrot.slane %v609_v13, 4  ;;  %v4031_v32 = vrot.slane %v4022_v10, 9  ;;  %v777_v51 = vld [vmem:[%s4895_s19 + $0x18] sm:$0xe] }
  0x58   : > { %4516 = vmatpush3.bf16.xpose.msra.mxu0 %v2126_v21  ;;  %v4010_v21 = vld [vmem:[%s6138_s1 + $0x34] sm:$0xf]  ;;  %v488_v33 = vrot.slane %v487_v1, 4  ;;  %v502_v34 = vrot.slane %v501_v2, 4  ;;  %v604_v35 = vshll.u32 %v3815_v45, 16  ;;  %v614_v36 = vrot.slane %v612_v22, 5 }
  0x59   : > { %4521 = vmatprep.subr.bf16.mxu0 %v4841_v0  ;;  %v2221_v40 = vrot.slane %v4953_v9, 5  ;;  %v4032_v41 = vrot.slane %v4023_v11, 9  ;;  %v2225_v42 = vrot.slane %v4957_v14, 5  ;;  %v623_v43 = vshrl.u32 %v3818_v23, 16  ;;  %v3819_v9 = vld [vmem:[%s4895_s19 + $0x64] sm:$0x1] }
  0x5a   : > { %v601_v44 = vor.u32 %v600_v18, %v597_v17  ;;  %v615_v46 = vor.u32 %v614_v36, %v611_v31  ;;  %v618_v47 = vshll.u32 %v3817_v29, 16  ;;  %v626_v49 = vshll.u32 %v3818_v23, 16  ;;  %v3823_v29 = vld [vmem:[%s4895_s19 + $0x74] sm:$0x1] }
  0x5b   : > { %v5180_v50 = vsel %vm5062_vm7, %v4031_v32, %v2221_v40  ;;  %v5184_v20 = vsel %vm5062_vm7, %v4032_v41, %v2225_v42  ;;  %v530_v14 = vsel %vm244_vm1, %v3811_v24, 0  ;;  %v493_v7 = vsel %vm4921_vm4, %v488_v33, %v492_v16  ;;  %v3826_v42 = vld [vmem:[%s4895_s19 + $0x80] sm:$0xf] }
  0x5c   : > { %4380 = vmatpush3.bf16.xpose.msra.mxu1 %v527_v12  ;;  %v507_v54 = vsel %vm4921_vm4, %v502_v34, %v506_v27  ;;  %v4036_v30 = vcombine.low %v5180_v50, %v5184_v20  ;;  %v625_v57 = vrot.slane %v623_v43, 4  ;;  %v628_v58 = vrot.slane %v626_v49, 5  ;;  %v3824_v12 = vld [vmem:[%s4895_s19 + $0x78] sm:$0xf]  ;;  %v3825_v34 = vld [vmem:[%s4895_s19 + $0x7c] sm:$0x1] }
  0x5d   : > { %4381 = vmatprep.subr.bf16.mxu1 %v4841_v0  ;;  %v637_v60 = vshrl.u32 %v3820_v48, 16  ;;  %v640_v61 = vshll.u32 %v3820_v48, 16  ;;  %v602_v5 = vrot.slane %v601_v44, 4  ;;  %v606_v45 = vrot.slane %v604_v35, 5  ;;  %v3828_v20 = vld [vmem:[%s4895_s19 + $0x88] sm:$0xf] }
  0x5e   : > { %v616_v1 = vrot.slane %v615_v46, 4  ;;  %v620_v2 = vrot.slane %v618_v47, 5  ;;  %v3812_v11 = vcombine.low %v493_v7, %v507_v54  ;;  %v651_v13 = vshrl.u32 %v3822_v56, 16  ;;  %v774_v46 = vld [vmem:[%s4895_s19] sm:$0xe] }
  0x5f   : > { %4518 = vmatmul.mubr.msk.bf16.vlgmr.msra.gmra.mrb[0].mxu0 %vm244_vm1, %v4010_v21  ;;  %v639_v3 = vrot.slane %v637_v60, 4  ;;  %v642_v10 = vrot.slane %v640_v61, 5  ;;  %v654_v16 = vshll.u32 %v3822_v56, 16  ;;  %v629_v17 = vor.u32 %v628_v58, %v625_v57  ;;  %v775_v47 = vld [vmem:[%s4895_s19 + $0x8] sm:$0xe] }
  0x60   : > { %4522 = vmatpush3.bf16.xpose.msra.mxu0 %v2243_v53  ;;  %4529 = vmatprep.mubr.msk.bf16.mxu0 %vm4842_vm0, %v4841_v0  ;;  %v632_v53 = vshll.u32 %v3819_v9, 16  ;;  %v646_v22 = vshll.u32 %v3821_v55, 16  ;;  %v2246_v23 = vsel %vm244_vm1, %v4034_v37, 0  ;;  %v607_v24 = vsel %vm4921_vm4, %v602_v5, %v606_v45  ;;  %v776_v9 = vld [vmem:[%s4895_s19 + $0x10] sm:$0xe] }
  0x61   : > { %4523 = vmatprep.subr.bf16.mxu0 %v4841_v0  ;;  %v643_v18 = vor.u32 %v642_v10, %v639_v3  ;;  %v621_v27 = vsel %vm4921_vm4, %v616_v1, %v620_v2  ;;  %v665_v31 = vshrl.u32 %v3824_v12, 16  ;;  %v668_v32 = vshll.u32 %v3824_v12, 16  ;;  %v778_v60 = vld [vmem:[%s4895_s19 + $0x20] sm:$0xe]  ;;  %v779_v1 = vld [vmem:[%s4895_s19 + $0x28] sm:$0xe] }
  0x62   : > { %v533_v21 = vsel %vm244_vm1, %v3812_v11, 0  ;;  %v634_v33 = vrot.slane %v632_v53, 5  ;;  %v653_v35 = vrot.slane %v651_v13, 4  ;;  %v656_v19 = vrot.slane %v654_v16, 5  ;;  %v780_v16 = vld [vmem:[%s4895_s19 + $0x30] sm:$0xe] }
  0x63   : > { %v3831_v38 = vcombine.low %v607_v24, %v621_v27  ;;  %v630_v37 = vrot.slane %v629_v17, 4  ;;  %v644_v36 = vrot.slane %v643_v18, 4  ;;  %v648_v40 = vrot.slane %v646_v22, 5 }
  0x64   : > { %4382 = vmatpush3.bf16.xpose.msra.mxu1 %v530_v14  ;;  %v660_v41 = vshll.u32 %v3823_v29, 16  ;;  %v667_v43 = vrot.slane %v665_v31, 4  ;;  %v670_v44 = vrot.slane %v668_v32, 5  ;;  %v2249_v48 = vsel %vm244_vm1, %v4035_v15, 0  ;;  %v3808_v15 = vld [vmem:[%s6138_s1 + $0x8] sm:$0xf] }
  0x65   : > { %4383 = vmatprep.subr.bf16.mxu1 %v4841_v0  ;;  %v657_v49 = vor.u32 %v656_v19, %v653_v35  ;;  %v674_v50 = vshll.u32 %v3825_v34, 16  ;;  %v722_v14 = vsel %vm244_vm1, %v3831_v38, 0  ;;  %v2252_v7 = vsel %vm244_vm1, %v4036_v30, 0  ;;  %v781_v29 = vld [vmem:[%s4895_s19 + $0x38] sm:$0xe] }
  0x66   : > { %v635_v54 = vsel %vm4921_vm4, %v630_v37, %v634_v33  ;;  %v649_v63 = vsel %vm4921_vm4, %v644_v36, %v648_v40  ;;  %v5234_v55 = vrot.slane %v660_v41, 5  ;;  %v679_v56 = vshrl.u32 %v3826_v42, 16  ;;  %v3827_v33 = vld [vmem:[%s4895_s19 + $0x84] sm:$0x1]  ;;  %v3829_v41 = vld [vmem:[%s4895_s19 + $0x8c] sm:$0x1] }
  0x67   : > { %v682_v57 = vshll.u32 %v3826_v42, 16  ;;  %v3837_v58 = vrot.slane %v774_v46, 9  ;;  %v671_v61 = vor.u32 %v670_v44, %v667_v43  ;;  %v805_v30 = vrot.slane %v5013_v8, 5 }
  0x68   : > { %4524 = vmatpush3.bf16.xpose.msra.mxu0 %v2246_v23  ;;  %v3838_v5 = vrot.slane %v775_v47, 9  ;;  %v809_v45 = vrot.slane %v5028_v25, 5  ;;  %v3832_v2 = vcombine.low %v635_v54, %v649_v63  ;;  %v658_v3 = vrot.slane %v657_v49, 4 }
  0x69   : > { %4525 = vmatprep.subr.bf16.mxu0 %v4841_v0  ;;  %v676_v10 = vrot.slane %v674_v50, 5  ;;  %v3839_v11 = vrot.slane %v776_v9, 9  ;;  %v693_v53 = vshrl.u32 %v3828_v20, 16  ;;  %v5242_v12 = vsel %vm5062_vm7, %v3837_v58, %v805_v30  ;;  %v4786_v58 = vld [vmem:[%s4895_s19 + $0xb8] ss:$8 sps:$4 sm:$0xff]  }
  0x6a   : > { %v5246_v13 = vsel %vm5062_vm7, %v3838_v5, %v809_v45  ;;  %v813_v8 = vrot.slane %v5050_v62, 5  ;;  %v696_v25 = vshll.u32 %v3828_v20, 16  ;;  %v3840_v18 = vrot.slane %v777_v51, 9 }
  0x6b   : > { %v3845_v17 = vcombine.low %v5242_v12, %v5246_v13  ;;  %v817_v22 = vrot.slane %v5054_v6, 5  ;;  %v681_v23 = vrot.slane %v679_v56, 4  ;;  %v3841_v27 = vrot.slane %v778_v60, 9  ;;  %v4066_v13 = vld [vmem:[%s4895_s19 + $0xa8] sm:$0xf] }
  0x6c   : > { %4384 = vmatpush3.bf16.xpose.msra.mxu1 %v533_v21  ;;  %v5257_v24 = vsel %vm5062_vm7, %v3839_v11, %v813_v8  ;;  %v821_v62 = vrot.slane %v5094_v52, 5  ;;  %v672_v31 = vrot.slane %v671_v61, 4  ;;  %v684_v32 = vrot.slane %v682_v57, 5  ;;  %v4788_v11 = vld [vmem:[%s4895_s19 + $0xd8] ss:$8 sps:$4 sm:$0xff]  }
  0x6d   : > { %4389 = vmatprep.subr.bf16.mxu1 %v4841_v0  ;;  %v5265_v6 = vsel %vm5062_vm7, %v3840_v18, %v817_v22  ;;  %v3842_v21 = vrot.slane %v779_v1, 9  ;;  %v695_v34 = vrot.slane %v693_v53, 4  ;;  %v825_v19 = vrot.slane %v5101_v59, 5  ;;  %v4787_v1 = vld [vmem:[%s4895_s19 + $0xc8] ss:$8 sps:$4 sm:$0xff]  }
  0x6e   : > { %v3846_v52 = vcombine.low %v5257_v24, %v5265_v6  ;;  %v5273_v35 = vsel %vm5062_vm7, %v3841_v27, %v821_v62  ;;  %v698_v38 = vrot.slane %v696_v25, 5  ;;  %v3843_v37 = vrot.slane %v780_v16, 9  ;;  %v4789_v8 = vld [vmem:[%s4895_s19 + $0xf8] ss:$8 sps:$4 sm:$0xff]   ;;  %v4068_v16 = vld [vmem:[%s4895_s19 + $0xb0] sm:$0xf] }
  0x6f   : > { %v829_v36 = vrot.slane %v5125_v26, 5  ;;  %v3844_v40 = vrot.slane %v781_v29, 9  ;;  %v5280_v42 = vsel %vm5062_vm7, %v3842_v21, %v825_v19  ;;  %v833_v43 = vrot.slane %v5136_v39, 5  ;;  %v4785_v26 = vld [vmem:[%s4895_s19 + $0xa8] ss:$8 sps:$4 sm:$0xff]  }
  0x70   : > { %4526 = vmatpush3.bf16.xpose.msra.mxu0 %v2249_v48  ;;  %v688_v44 = vshll.u32 %v3827_v33, 16  ;;  %v3847_v46 = vcombine.low %v5273_v35, %v5280_v42  ;;  %v725_v59 = vsel %vm244_vm1, %v3832_v2, 0  ;;  %v663_v48 = vsel %vm4921_vm4, %v658_v3, %v5234_v55  ;;  %v3830_v3 = vld [vmem:[%s6138_s1 + $0xc] sm:$0xf]  ;;  %v4046_v18 = vld [vmem:[%s6138_s1 + $0x3c] sm:$0xf] }
  0x71   : > { %4527 = vmatprep.subr.bf16.mxu0 %v4841_v0  ;;  %v5287_v47 = vsel %vm5062_vm7, %v3843_v37, %v829_v36  ;;  %v685_v49 = vor.u32 %v684_v32, %v681_v23  ;;  %v5296_v39 = vsel %vm5062_vm7, %v3844_v40, %v833_v43  ;;  %v677_v50 = vsel %vm4921_vm4, %v672_v31, %v676_v10  ;;  %v4067_v31 = vld [vmem:[%s4895_s19 + $0xac] sm:$0x1]  ;;  %v4070_v32 = vld [vmem:[%s4895_s19 + $0xb8] sm:$0xf]  ;;  %v4790_v6 = vld [vmem:[%s4895_s19 + $0x108] ss:$8 sps:$4 sm:$0xff]  }
  0x72   : > { %v699_v20 = vor.u32 %v698_v38, %v695_v34  ;;  %v702_v9 = vshll.u32 %v3829_v41, 16  ;;  %v2330_v54 = vsel %vm244_vm1, %v4785_v26, 0  ;;  %v3833_v63 = vcombine.low %v663_v48, %v677_v50  ;;  %v4072_v34 = vld [vmem:[%s4895_s19 + $0xc0] sm:$0xf]  ;;  %v5373_v26 = vld [vmem:[%s4895_s19 + $0xc4] sm:$0x1] }
  0x73   : > { %4386 = vmatmul.mubr.msk.bf16.vlgmr.msra.gmra.mrb[0].mxu1 %vm244_vm1, %v3808_v15  ;;  %v686_v51 = vrot.slane %v685_v49, 4  ;;  %v690_v15 = vrot.slane %v688_v44, 5  ;;  %v2333_v5 = vsel %vm244_vm1, %v4786_v58, 0  ;;  %v2336_v2 = vsel %vm244_vm1, %v4787_v1, 0  ;;  %v4791_v42 = vld [vmem:[%s4895_s19 + $0x118] ss:$8 sps:$4 sm:$0xff]  }
  0x74   : > { %4390 = vmatpush3.bf16.xpose.msra.mxu1 %v722_v14  ;;  %4397 = vmatprep.mubr.msk.bf16.mxu1 %vm4842_vm0, %v4841_v0  ;;  %v3848_v14 = vcombine.low %v5287_v47, %v5296_v39  ;;  %v700_v55 = vrot.slane %v699_v20, 4  ;;  %v704_v56 = vrot.slane %v702_v9, 5  ;;  %v728_v57 = vsel %vm244_vm1, %v3833_v63, 0  ;;  %v4110_v9 = vld [vmem:[%s4895_s19 + $0xa8] sm:$0xe] }
  0x75   : > { %4391 = vmatprep.subr.bf16.mxu1 %v4841_v0  ;;  %v691_v60 = vsel %vm4921_vm4, %v686_v51, %v690_v15  ;;  %v851_v10 = vsel %vm244_vm1, %v3845_v17, 0  ;;  %v2339_v53 = vsel %vm244_vm1, %v4788_v11, 0  ;;  %v854_v12 = vsel %vm244_vm1, %v3846_v52, 0  ;;  %v4069_v52 = vld [vmem:[%s4895_s19 + $0xb4] sm:$0x1] }
  0x76   : > { %v705_v61 = vsel %vm4921_vm4, %v700_v55, %v704_v56  ;;  %v2488_v25 = vshrl.u32 %v4066_v13, 16  ;;  %v2491_v17 = vshll.u32 %v4066_v13, 16  ;;  %v2417_v22 = vsel %vm244_vm1, %v4789_v8, 0  ;;  %v4111_v15 = vld [vmem:[%s4895_s19 + $0xb0] sm:$0xe] }
  0x77   : > { %v3834_v30 = vcombine.low %v691_v60, %v705_v61  ;;  %v2502_v23 = vshrl.u32 %v4068_v16, 16  ;;  %v2505_v24 = vshll.u32 %v4068_v16, 16  ;;  %v857_v29 = vsel %vm244_vm1, %v3847_v46, 0  ;;  %v4792_v46 = vld [vmem:[%s4895_s19 + $0xa0] ss:$8 sps:$4 sm:$0xff]  }
  0x78   : > { %4528 = vmatpush3.bf16.xpose.msra.mxu0 %v2252_v7  ;;  %v4024_v7 = vld [vmem:[%s6138_s1 + $0x38] sm:$0xf]  ;;  %v2490_v27 = vrot.slane %v2488_v25, 4  ;;  %v2493_v62 = vrot.slane %v2491_v17, 5  ;;  %v2497_v19 = vshll.u32 %v4067_v31, 16  ;;  %v2516_v38 = vshrl.u32 %v4070_v32, 16 }
  0x79   : > { %4533 = vmatprep.subr.bf16.mxu0 %v4841_v0  ;;  %v731_v45 = vsel %vm244_vm1, %v3834_v30, 0  ;;  %v2504_v21 = vrot.slane %v2502_v23, 4  ;;  %v2507_v33 = vrot.slane %v2505_v24, 5  ;;  %v2519_v37 = vshll.u32 %v4070_v32, 16  ;;  %v4794_v39 = vld [vmem:[%s4895_s19 + $0xb0] ss:$8 sps:$4 sm:$0xff]  }
  0x7a   : > { %v2494_v35 = vor.u32 %v2493_v62, %v2490_v27  ;;  %v2530_v36 = vshrl.u32 %v4072_v34, 16  ;;  %v2533_v40 = vshll.u32 %v4072_v34, 16  ;;  %v2420_v41 = vsel %vm244_vm1, %v4790_v6, 0  ;;  %v4074_v30 = vld [vmem:[%s4895_s19 + $0xc8] sm:$0xf] }
  0x7b   : > { %v2508_v43 = vor.u32 %v2507_v33, %v2504_v21  ;;  %v2511_v44 = vshll.u32 %v4069_v52, 16  ;;  %v860_v48 = vsel %vm244_vm1, %v3848_v14, 0  ;;  %v2499_v50 = vrot.slane %v2497_v19, 5  ;;  %v4076_v1 = vld [vmem:[%s4895_s19 + $0xd0] sm:$0xf] }
  0x7c   : > { %4392 = vmatpush3.bf16.xpose.msra.mxu1 %v725_v59  ;;  %v5370_v59 = vld [vmem:[%s4895_s19 + $0xbc] sm:$0x1]  ;;  %v2495_v49 = vrot.slane %v2494_v35, 4  ;;  %v2518_v20 = vrot.slane %v2516_v38, 4  ;;  %v2532_v63 = vrot.slane %v2530_v36, 4  ;;  %v2535_v51 = vrot.slane %v2533_v40, 5 }
  0x7d   : > { %4393 = vmatprep.subr.bf16.mxu1 %v4841_v0  ;;  %v2893_v55 = vrot.slane %v4067_v31, 5  ;;  %v2423_v47 = vsel %vm244_vm1, %v4791_v42, 0  ;;  %v2509_v14 = vrot.slane %v2508_v43, 4  ;;  %v2513_v56 = vrot.slane %v2511_v44, 5  ;;  %v3836_v13 = vld [vmem:[%s6138_s1 + $0x10] sm:$0xf] }
  0x7e   : > { %v938_v58 = vsel %vm244_vm1, %v4792_v46, 0  ;;  %v2525_v60 = vshll.u32 %v5370_v59, 16  ;;  %v2539_v61 = vshll.u32 %v5373_v26, 16  ;;  %v2544_v16 = vshrl.u32 %v4074_v30, 16  ;;  %v4112_v27 = vld [vmem:[%s4895_s19 + $0xb8] sm:$0xe] }
  0x7f   : > { %4530 = vmatmul.mubr.msk.bf16.vlgmr.msra.gmra.mrb[0].mxu0 %vm244_vm1, %v4024_v7  ;;  %v4793_v7 = vld [vmem:[%s4895_s19 + $0x128] ss:$8 sps:$4 sm:$0xff]   ;;  %v2514_v8 = vsel %vm4921_vm4, %v2509_v14, %v2513_v56  ;;  %v2547_v25 = vshll.u32 %v4074_v30, 16  ;;  %v2558_v23 = vshrl.u32 %v4076_v1, 16  ;;  %v941_v62 = vsel %vm244_vm1, %v4794_v39, 0 }
  0x80   : > { %4534 = vmatpush3.bf16.xpose.msra.mxu0 %v2330_v54  ;;  %4541 = vmatprep.mubr.msk.bf16.mxu0 %vm4842_vm0, %v4841_v0  ;;  %v2521_v54 = vrot.slane %v2519_v37, 5  ;;  %v5419_v31 = vrot.slane %v2525_v60, 5  ;;  %v5421_v32 = vrot.slane %v2539_v61, 5  ;;  %v4078_v6 = vld [vmem:[%s4895_s19 + $0xd8] sm:$0xf]  ;;  %v2561_v34 = vshll.u32 %v4076_v1, 16 }
  0x81   : > { %4535 = vmatprep.subr.bf16.mxu0 %v4841_v0  ;;  %v4113_v35 = vld [vmem:[%s4895_s19 + $0xc0] sm:$0xe]  ;;  %v5431_v38 = vrot.slane %v2544_v16, 4  ;;  %v5433_v37 = vrot.slane %v2547_v25, 5  ;;  %v4121_v36 = vrot.slane %v4112_v27, 9  ;;  %v2572_v42 = vshrl.u32 %v4078_v6, 16 }
  0x82   : > { %v2522_v11 = vor.u32 %v2521_v54, %v2518_v20  ;;  %v2901_v43 = vrot.slane %v5370_v59, 5  ;;  %v4077_v44 = vld [vmem:[%s4895_s19 + $0xd4] sm:$0x1]  ;;  %v2575_v46 = vshll.u32 %v4078_v6, 16  ;;  %v2905_v20 = vrot.slane %v5373_v26, 5 }
  0x83   : > { %v4114_v59 = vld [vmem:[%s4895_s19 + $0xc8] sm:$0xe]  ;;  %v4115_v60 = vld [vmem:[%s4895_s19 + $0xd0] sm:$0xe]  ;;  %v2567_v30 = vshll.u32 %v4077_v44, 16  ;;  %v2574_v1 = vrot.slane %v2572_v42, 4 }
  0x84   : > { %4394 = vmatpush3.bf16.xpose.msra.mxu1 %v728_v57  ;;  %v4795_v57 = vld [vmem:[%s4895_s19 + $0xc0] ss:$8 sps:$4 sm:$0xff]   ;;  %v5424_v33 = vrot.slane %v2522_v11, 4  ;;  %v4123_v61 = vrot.slane %v4114_v59, 9  ;;  %v4116_v6 = vld [vmem:[%s4895_s19 + $0xd8] sm:$0xe] }
  0x85   : > { %4395 = vmatprep.subr.bf16.mxu1 %v4841_v0 }
  0x86   : > { %v2528_v26 = vsel %vm4921_vm4, %v5424_v33, %v5419_v31 }
  0x88   : > { %4536 = vmatpush3.bf16.xpose.msra.mxu0 %v2333_v5  ;;  %v4119_v5 = vrot.slane %v4110_v9, 9  ;;  %v4090_v9 = vld [vmem:[%s4895_s19 + $0x100] sm:$0xf] }
  0x89   : > { %4537 = vmatprep.subr.bf16.mxu0 %v4841_v0 }
  0x8c   : > { %4396 = vmatpush3.bf16.xpose.msra.mxu1 %v731_v45  ;;  %v5391_v45 = vld [vmem:[%s4895_s19 + $0xcc] sm:$0x1] }
  0x8d   : > { %4401 = vmatprep.subr.bf16.mxu1 %v4841_v0 }
  0x90   : > { %4538 = vmatpush3.bf16.xpose.msra.mxu0 %v2336_v2  ;;  %v4120_v2 = vrot.slane %v4111_v15, 9 }
  0x91   : > { %4539 = vmatprep.subr.bf16.mxu0 %v4841_v0 }
  0x93   : > { %4398 = vmatmul.mubr.msk.bf16.vlgmr.msra.gmra.mrb[0].mxu1 %vm244_vm1, %v3830_v3  ;;  %v2897_v3 = vrot.slane %v4069_v52, 5  ;;  %v4080_v52 = vld [vmem:[%s4895_s19 + $0xe0] sm:$0xf] }
  0x94   : > { %4402 = vmatpush3.bf16.xpose.msra.mxu1 %v851_v10  ;;  %4409 = vmatprep.mubr.msk.bf16.mxu1 %vm4842_vm0, %v4841_v0  ;;  %v2500_v10 = vsel %vm4921_vm4, %v2495_v49, %v2499_v50  ;;  %v4088_v49 = vld [vmem:[%s4895_s19 + $0xf8] sm:$0xf]  ;;  %v4122_v50 = vrot.slane %v4113_v35, 9 }
  0x95   : > { %4403 = vmatprep.subr.bf16.mxu1 %v4841_v0  ;;  %v5408_v17 = vsel %vm5062_vm7, %v4120_v2, %v2897_v3  ;;  %v4083_v21 = vcombine.low %v2500_v10, %v2514_v8  ;;  %v2686_v39 = vshrl.u32 %v4088_v49, 16  ;;  %v2689_v56 = vshll.u32 %v4088_v49, 16 }
  0x96   : > { %v5456_v15 = vsel %vm5062_vm7, %v4122_v50, %v2905_v20  ;;  %v2577_v2 = vrot.slane %v2575_v46, 5  ;;  %v2550_v10 = vor.u32 %v5433_v37, %v5431_v38  ;;  %v2909_v8 = vrot.slane %v5391_v45, 5  ;;  %v4092_v37 = vld [vmem:[%s4895_s19 + $0x108] sm:$0xf]  ;;  %v4094_v20 = vld [vmem:[%s4895_s19 + $0x110] sm:$0xf] }
  0x97   : > { %v2615_v54 = vsel %vm244_vm1, %v4083_v21, 0  ;;  %v2688_v25 = vrot.slane %v2686_v39, 4  ;;  %v2714_v39 = vshrl.u32 %v4092_v37, 16 }
  0x98   : > { %4540 = vmatpush3.bf16.xpose.msra.mxu0 %v2339_v53  ;;  %v2536_v53 = vor.u32 %v2535_v51, %v2532_v63  ;;  %v2563_v63 = vrot.slane %v2561_v34, 5  ;;  %v2589_v51 = vshll.u32 %v4080_v52, 16  ;;  %v2578_v21 = vor.u32 %v2577_v2, %v2574_v1 }
  0x99   : > { %4545 = vmatprep.subr.bf16.mxu0 %v4841_v0  ;;  %v2551_v35 = vrot.slane %v2550_v10, 4 }
  0x9a   : > { %v5429_v19 = vrot.slane %v2536_v53, 4  ;;  %v2591_v53 = vrot.slane %v2589_v51, 5  ;;  %v2579_v59 = vrot.slane %v2578_v21, 4 }
  0x9c   : > { %4404 = vmatpush3.bf16.xpose.msra.mxu1 %v854_v12  ;;  %v5399_v12 = vsel %vm5062_vm7, %v4119_v5, %v2893_v55  ;;  %v2542_v55 = vsel %vm4921_vm4, %v5429_v19, %v5421_v32  ;;  %v5473_v5 = vld [vmem:[%s4895_s19 + $0xe4] sm:$0x1]  ;;  %v5484_v32 = vsel %vm5062_vm7, %v4123_v61, %v2909_v8  ;;  %v2569_v19 = vrot.slane %v2567_v30, 5 }
  0x9d   : > { %4405 = vmatprep.subr.bf16.mxu1 %v4841_v0  ;;  %v4127_v24 = vcombine.low %v5399_v12, %v5408_v17  ;;  %v2595_v33 = vshll.u32 %v5473_v5, 16 }
  0x9f   : > { %4542 = vmatmul.mubr.msk.bf16.vlgmr.msra.gmra.mrb[0].mxu0 %vm244_vm1, %v4046_v18  ;;  %v2426_v18 = vsel %vm244_vm1, %v4793_v7, 0  ;;  %v5450_v7 = vsel %vm5062_vm7, %v4121_v36, %v2901_v43  ;;  %v4117_v43 = vld [vmem:[%s4895_s19 + $0xe0] sm:$0xe] }
  0xa0   : > { %4546 = vmatpush3.bf16.xpose.msra.mxu0 %v2417_v22  ;;  %4553 = vmatprep.mubr.msk.bf16.mxu0 %vm4842_vm0, %v4841_v0  ;;  %v2553_v22 = vshll.u32 %v5391_v45, 16  ;;  %v4128_v14 = vcombine.low %v5450_v7, %v5456_v15  ;;  %v4060_v45 = vld [vmem:[%s6138_s1 + $0x40] sm:$0xf] }
  0xa1   : > { %4547 = vmatprep.subr.bf16.mxu0 %v4841_v0 }
  0xa2   : > { %v5436_v40 = vrot.slane %v2553_v22, 5  ;;  %v2913_v22 = vrot.slane %v4077_v44, 5  ;;  %v4125_v44 = vrot.slane %v4116_v6, 9  ;;  %v4799_v6 = vld [vmem:[%s4895_s19 + $0x110] ss:$8 sps:$4 sm:$0xff]  }
  0xa4   : > { %4406 = vmatpush3.bf16.xpose.msra.mxu1 %v857_v29  ;;  %v5417_v29 = vsel %vm244_vm1, %v4795_v57, 0  ;;  %v2700_v57 = vshrl.u32 %v4090_v9, 16 }
  0xa5   : > { %4407 = vmatprep.subr.bf16.mxu1 %v4841_v0 }
  0xa6   : > { %v2702_v27 = vrot.slane %v2700_v57, 4  ;;  %v2921_v57 = vrot.slane %v5473_v5, 5 }
  0xa8   : > { %4548 = vmatpush3.bf16.xpose.msra.mxu0 %v2420_v41  ;;  %v5438_v41 = vrot.slane %v2558_v23, 4  ;;  %v2691_v23 = vrot.slane %v2689_v56, 5  ;;  %v4126_v56 = vrot.slane %v4117_v43, 9 }
  0xa9   : > { %4549 = vmatprep.subr.bf16.mxu0 %v4841_v0 }
  0xaa   : > { %v2564_v11 = vor.u32 %v2563_v63, %v5438_v41  ;;  %v4084_v41 = vcombine.low %v2528_v26, %v2542_v55  ;;  %v2597_v63 = vrot.slane %v2595_v33, 5  ;;  %v5516_v2 = vsel %vm5062_vm7, %v4126_v56, %v2921_v57 }
  0xac   : > { %4408 = vmatpush3.bf16.xpose.msra.mxu1 %v860_v48  ;;  %v2586_v48 = vshrl.u32 %v4080_v52, 16  ;;  %v2565_v42 = vrot.slane %v2564_v11, 4  ;;  %v2618_v5 = vsel %vm244_vm1, %v4084_v41, 0 }
  0xad   : > { %4413 = vmatprep.subr.bf16.mxu1 %v4841_v0 }
  0xae   : > { %v2588_v3 = vrot.slane %v2586_v48, 4  ;;  %v2692_v48 = vor.u32 %v2691_v23, %v2688_v25  ;;  %v2570_v11 = vsel %vm4921_vm4, %v2565_v42, %v2569_v19  ;;  %v4798_v25 = vld [vmem:[%s4895_s19 + $0x100] ss:$8 sps:$4 sm:$0xff]  }
  0xb0   : > { %4550 = vmatpush3.bf16.xpose.msra.mxu0 %v2423_v47  ;;  %v5467_v47 = vld [vmem:[%s4895_s19 + $0xdc] sm:$0x1]  ;;  %v2592_v38 = vor.u32 %v2591_v53, %v2588_v3  ;;  %v4797_v53 = vld [vmem:[%s4895_s19 + $0xf0] ss:$8 sps:$4 sm:$0xff]  }
  0xb1   : > { %4551 = vmatprep.subr.bf16.mxu0 %v4841_v0  ;;  %v2581_v16 = vshll.u32 %v5467_v47, 16  ;;  %v2917_v26 = vrot.slane %v5467_v47, 5  ;;  %v2693_v47 = vrot.slane %v2692_v48, 4  ;;  %v1025_v19 = vsel %vm244_vm1, %v4797_v53, 0  ;;  %v3923_v53 = vld [vmem:[%s4895_s19 + $0xa8] sm:$0xe] }
  0xb2   : > { %v2593_v55 = vrot.slane %v2592_v38, 4 }
  0xb3   : > { %4410 = vmatmul.mubr.msk.bf16.vlgmr.msra.gmra.mrb[0].mxu1 %vm244_vm1, %v3836_v13  ;;  %v4089_v13 = vld [vmem:[%s4895_s19 + $0xfc] sm:$0x1]  ;;  %v2583_v46 = vrot.slane %v2581_v16, 5  ;;  %v5511_v61 = vsel %vm5062_vm7, %v4125_v44, %v2917_v26  ;;  %v4093_v16 = vld [vmem:[%s4895_s19 + $0x10c] sm:$0x1] }
  0xb4   : > { %4414 = vmatpush3.bf16.xpose.msra.mxu1 %v938_v58  ;;  %4421 = vmatprep.mubr.msk.bf16.mxu1 %vm4842_vm0, %v4841_v0  ;;  %v2703_v58 = vshll.u32 %v4090_v9, 16  ;;  %v2695_v34 = vshll.u32 %v4089_v13, 16  ;;  %v4796_v9 = vld [vmem:[%s4895_s19 + $0xd0] ss:$8 sps:$4 sm:$0xff]   ;;  %v2598_v8 = vsel %vm4921_vm4, %v2593_v55, %v2597_v63  ;;  %v2723_v38 = vshll.u32 %v4093_v16, 16 }
  0xb5   : > { %4415 = vmatprep.subr.bf16.mxu1 %v4841_v0  ;;  %v947_v3 = vsel %vm244_vm1, %v4796_v9, 0  ;;  %v2584_v13 = vsel %vm4921_vm4, %v2579_v59, %v2583_v46  ;;  %v5550_v9 = vsel %vm244_vm1, %v4798_v25, 0  ;;  %v5553_v59 = vsel %vm244_vm1, %v4799_v6, 0  ;;  %v3858_v63 = vld [vmem:[%s6138_s1 + $0x14] sm:$0xf] }
  0xb6   : > { %v2705_v31 = vrot.slane %v2703_v58, 5  ;;  %v2697_v51 = vrot.slane %v2695_v34, 5  ;;  %v2717_v58 = vshll.u32 %v4092_v37, 16  ;;  %v4086_v33 = vcombine.low %v2584_v13, %v2598_v8  ;;  %v4097_v34 = vld [vmem:[%s4895_s19 + $0x11c] sm:$0x1] }
  0xb7   : > { %v2751_v48 = vshll.u32 %v4097_v34, 16  ;;  %v5559_v26 = vld [vmem:[%s4895_s19 + $0x124] sm:$0x1] }
  0xb8   : > { %4552 = vmatpush3.bf16.xpose.msra.mxu0 %v2426_v18  ;;  %v4124_v18 = vrot.slane %v4115_v60, 9  ;;  %v2706_v49 = vor.u32 %v2705_v31, %v2702_v27  ;;  %v2728_v60 = vshrl.u32 %v4094_v20, 16  ;;  %v2765_v8 = vshll.u32 %v5559_v26, 16 }
  0xb9   : > { %4557 = vmatprep.subr.bf16.mxu0 %v4841_v0 }
  0xba   : > { %v5495_v52 = vsel %vm5062_vm7, %v4124_v18, %v2913_v22  ;;  %v2707_v30 = vrot.slane %v2706_v49, 4  ;;  %v2716_v18 = vrot.slane %v2714_v39, 4  ;;  %v2719_v22 = vrot.slane %v2717_v58, 5  ;;  %v5562_v39 = vld [vmem:[%s4895_s19 + $0xa0] sm:$0xf] }
  0xbb   : > { %v4129_v36 = vcombine.low %v5484_v32, %v5495_v52  ;;  %v2730_v23 = vrot.slane %v2728_v60, 4  ;;  %v1096_v16 = vshrl.u32 %v5562_v39, 16 }
  0xbc   : > { %4416 = vmatpush3.bf16.xpose.msra.mxu1 %v941_v62  ;;  %v4091_v62 = vld [vmem:[%s4895_s19 + $0x104] sm:$0x1]  ;;  %v2720_v41 = vor.u32 %v2719_v22, %v2716_v18  ;;  %v3924_v18 = vld [vmem:[%s4895_s19 + $0xb0] sm:$0xe]  ;;  %v1099_v22 = vshll.u32 %v5562_v39, 16 }
  0xbd   : > { %4417 = vmatprep.subr.bf16.mxu1 %v4841_v0  ;;  %v2709_v50 = vshll.u32 %v4091_v62, 16  ;;  %v4096_v62 = vld [vmem:[%s4895_s19 + $0x118] sm:$0xf] }
  0xbe   : > { %v2742_v44 = vshrl.u32 %v4096_v62, 16  ;;  %v2745_v46 = vshll.u32 %v4096_v62, 16  ;;  %v2721_v57 = vrot.slane %v2720_v41, 4  ;;  %v3926_v62 = vld [vmem:[%s4895_s19 + $0xc0] sm:$0xe] }
  0xbf   : > { %4554 = vmatmul.mubr.msk.bf16.vlgmr.msra.gmra.mrb[0].mxu0 %vm244_vm1, %v4060_v45  ;;  %v2711_v1 = vrot.slane %v2709_v50, 5  ;;  %v4095_v45 = vld [vmem:[%s4895_s19 + $0x114] sm:$0x1]  ;;  %v5621_v41 = vld [vmem:[%s4895_s19 + $0xcc] sm:$0x1] }
  0xc0   : > { %4558 = vmatpush3.bf16.xpose.msra.mxu0 %v2615_v54  ;;  %4565 = vmatprep.mubr.msk.bf16.mxu0 %vm4842_vm0, %v4841_v0  ;;  %v2731_v54 = vshll.u32 %v4094_v20, 16  ;;  %v2737_v43 = vshll.u32 %v4095_v45, 16  ;;  %v2624_v20 = vsel %vm244_vm1, %v4086_v33, 0  ;;  %v5606_v45 = vld [vmem:[%s4895_s19 + $0xbc] sm:$0x1] }
  0xc1   : > { %4559 = vmatprep.subr.bf16.mxu0 %v4841_v0  ;;  %v2712_v31 = vsel %vm4921_vm4, %v2707_v30, %v2711_v1  ;;  %v5570_v30 = vrot.slane %v2745_v46, 5  ;;  %v5572_v1 = vrot.slane %v2751_v48, 5  ;;  %v4100_v48 = vld [vmem:[%s4895_s19 + $0x128] sm:$0xf] }
  0xc2   : > { %v2733_v27 = vrot.slane %v2731_v54, 5  ;;  %v2739_v60 = vrot.slane %v2737_v43, 5  ;;  %v3922_v54 = vld [vmem:[%s4895_s19 + $0xa0] sm:$0xe] }
  0xc3   : > { %v3931_v25 = vrot.slane %v3922_v54, 9  ;;  %v5643_v54 = vrot.slane %v1096_v16, 4 }
  0xc4   : > { %4418 = vmatpush3.bf16.xpose.msra.mxu1 %v5417_v29  ;;  %v2556_v29 = vsel %vm4921_vm4, %v2551_v35, %v5436_v40  ;;  %v2698_v40 = vsel %vm4921_vm4, %v2693_v47, %v2697_v51  ;;  %v4098_v35 = vld [vmem:[%s4895_s19 + $0x120] sm:$0xf]  ;;  %v2734_v42 = vor.u32 %v2733_v27, %v2730_v23  ;;  %v2725_v51 = vrot.slane %v2723_v38, 5  ;;  %v5595_v23 = vld [vmem:[%s4895_s19 + $0xb4] sm:$0x1] }
  0xc5   : > { %4419 = vmatprep.subr.bf16.mxu1 %v4841_v0  ;;  %v4085_v21 = vcombine.low %v2556_v29, %v2570_v11  ;;  %v4105_v37 = vcombine.low %v2698_v40, %v2712_v31  ;;  %v2756_v49 = vshrl.u32 %v4098_v35, 16  ;;  %v2759_v55 = vshll.u32 %v4098_v35, 16  ;;  %v5580_v29 = vld [vmem:[%s4895_s19 + $0xa8] sm:$0xf]  ;;  %v5583_v11 = vld [vmem:[%s4895_s19 + $0xac] sm:$0x1] }
  0xc6   : > { %v2735_v58 = vrot.slane %v2734_v42, 4  ;;  %v5568_v47 = vrot.slane %v2742_v44, 4  ;;  %v3925_v40 = vld [vmem:[%s4895_s19 + $0xb8] sm:$0xe]  ;;  %v2726_v31 = vsel %vm4921_vm4, %v2721_v57, %v2725_v51  ;;  %v1505_v33 = vrot.slane %v5583_v11, 5 }
  0xc7   : > { %v2621_v50 = vsel %vm244_vm1, %v4085_v21, 0  ;;  %v5565_v56 = vsel %vm244_vm1, %v4105_v37, 0  ;;  %v5587_v13 = vrot.slane %v2759_v55, 5  ;;  %v3932_v21 = vrot.slane %v3923_v53, 9  ;;  %v5613_v35 = vld [vmem:[%s4895_s19 + $0xc4] sm:$0x1] }
  0xc8   : > { %4560 = vmatpush3.bf16.xpose.msra.mxu0 %v2618_v5  ;;  %v5574_v5 = vrot.slane %v2756_v49, 4  ;;  %v2740_v6 = vsel %vm4921_vm4, %v2735_v58, %v2739_v60  ;;  %v1110_v34 = vshrl.u32 %v5580_v29, 16  ;;  %v3933_v38 = vrot.slane %v3924_v18, 9  ;;  %v3927_v37 = vld [vmem:[%s4895_s19 + $0xc8] sm:$0xe] }
  0xc9   : > { %4561 = vmatprep.subr.bf16.mxu0 %v4841_v0  ;;  %v5625_v42 = vsel %vm5062_vm7, %v3932_v21, %v1505_v33  ;;  %v1509_v43 = vrot.slane %v5595_v23, 5  ;;  %v3934_v44 = vrot.slane %v3925_v40, 9  ;;  %v5628_v46 = vcombine.low %v2726_v31, %v2740_v6  ;;  %v3928_v51 = vld [vmem:[%s4895_s19 + $0xd0] sm:$0xe]  ;;  %v3929_v55 = vld [vmem:[%s4895_s19 + $0xd8] sm:$0xe] }
  0xca   : > { %v2748_v39 = vor.u32 %v5570_v30, %v5568_v47  ;;  %v1517_v58 = vrot.slane %v5613_v35, 5  ;;  %v3936_v60 = vrot.slane %v3927_v37, 9  ;;  %v1113_v53 = vshll.u32 %v5580_v29, 16  ;;  %v5657_v40 = vld [vmem:[%s4895_s19 + $0xd4] sm:$0x1] }
  0xcb   : > { %v5640_v57 = vsel %vm5062_vm7, %v3933_v38, %v1509_v43  ;;  %v1521_v47 = vrot.slane %v5621_v41, 5  ;;  %v2762_v30 = vor.u32 %v5587_v13, %v5574_v5  ;;  %v3937_v16 = vrot.slane %v3928_v51, 9  ;;  %v4082_v31 = vld [vmem:[%s6138_s1 + $0x44] sm:$0xf]  ;;  %v5669_v21 = vld [vmem:[%s4895_s19 + $0xdc] sm:$0x1] }
  0xcc   : > { %4420 = vmatpush3.bf16.xpose.msra.mxu1 %v947_v3  ;;  %v5577_v3 = vld [vmem:[%s4895_s19 + $0xa4] sm:$0x1]  ;;  %v1101_v6 = vrot.slane %v1099_v22, 5  ;;  %v1525_v13 = vrot.slane %v5657_v40, 5  ;;  %v3938_v33 = vrot.slane %v3929_v55, 9  ;;  %v2770_v38 = vshrl.u32 %v4100_v48, 16 }
  0xcd   : > { %4425 = vmatprep.subr.bf16.mxu1 %v4841_v0  ;;  %v1501_v27 = vrot.slane %v5577_v3, 5  ;;  %v5673_v5 = vsel %vm5062_vm7, %v3936_v60, %v1521_v47  ;;  %v3884_v37 = vld [vmem:[%s4895_s19 + $0xb8] sm:$0xf]  ;;  %v1529_v22 = vrot.slane %v5669_v21, 5  ;;  %v4800_v60 = vld [vmem:[%s4895_s19 + $0x120] ss:$8 sps:$4 sm:$0xff]  }
  0xce   : > { %v5684_v51 = vsel %vm5062_vm7, %v3937_v16, %v1525_v13  ;;  %v2767_v47 = vrot.slane %v2765_v8, 5  ;;  %v1138_v13 = vshrl.u32 %v3884_v37, 16  ;;  %v1141_v43 = vshll.u32 %v3884_v37, 16  ;;  %v4101_v8 = vld [vmem:[%s4895_s19 + $0x12c] sm:$0x1] }
  0xd0   : > { %4562 = vmatpush3.bf16.xpose.msra.mxu0 %v2621_v50  ;;  %v1513_v50 = vrot.slane %v5606_v45, 5 }
  0xd1   : > { %4563 = vmatprep.subr.bf16.mxu0 %v4841_v0 }
  0xd2   : > { %v5649_v18 = vsel %vm5062_vm7, %v3934_v44, %v1513_v50  ;;  %v1115_v44 = vrot.slane %v1113_v53, 5  ;;  %v2773_v50 = vshll.u32 %v4100_v48, 16  ;;  %v1105_v53 = vshll.u32 %v5577_v3, 16 }
  0xd3   : > { %4422 = vmatmul.mubr.msk.bf16.vlgmr.msra.gmra.mrb[0].mxu1 %vm244_vm1, %v3858_v63  ;;  %v3935_v63 = vrot.slane %v3926_v62, 9  ;;  %v1112_v62 = vrot.slane %v1110_v34, 4  ;;  %v5688_v34 = vsel %vm5062_vm7, %v3938_v33, %v1529_v22  ;;  %v1119_v48 = vshll.u32 %v5583_v11, 16  ;;  %v4103_v11 = vld [vmem:[%s4895_s19 + $0x134] sm:$0x1] }
  0xd4   : > { %4426 = vmatpush3.bf16.xpose.msra.mxu1 %v1025_v19  ;;  %4433 = vmatprep.mubr.msk.bf16.mxu1 %vm4842_vm0, %v4841_v0  ;;  %v5617_v19 = vsel %vm5062_vm7, %v3931_v25, %v1501_v27  ;;  %v4102_v25 = vld [vmem:[%s4895_s19 + $0x130] sm:$0xf]  ;;  %v1102_v33 = vor.u32 %v1101_v6, %v5643_v54  ;;  %v2772_v22 = vrot.slane %v2770_v38, 4  ;;  %v2775_v3 = vrot.slane %v2773_v50, 5 }
  0xd5   : > { %4427 = vmatprep.subr.bf16.mxu1 %v4841_v0  ;;  %v3882_v27 = vld [vmem:[%s4895_s19 + $0xb0] sm:$0xf]  ;;  %v5663_v29 = vsel %vm5062_vm7, %v3935_v63, %v1517_v58  ;;  %v2784_v63 = vshrl.u32 %v4102_v25, 16  ;;  %v2787_v55 = vshll.u32 %v4102_v25, 16  ;;  %v2749_v25 = vrot.slane %v2748_v39, 4 }
  0xd6   : > { %v1124_v58 = vshrl.u32 %v3882_v27, 16  ;;  %v1116_v26 = vor.u32 %v1115_v44, %v1112_v62  ;;  %v1034_v54 = vsel %vm244_vm1, %v4800_v60, 0  ;;  %v1107_v6 = vrot.slane %v1105_v53, 5  ;;  %v3888_v60 = vld [vmem:[%s4895_s19 + $0xc8] sm:$0xf] }
  0xd7   : > { %v2789_v39 = vrot.slane %v2787_v55, 5  ;;  %v1121_v62 = vrot.slane %v1119_v48, 5  ;;  %v2754_v38 = vsel %vm4921_vm4, %v2749_v25, %v5572_v1  ;;  %v1140_v44 = vrot.slane %v1138_v13, 4 }
  0xd8   : > { %4564 = vmatpush3.bf16.xpose.msra.mxu0 %v2624_v20  ;;  %v1143_v50 = vrot.slane %v1141_v43, 5  ;;  %v1103_v55 = vrot.slane %v1102_v33, 4  ;;  %v2776_v53 = vor.u32 %v2775_v3, %v2772_v22  ;;  %v1133_v20 = vshll.u32 %v5595_v23, 16 }
  0xd9   : > { %4569 = vmatprep.subr.bf16.mxu0 %v4841_v0  ;;  %v1166_v43 = vshrl.u32 %v3888_v60, 16 }
  0xda   : > { %v1144_v10 = vor.u32 %v1143_v50, %v1140_v44  ;;  %v1108_v13 = vsel %vm4921_vm4, %v1103_v55, %v1107_v6  ;;  %v2777_v23 = vrot.slane %v2776_v53, 4  ;;  %v1135_v3 = vrot.slane %v1133_v20, 5  ;;  %v3892_v20 = vld [vmem:[%s4895_s19 + $0xd8] sm:$0xf] }
  0xdb   : > { %v1161_v50 = vshll.u32 %v5613_v35, 16  ;;  %v3872_v55 = vld [vmem:[%s6138_s1 + $0x18] sm:$0xf]  ;;  %v1194_v53 = vshrl.u32 %v3892_v20, 16 }
  0xdc   : > { %4428 = vmatpush3.bf16.xpose.msra.mxu1 %v5550_v9  ;;  %v1127_v9 = vshll.u32 %v3882_v27, 16  ;;  %v2763_v27 = vrot.slane %v2762_v30, 4  ;;  %v1126_v30 = vrot.slane %v1124_v58, 4  ;;  %v2779_v58 = vshll.u32 %v4101_v8, 16 }
  0xdd   : > { %4429 = vmatprep.subr.bf16.mxu1 %v4841_v0 }
  0xde   : > { %v1129_v16 = vrot.slane %v1127_v9, 5  ;;  %v2768_v37 = vsel %vm4921_vm4, %v2763_v27, %v2767_v47  ;;  %v2793_v9 = vshll.u32 %v4103_v11, 16  ;;  %v1147_v47 = vshll.u32 %v5606_v45, 16 }
  0xdf   : > { %4566 = vmatmul.mubr.msk.bf16.vlgmr.msra.gmra.mrb[0].mxu0 %vm244_vm1, %v4082_v31  ;;  %v2786_v31 = vrot.slane %v2784_v63, 4  ;;  %v3886_v63 = vld [vmem:[%s4895_s19 + $0xc0] sm:$0xf]  ;;  %v4107_v49 = vcombine.low %v2754_v38, %v2768_v37  ;;  %v1169_v27 = vshll.u32 %v3888_v60, 16 }
  0xe0   : > { %4570 = vmatpush3.bf16.xpose.msra.mxu0 %v5565_v56  ;;  %4577 = vmatprep.mubr.msk.bf16.mxu0 %vm4842_vm0, %v4841_v0  ;;  %v2816_v56 = vsel %vm244_vm1, %v5628_v46, 0  ;;  %v1117_v46 = vrot.slane %v1116_v26, 4  ;;  %v1152_v1 = vshrl.u32 %v3886_v63, 16  ;;  %v1155_v25 = vshll.u32 %v3886_v63, 16 }
  0xe1   : > { %4571 = vmatprep.subr.bf16.mxu0 %v4841_v0  ;;  %v2790_v48 = vor.u32 %v2789_v39, %v2786_v31  ;;  %v2781_v26 = vrot.slane %v2779_v58, 5  ;;  %v1145_v31 = vrot.slane %v1144_v10, 4  ;;  %v1149_v39 = vrot.slane %v1147_v47, 5 }
  0xe2   : > { %v1122_v33 = vsel %vm4921_vm4, %v1117_v46, %v1121_v62  ;;  %v1154_v45 = vrot.slane %v1152_v1, 4  ;;  %v1157_v11 = vrot.slane %v1155_v25, 5  ;;  %v3890_v62 = vld [vmem:[%s4895_s19 + $0xd0] sm:$0xf]  ;;  %v2819_v38 = vsel %vm244_vm1, %v4107_v49, 0 }
  0xe3   : > { %v2791_v8 = vrot.slane %v2790_v48, 4  ;;  %v3895_v6 = vcombine.low %v1108_v13, %v1122_v33  ;;  %v2782_v37 = vsel %vm4921_vm4, %v2777_v23, %v2781_v26  ;;  %v1175_v63 = vshll.u32 %v5621_v41, 16  ;;  %v3900_v26 = vld [vmem:[%s4895_s19 + $0xf0] sm:$0xf]  ;;  %v3902_v23 = vld [vmem:[%s4895_s19 + $0xf8] sm:$0xf] }
  0xe4   : > { %4430 = vmatpush3.bf16.xpose.msra.mxu1 %v5553_v59  ;;  %v1130_v59 = vor.u32 %v1129_v16, %v1126_v30  ;;  %v2795_v16 = vrot.slane %v2793_v9, 5  ;;  %v1168_v30 = vrot.slane %v1166_v43, 4  ;;  %v1158_v10 = vor.u32 %v1157_v11, %v1154_v45 }
  0xe5   : > { %4431 = vmatprep.subr.bf16.mxu1 %v4841_v0  ;;  %v1150_v49 = vsel %vm4921_vm4, %v1145_v31, %v1149_v39  ;;  %v1180_v58 = vshrl.u32 %v3890_v62, 16  ;;  %v1183_v9 = vshll.u32 %v3890_v62, 16  ;;  %v1223_v60 = vsel %vm244_vm1, %v3895_v6, 0 }
  0xe6   : > { %v1131_v22 = vrot.slane %v1130_v59, 4  ;;  %v2796_v44 = vsel %vm4921_vm4, %v2791_v8, %v2795_v16  ;;  %v1197_v48 = vshll.u32 %v3892_v20, 16  ;;  %v1159_v59 = vrot.slane %v1158_v10, 4  ;;  %v3901_v20 = vld [vmem:[%s4895_s19 + $0xf4] sm:$0x1] }
  0xe7   : > { %v4108_v35 = vcombine.low %v2782_v37, %v2796_v44  ;;  %v1163_v1 = vrot.slane %v1161_v50, 5  ;;  %v1177_v47 = vrot.slane %v1175_v63, 5  ;;  %v1182_v43 = vrot.slane %v1180_v58, 4  ;;  %v3903_v58 = vld [vmem:[%s4895_s19 + $0xfc] sm:$0x1] }
  0xe8   : > { %4572 = vmatpush3.bf16.xpose.msra.mxu0 %v2816_v56  ;;  %v1171_v56 = vrot.slane %v1169_v27, 5  ;;  %v1185_v27 = vrot.slane %v1183_v9, 5  ;;  %v1196_v13 = vrot.slane %v1194_v53, 4  ;;  %v1199_v33 = vrot.slane %v1197_v48, 5 }
  0xe9   : > { %4573 = vmatprep.subr.bf16.mxu0 %v4841_v0  ;;  %v2822_v16 = vsel %vm244_vm1, %v4108_v35, 0  ;;  %v1203_v31 = vshll.u32 %v5669_v21, 16  ;;  %v1294_v39 = vshrl.u32 %v3900_v26, 16  ;;  %v1308_v6 = vshrl.u32 %v3902_v23, 16 }
  0xea   : > { %v1172_v46 = vor.u32 %v1171_v56, %v1168_v30  ;;  %v1186_v11 = vor.u32 %v1185_v27, %v1182_v43  ;;  %v1200_v30 = vor.u32 %v1199_v33, %v1196_v13  ;;  %v1297_v56 = vshll.u32 %v3900_v26, 16 }
  0xeb   : > { %v1311_v62 = vshll.u32 %v3902_v23, 16  ;;  %v1205_v21 = vrot.slane %v1203_v31, 5  ;;  %v1310_v63 = vrot.slane %v1308_v6, 4  ;;  %v1303_v48 = vshll.u32 %v3901_v20, 16  ;;  %v3905_v23 = vld [vmem:[%s4895_s19 + $0x104] sm:$0x1] }
  0xec   : > { %4432 = vmatpush3.bf16.xpose.msra.mxu1 %v1034_v54  ;;  %v1136_v54 = vsel %vm4921_vm4, %v1131_v22, %v1135_v3  ;;  %v1173_v25 = vrot.slane %v1172_v46, 4  ;;  %v1164_v22 = vsel %vm4921_vm4, %v1159_v59, %v1163_v1  ;;  %v1189_v3 = vshll.u32 %v5657_v40, 16  ;;  %v4104_v40 = vld [vmem:[%s6138_s1 + $0x48] sm:$0xf]  ;;  %v3910_v31 = vld [vmem:[%s4895_s19 + $0x118] sm:$0xf] }
  0xed   : > { %4437 = vmatprep.subr.bf16.mxu1 %v4841_v0  ;;  %v3896_v41 = vcombine.low %v1136_v54, %v1150_v49  ;;  %v1187_v37 = vrot.slane %v1186_v11, 4  ;;  %v1296_v54 = vrot.slane %v1294_v39, 4  ;;  %v1201_v10 = vrot.slane %v1200_v30, 4  ;;  %v3904_v49 = vld [vmem:[%s4895_s19 + $0x100] sm:$0xf] }
  0xee   : > { %v1178_v45 = vsel %vm4921_vm4, %v1173_v25, %v1177_v47  ;;  %v1191_v44 = vrot.slane %v1189_v3, 5  ;;  %v1299_v50 = vrot.slane %v1297_v56, 5  ;;  %v2939_v46 = vsel %vm244_vm1, %v4127_v24, 0  ;;  %v3907_v11 = vld [vmem:[%s4895_s19 + $0x10c] sm:$0x1] }
  0xef   : > { %v1226_v8 = vsel %vm244_vm1, %v3896_v41, 0  ;;  %v1322_v35 = vshrl.u32 %v3904_v49, 16  ;;  %v1325_v41 = vshll.u32 %v3904_v49, 16  ;;  %v1206_v59 = vsel %vm4921_vm4, %v1201_v10, %v1205_v21 }
  0xf0   : > { %4574 = vmatpush3.bf16.xpose.msra.mxu0 %v2819_v38  ;;  %v3897_v38 = vcombine.low %v1164_v22, %v1178_v45  ;;  %v1192_v53 = vsel %vm4921_vm4, %v1187_v37, %v1191_v44  ;;  %v1300_v1 = vor.u32 %v1299_v50, %v1296_v54  ;;  %v1317_v17 = vshll.u32 %v3903_v58, 16  ;;  %v3908_v45 = vld [vmem:[%s4895_s19 + $0x110] sm:$0xf]  ;;  %v3909_v54 = vld [vmem:[%s4895_s19 + $0x114] sm:$0x1] }
  0xf1   : > { %4575 = vmatprep.subr.bf16.mxu0 %v4841_v0  ;;  %v3898_v47 = vcombine.low %v1192_v53, %v1206_v59  ;;  %v1324_v43 = vrot.slane %v1322_v35, 4  ;;  %v1327_v27 = vrot.slane %v1325_v41, 5  ;;  %v1305_v33 = vrot.slane %v1303_v48, 5  ;;  %v3911_v50 = vld [vmem:[%s4895_s19 + $0x11c] sm:$0x1] }
  0xf2   : > { %v1229_v9 = vsel %vm244_vm1, %v3897_v38, 0  ;;  %v1301_v13 = vrot.slane %v1300_v1, 4  ;;  %v1331_v56 = vshll.u32 %v3905_v23, 16  ;;  %v1350_v15 = vshrl.u32 %v3908_v45, 16  ;;  %v3914_v53 = vld [vmem:[%s4895_s19 + $0x128] sm:$0xf] }
  0xf3   : > { %4434 = vmatmul.mubr.msk.bf16.vlgmr.msra.gmra.mrb[0].mxu1 %vm244_vm1, %v3872_v55  ;;  %v1313_v55 = vrot.slane %v1311_v62, 5  ;;  %v1232_v39 = vsel %vm244_vm1, %v3898_v47, 0  ;;  %v1328_v30 = vor.u32 %v1327_v27, %v1324_v43  ;;  %v1364_v38 = vshrl.u32 %v3910_v31, 16  ;;  %v3894_v48 = vld [vmem:[%s6138_s1 + $0x1c] sm:$0xf] }
  0xf4   : > { %4438 = vmatpush3.bf16.xpose.msra.mxu1 %v1223_v60  ;;  %4445 = vmatprep.mubr.msk.bf16.mxu1 %vm4842_vm0, %v4841_v0  ;;  %v3906_v60 = vld [vmem:[%s4895_s19 + $0x108] sm:$0xf]  ;;  %v1306_v6 = vsel %vm4921_vm4, %v1301_v13, %v1305_v33  ;;  %v1367_v37 = vshll.u32 %v3910_v31, 16  ;;  %v1333_v20 = vrot.slane %v1331_v56, 5  ;;  %v2945_v10 = vsel %vm244_vm1, %v4129_v36, 0 }
  0xf5   : > { %4439 = vmatprep.subr.bf16.mxu1 %v4841_v0  ;;  %v1314_v12 = vor.u32 %v1313_v55, %v1310_v63  ;;  %v1336_v24 = vshrl.u32 %v3906_v60, 16  ;;  %v1339_v25 = vshll.u32 %v3906_v60, 16  ;;  %v1329_v21 = vrot.slane %v1328_v30, 4  ;;  %v3912_v60 = vld [vmem:[%s4895_s19 + $0x120] sm:$0xf] }
  0xf6   : > { %v1352_v63 = vrot.slane %v1350_v15, 4  ;;  %v1366_v58 = vrot.slane %v1364_v38, 4  ;;  %v1359_v52 = vshll.u32 %v3909_v54, 16  ;;  %v1373_v41 = vshll.u32 %v3911_v50, 16  ;;  %v5825_v30 = vld [vmem:[%s4895_s19 + $0x14] sm:$0x1] }
  0xf7   : > { %v1315_v26 = vrot.slane %v1314_v12, 4  ;;  %v1338_v22 = vrot.slane %v1336_v24, 4  ;;  %v1341_v3 = vrot.slane %v1339_v25, 5  ;;  %v1334_v32 = vsel %vm4921_vm4, %v1329_v21, %v1333_v20  ;;  %v4118_v54 = vld [vmem:[%s6138_s1 + $0x4c] sm:$0xf] }
  0xf8   : > { %4576 = vmatpush3.bf16.xpose.msra.mxu0 %v2822_v16  ;;  %v1319_v16 = vrot.slane %v1317_v17, 5  ;;  %v1378_v59 = vshrl.u32 %v3912_v60, 16  ;;  %v1381_v1 = vshll.u32 %v3912_v60, 16  ;;  %v1392_v24 = vshrl.u32 %v3914_v53, 16  ;;  %v4802_v60 = vld [vmem:[%s4895_s19 + $0x20] ss:$8 sps:$4 sm:$0xff]  }
  0xf9   : > { %4581 = vmatprep.subr.bf16.mxu0 %v4841_v0  ;;  %v1342_v62 = vor.u32 %v1341_v3, %v1338_v22  ;;  %v1395_v25 = vshll.u32 %v3914_v53, 16  ;;  %v6145_v47 = vcombine.low %v5511_v61, %v5516_v2  ;;  %v1361_v27 = vrot.slane %v1359_v52, 5  ;;  %v3915_v22 = vld [vmem:[%s4895_s19 + $0x12c] sm:$0x1] }
  0xfa   : > { %v1320_v7 = vsel %vm4921_vm4, %v1315_v26, %v1319_v16  ;;  %v1375_v26 = vrot.slane %v1373_v41, 5  ;;  %v3913_v16 = vld [vmem:[%s4895_s19 + $0x124] sm:$0x1]  ;;  %v1380_v23 = vrot.slane %v1378_v59, 4  ;;  %v1383_v3 = vrot.slane %v1381_v1, 5 }
  0xfb   : > { %v3917_v44 = vcombine.low %v1306_v6, %v1320_v7  ;;  %v1343_v49 = vrot.slane %v1342_v62, 4  ;;  %v2948_v43 = vsel %vm244_vm1, %v6145_v47, 0  ;;  %v1394_v61 = vrot.slane %v1392_v24, 4  ;;  %v4204_v62 = vld [vmem:[%s4895_s19 + $0x10] sm:$0xe] }
  0xfc   : > { %4440 = vmatpush3.bf16.xpose.msra.mxu1 %v1226_v8  ;;  %v2942_v8 = vsel %vm244_vm1, %v4128_v14, 0  ;;  %v1353_v14 = vshll.u32 %v3908_v45, 16  ;;  %v1397_v2 = vrot.slane %v1395_v25, 5  ;;  %v4801_v45 = vld [vmem:[%s4895_s19 + $0x10] ss:$8 sps:$4 sm:$0xff]   ;;  %v1387_v31 = vshll.u32 %v3913_v16, 16 }
  0xfd   : > { %4441 = vmatprep.subr.bf16.mxu1 %v4841_v0  ;;  %v1421_v35 = vsel %vm244_vm1, %v3917_v44, 0  ;;  %v1384_v7 = vor.u32 %v1383_v3, %v1380_v23  ;;  %v4213_v38 = vrot.slane %v4204_v62, 9  ;;  %v3026_v20 = vsel %vm244_vm1, %v4801_v45, 0  ;;  %v4207_v41 = vld [vmem:[%s4895_s19 + $0x28] sm:$0xe] }
  0xfe   : > { %v1355_v55 = vrot.slane %v1353_v14, 5  ;;  %v1398_v15 = vor.u32 %v1397_v2, %v1394_v61  ;;  %v5833_v14 = vld [vmem:[%s4895_s19 + $0x1c] sm:$0x1]  ;;  %v1389_v50 = vrot.slane %v1387_v31, 5  ;;  %v3916_v16 = vld [vmem:[%s6138_s1 + $0x20] sm:$0xf]  ;;  %v6146_v23 = vcombine.low %v5617_v19, %v5625_v42 }
  0xff   : > { %4578 = vmatmul.mubr.msk.bf16.vlgmr.msra.gmra.mrb[0].mxu0 %vm244_vm1, %v4104_v40  ;;  %v1345_v40 = vshll.u32 %v3907_v11, 16  ;;  %v3593_v21 = vrot.slane %v5833_v14, 5  ;;  %v6147_v19 = vcombine.low %v5640_v57, %v5649_v18  ;;  %v4805_v61 = vld [vmem:[%s4895_s19 + $0x60] ss:$8 sps:$4 sm:$0xff]   ;;  %v4140_v2 = vld [vmem:[%s6138_s1 + $0x50] sm:$0xf]  ;;  %v6148_v18 = vcombine.low %v5663_v29, %v5673_v5 }
 0x100   : > { %4582 = vmatpush3.bf16.xpose.msra.mxu0 %v2939_v46  ;;  %4589 = vmatprep.mubr.msk.bf16.mxu0 %vm4842_vm0, %v4841_v0  ;;  %v1356_v36 = vor.u32 %v1355_v55, %v1352_v63  ;;  %v3113_v45 = vsel %vm244_vm1, %v4805_v61, 0  ;;  %v3687_v57 = vld [vmem:[%s6139_s2] sm:$0xff]  ;;  %v4160_v31 = vld [vmem:[%s4895_s19 + $0x10] sm:$0xf] }
 0x101   : > { %4583 = vmatprep.subr.bf16.mxu0 %v4841_v0  ;;  %v1347_v46 = vrot.slane %v1345_v40, 5  ;;  %v4205_v40 = vld [vmem:[%s4895_s19 + $0x18] sm:$0xe]  ;;  %v1550_v42 = vsel %vm244_vm1, %v6147_v19, 0  ;;  %v3187_v29 = vshll.u32 %v4160_v31, 16 }
 0x102   : > { %v1357_v33 = vrot.slane %v1356_v36, 4  ;;  %v4214_v44 = vrot.slane %v4205_v40, 9  ;;  %v4206_v36 = vld [vmem:[%s4895_s19 + $0x20] sm:$0xe]  ;;  %v4844_v40 = vmov 1  }
 0x103   : > { %v1348_v12 = vsel %vm4921_vm4, %v1343_v49, %v1347_v46  ;;  %v1385_v49 = vrot.slane %v1384_v7, 4  ;;  %v1399_v46 = vrot.slane %v1398_v15, 4  ;;  %v3184_v7 = vshrl.u32 %v4160_v31, 16 }
 0x104   : > { %4442 = vmatpush3.bf16.xpose.msra.mxu1 %v1229_v9  ;;  %v1369_v9 = vrot.slane %v1367_v37, 5  ;;  %v3918_v13 = vcombine.low %v1334_v32, %v1348_v12  ;;  %v1362_v56 = vsel %vm4921_vm4, %v1357_v33, %v1361_v27  ;;  %v3589_v37 = vrot.slane %v5825_v30, 5  ;;  %v4803_v33 = vld [vmem:[%s4895_s19 + $0x30] ss:$8 sps:$4 sm:$0xff]  }
 0x105   : > { %4443 = vmatprep.subr.bf16.mxu1 %v4841_v0  ;;  %v5850_v55 = vsel %vm5062_vm7, %v4214_v44, %v3593_v21  ;;  %v1390_v32 = vsel %vm4921_vm4, %v1385_v49, %v1389_v50  ;;  %v4215_v12 = vrot.slane %v4206_v36, 9  ;;  %v3189_v21 = vrot.slane %v3187_v29, 5  ;;  %v4164_v50 = vld [vmem:[%s4895_s19 + $0x20] sm:$0xf]  ;;  %v4166_v49 = vld [vmem:[%s4895_s19 + $0x28] sm:$0xf] }
 0x106   : > { %v1370_v17 = vor.u32 %v1369_v9, %v1366_v58  ;;  %v1424_v11 = vsel %vm244_vm1, %v3918_v13, 0  ;;  %v5846_v63 = vsel %vm5062_vm7, %v4213_v38, %v3589_v37  ;;  %v3186_v38 = vrot.slane %v3184_v7, 4 }
 0x107   : > { %v4221_v9 = vcombine.low %v5846_v63, %v5850_v55  ;;  %v6149_v37 = vcombine.low %v5684_v51, %v5688_v34  ;;  %v3226_v36 = vshrl.u32 %v4166_v49, 16 }
 0x108   : > { %4584 = vmatpush3.bf16.xpose.msra.mxu0 %v2942_v8  ;;  %v1371_v8 = vrot.slane %v1370_v17, 4  ;;  %v4216_v17 = vrot.slane %v4207_v41, 9  ;;  %v3190_v51 = vor.u32 %v3189_v21, %v3186_v38  ;;  %v3229_v41 = vshll.u32 %v4166_v49, 16 }
 0x109   : > { %4585 = vmatprep.subr.bf16.mxu0 %v4841_v0  ;;  %v1556_v44 = vsel %vm244_vm1, %v6149_v37, 0 }
 0x10a   : > { %v1376_v6 = vsel %vm4921_vm4, %v1371_v8, %v1375_v26  ;;  %v3032_v26 = vsel %vm244_vm1, %v4803_v33, 0  ;;  %v1547_v8 = vsel %vm244_vm1, %v6146_v23, 0  ;;  %v3228_v33 = vrot.slane %v3226_v36, 4  ;;  %v4170_v23 = vld [vmem:[%s4895_s19 + $0x38] sm:$0xf] }
 0x10c   : > { %4444 = vmatpush3.bf16.xpose.msra.mxu1 %v1232_v39  ;;  %v1401_v39 = vshll.u32 %v3915_v22, 16  ;;  %v4804_v22 = vld [vmem:[%s4895_s19 + $0x40] ss:$8 sps:$4 sm:$0xff]  }
 0x10d   : > { %4449 = vmatprep.subr.bf16.mxu1 %v4841_v0  ;;  %v3035_v3 = vsel %vm244_vm1, %v4804_v22, 0  ;;  %v4810_v22 = vld [vmem:[%s4895_s19 + $0x18] ss:$8 sps:$4 sm:$0xff]  }
 0x10e   : > { %v1403_v58 = vrot.slane %v1401_v39, 5  ;;  %v4806_v39 = vld [vmem:[%s4895_s19 + $0x70] ss:$8 sps:$4 sm:$0xff]  }
 0x10f   : > { %v3116_v62 = vsel %vm244_vm1, %v4806_v39, 0  ;;  %v4172_v39 = vld [vmem:[%s4895_s19 + $0x40] sm:$0xf] }
 0x110   : > { %4586 = vmatpush3.bf16.xpose.msra.mxu0 %v2945_v10  ;;  %v3919_v10 = vcombine.low %v1362_v56, %v1376_v6  ;;  %v1404_v52 = vsel %vm4921_vm4, %v1399_v46, %v1403_v58  ;;  %v4162_v56 = vld [vmem:[%s4895_s19 + $0x18] sm:$0xf]  ;;  %v4843_v6 = vmov 0   ;;  %v4808_v46 = vld [vmem:[%s4895_s19 + $0x8] ss:$8 sps:$4 sm:$0xff]   ;;  %v3193_v58 = vshll.u32 %v5825_v30, 16 }
 0x111   : > { %4587 = vmatprep.subr.bf16.mxu0 %v4841_v0  ;;  %v3920_v24 = vcombine.low %v1390_v32, %v1404_v52  ;;  %4775 = vset.pattern.permute.xlu0 %v4843_v6  ;;  %v3198_v5 = vshrl.u32 %v4162_v56, 16  ;;  %v3201_v15 = vshll.u32 %v4162_v56, 16  ;;  %v3215_v32 = vshll.u32 %v4164_v50, 16  ;;  %v4174_v56 = vld [vmem:[%s4895_s19 + $0x48] sm:$0xf] }
 0x112   : > { %v1427_v53 = vsel %vm244_vm1, %v3919_v10, 0  ;;  %3690 = vperm.xlu0 %4775, %v3687_v57   ;;  %v4807_v10 = vld [vmem:[%s4895_s19 + $0x80] ss:$8 sps:$4 sm:$0xff]   ;;  %v1634_v30 = vsel %vm244_vm1, %v4808_v46, 0  ;;  %v3268_v21 = vshrl.u32 %v4172_v39, 16 }
 0x113   : > { %4446 = vmatmul.mubr.msk.bf16.vlgmr.msra.gmra.mrb[0].mxu1 %vm244_vm1, %v3894_v48  ;;  %v5860_v48 = vld [vmem:[%s4895_s19 + $0x24] sm:$0x1]  ;;  %v1430_v13 = vsel %vm244_vm1, %v3920_v24, 0  ;;  %v3119_v52 = vsel %vm244_vm1, %v4807_v10, 0  ;;  %v3285_v10 = vshll.u32 %v4174_v56, 16 }
 0x114   : > { %4450 = vmatpush3.bf16.xpose.msra.mxu1 %v1421_v35  ;;  %4457 = vmatprep.mubr.msk.bf16.mxu1 %vm4842_vm0, %v4841_v0  ;;  %v5863_v35 = vld [vmem:[%s4895_s19 + $0x2c] sm:$0x1]  ;;  %v3597_v59 = vrot.slane %v5860_v48, 5  ;;  %v4811_v46 = vld [vmem:[%s4895_s19 + $0x28] ss:$8 sps:$4 sm:$0xff]  }
 0x115   : > { %4451 = vmatprep.subr.bf16.mxu1 %v4841_v0  ;;  %v3601_v1 = vrot.slane %v5863_v35, 5  ;;  %v3235_v19 = vshll.u32 %v5863_v35, 16  ;;  %v1637_v35 = vsel %vm244_vm1, %v4810_v22, 0 }
 0x116   : > { %v5877_v25 = vsel %vm5062_vm7, %v4215_v12, %v3597_v59  ;;  %4776 = vset.pattern.permute.xlu0 %v4844_v40  ;;  %v3930_v59 = vld [vmem:[%s6138_s1 + $0x24] sm:$0xf] }
 0x117   : > { %v5881_v47 = vsel %vm5062_vm7, %v4216_v17, %v3601_v1  ;;  %3695 = vperm.xlu0 %4776, %v3687_v57   ;;  %v4809_v1 = vld [vmem:[%s4895_s19 + $0x90] ss:$8 sps:$4 sm:$0xff]   ;;  %v3191_v17 = vrot.slane %v3190_v51, 4  ;;  %v3237_v29 = vrot.slane %v3235_v19, 5 }
 0x118   : > { %4588 = vmatpush3.bf16.xpose.msra.mxu0 %v2948_v43  ;;  %v3029_v43 = vsel %vm244_vm1, %v4802_v60, 0  ;;  %v4222_v27 = vcombine.low %v5877_v25, %v5881_v47  ;;  %v3207_v60 = vshll.u32 %v5833_v14, 16  ;;  %v3195_v14 = vrot.slane %v3193_v58, 5 }
 0x119   : > { %4593 = vmatprep.subr.bf16.mxu0 %v4841_v0 }
 0x11a   : > { %v3209_v12 = vrot.slane %v3207_v60, 5  ;;  %v3638_v63 = vsel %vm244_vm1, %v4222_v27, 0 }
 0x11c   : > { %4452 = vmatpush3.bf16.xpose.msra.mxu1 %v1424_v11  ;;  %v1553_v11 = vsel %vm244_vm1, %v6148_v18, 0 }
 0x11d   : > { %4453 = vmatprep.subr.bf16.mxu1 %v4841_v0 }
 0x11f   : > { %4590 = vmatmul.mubr.msk.bf16.vlgmr.msra.gmra.mrb[0].mxu0 %vm244_vm1, %v4118_v54  ;;  %v3203_v54 = vrot.slane %v3201_v15, 5 }
 0x120   : > { %4594 = vmatpush3.bf16.xpose.msra.mxu0 %v3026_v20  ;;  %4601 = vmatprep.mubr.msk.bf16.mxu0 %vm4842_vm0, %v4841_v0  ;;  %v3200_v20 = vrot.slane %v3198_v5, 4 }
 0x121   : > { %4595 = vmatprep.subr.bf16.mxu0 %v4841_v0 }
 0x122   : > { %v3204_v34 = vor.u32 %v3203_v54, %v3200_v20  ;;  %v3271_v20 = vshll.u32 %v4172_v39, 16  ;;  %v3282_v54 = vshrl.u32 %v4174_v56, 16 }
 0x124   : > { %4454 = vmatpush3.bf16.xpose.msra.mxu1 %v1427_v53  ;;  %v3212_v53 = vshrl.u32 %v4164_v50, 16  ;;  %v3205_v24 = vrot.slane %v3204_v34, 4  ;;  %v4154_v50 = vld [vmem:[%s6138_s1 + $0x54] sm:$0xf]  ;;  %v3273_v36 = vrot.slane %v3271_v20, 5 }
 0x125   : > { %4455 = vmatprep.subr.bf16.mxu1 %v4841_v0 }
 0x126   : > { %v3210_v61 = vsel %vm4921_vm4, %v3205_v24, %v3209_v12  ;;  %v4184_v24 = vld [vmem:[%s4895_s19 + $0x68] sm:$0xf] }
 0x128   : > { %4596 = vmatpush3.bf16.xpose.msra.mxu0 %v3029_v43  ;;  %v3214_v43 = vrot.slane %v3212_v53, 4 }
 0x129   : > { %4597 = vmatprep.subr.bf16.mxu0 %v4841_v0 }
 0x12c   : > { %4456 = vmatpush3.bf16.xpose.msra.mxu1 %v1430_v13  ;;  %v3217_v13 = vrot.slane %v3215_v32, 5 }
 0x12d   : > { %4461 = vmatprep.subr.bf16.mxu1 %v4841_v0 }
 0x130   : > { %4598 = vmatpush3.bf16.xpose.msra.mxu0 %v3032_v26  ;;  %v3231_v26 = vrot.slane %v3229_v41, 5  ;;  %v3284_v41 = vrot.slane %v3282_v54, 4 }
 0x131   : > { %4599 = vmatprep.subr.bf16.mxu0 %v4841_v0 }
 0x132   : > { %v3232_v57 = vor.u32 %v3231_v26, %v3228_v33 }
 0x133   : > { %4458 = vmatmul.mubr.msk.bf16.vlgmr.msra.gmra.mrb[0].mxu1 %vm244_vm1, %v3916_v16  ;;  %v4168_v16 = vld [vmem:[%s4895_s19 + $0x30] sm:$0xf] }
 0x134   : > { %4462 = vmatpush3.bf16.xpose.msra.mxu1 %v1547_v8  ;;  %4469 = vmatprep.mubr.msk.bf16.mxu1 %vm4842_vm0, %v4841_v0  ;;  %v3122_v8 = vsel %vm244_vm1, %v4809_v1, 0  ;;  %v3243_v18 = vshll.u32 %v4168_v16, 16  ;;  %v3233_v15 = vrot.slane %v3232_v57, 4  ;;  %v5992_v1 = vld [vmem:[%s4895_s19 + $0x4c] sm:$0x1] }
 0x135   : > { %4463 = vmatprep.subr.bf16.mxu1 %v4841_v0  ;;  %v3291_v22 = vshll.u32 %v5992_v1, 16  ;;  %v3617_v25 = vrot.slane %v5992_v1, 5 }
 0x136   : > { %v3245_v40 = vrot.slane %v3243_v18, 5  ;;  %v3238_v51 = vsel %vm4921_vm4, %v3233_v15, %v3237_v29  ;;  %v4185_v15 = vld [vmem:[%s4895_s19 + $0x6c] sm:$0x1] }
 0x138   : > { %4600 = vmatpush3.bf16.xpose.msra.mxu0 %v3035_v3  ;;  %v3221_v3 = vshll.u32 %v5860_v48, 16  ;;  %v3257_v48 = vshll.u32 %v4170_v23, 16 }
 0x139   : > { %4605 = vmatprep.subr.bf16.mxu0 %v4841_v0 }
 0x13a   : > { %v3223_v31 = vrot.slane %v3221_v3, 5  ;;  %v3259_v37 = vrot.slane %v3257_v48, 5 }
 0x13c   : > { %4464 = vmatpush3.bf16.xpose.msra.mxu1 %v1550_v42  ;;  %v3196_v42 = vsel %vm4921_vm4, %v3191_v17, %v3195_v14  ;;  %v1640_v14 = vsel %vm244_vm1, %v4811_v46, 0  ;;  %v4182_v17 = vld [vmem:[%s4895_s19 + $0x60] sm:$0xf]  ;;  %v3405_v46 = vshll.u32 %v4185_v15, 16 }
 0x13d   : > { %4465 = vmatprep.subr.bf16.mxu1 %v4841_v0  ;;  %v4177_v6 = vcombine.low %v3196_v42, %v3210_v61  ;;  %v3382_v3 = vshrl.u32 %v4182_v17, 16  ;;  %v3385_v19 = vshll.u32 %v4182_v17, 16  ;;  %v3396_v42 = vshrl.u32 %v4184_v24, 16 }
 0x13e   : > { %v3399_v61 = vshll.u32 %v4184_v24, 16 }
 0x13f   : > { %4602 = vmatmul.mubr.msk.bf16.vlgmr.msra.gmra.mrb[0].mxu0 %vm244_vm1, %v4140_v2  ;;  %v3218_v2 = vor.u32 %v3217_v13, %v3214_v43  ;;  %v3311_v49 = vsel %vm244_vm1, %v4177_v6, 0  ;;  %v3384_v39 = vrot.slane %v3382_v3, 4  ;;  %v3387_v56 = vrot.slane %v3385_v19, 5 }
 0x140   : > { %4606 = vmatpush3.bf16.xpose.msra.mxu0 %v3113_v45  ;;  %4613 = vmatprep.mubr.msk.bf16.mxu0 %vm4842_vm0, %v4841_v0  ;;  %v3240_v45 = vshrl.u32 %v4168_v16, 16  ;;  %v3398_v6 = vrot.slane %v3396_v42, 4 }
 0x141   : > { %4607 = vmatprep.subr.bf16.mxu0 %v4841_v0  ;;  %v3219_v7 = vrot.slane %v3218_v2, 4  ;;  %v4812_v2 = vld [vmem:[%s4895_s19 + $0x38] ss:$8 sps:$4 sm:$0xff]  }
 0x142   : > { %v3242_v5 = vrot.slane %v3240_v45, 4  ;;  %v1643_v29 = vsel %vm244_vm1, %v4812_v2, 0 }
 0x143   : > { %v3224_v58 = vsel %vm4921_vm4, %v3219_v7, %v3223_v31  ;;  %v3293_v31 = vrot.slane %v3291_v22, 5  ;;  %v3401_v7 = vrot.slane %v3399_v61, 5  ;;  %v4814_v22 = vld [vmem:[%s4895_s19 + $0x68] ss:$8 sps:$4 sm:$0xff]  }
 0x144   : > { %4466 = vmatpush3.bf16.xpose.msra.mxu1 %v1553_v11  ;;  %v3254_v11 = vshrl.u32 %v4170_v23, 16  ;;  %v3246_v34 = vor.u32 %v3245_v40, %v3242_v5  ;;  %v4178_v43 = vcombine.low %v3224_v58, %v3238_v51  ;;  %v4183_v5 = vld [vmem:[%s4895_s19 + $0x64] sm:$0x1] }
 0x145   : > { %4467 = vmatprep.subr.bf16.mxu1 %v4841_v0 }
 0x146   : > { %v3256_v38 = vrot.slane %v3254_v11, 4  ;;  %v3247_v13 = vrot.slane %v3246_v34, 4  ;;  %v3314_v45 = vsel %vm244_vm1, %v4178_v43, 0 }
 0x148   : > { %4608 = vmatpush3.bf16.xpose.msra.mxu0 %v3116_v62  ;;  %v5970_v62 = vld [vmem:[%s4895_s19 + $0x34] sm:$0x1]  ;;  %v3260_v53 = vor.u32 %v3259_v37, %v3256_v38  ;;  %v4186_v38 = vld [vmem:[%s4895_s19 + $0x70] sm:$0xf]  ;;  %v4188_v37 = vld [vmem:[%s4895_s19 + $0x78] sm:$0xf] }
 0x149   : > { %4609 = vmatprep.subr.bf16.mxu0 %v4841_v0  ;;  %v3249_v60 = vshll.u32 %v5970_v62, 16  ;;  %v3410_v58 = vshrl.u32 %v4186_v38, 16  ;;  %v3424_v51 = vshrl.u32 %v4188_v37, 16  ;;  %v3427_v34 = vshll.u32 %v4188_v37, 16  ;;  %v4193_v37 = vld [vmem:[%s4895_s19 + $0x8c] sm:$0x1] }
 0x14a   : > { %v3261_v33 = vrot.slane %v3260_v53, 4 }
 0x14b   : > { %v3251_v12 = vrot.slane %v3249_v60, 5  ;;  %v3413_v60 = vshll.u32 %v4186_v38, 16  ;;  %v3412_v17 = vrot.slane %v3410_v58, 4  ;;  %v3426_v43 = vrot.slane %v3424_v51, 4  ;;  %v4191_v38 = vld [vmem:[%s4895_s19 + $0x84] sm:$0x1] }
 0x14c   : > { %4468 = vmatpush3.bf16.xpose.msra.mxu1 %v1556_v44  ;;  %v5973_v44 = vld [vmem:[%s4895_s19 + $0x3c] sm:$0x1] }
 0x14d   : > { %4473 = vmatprep.subr.bf16.mxu1 %v4841_v0  ;;  %v3263_v32 = vshll.u32 %v5973_v44, 16  ;;  %v3252_v57 = vsel %vm4921_vm4, %v3247_v13, %v3251_v12  ;;  %v3407_v12 = vrot.slane %v3405_v46, 5  ;;  %v3415_v24 = vrot.slane %v3413_v60, 5 }
 0x14e   : > { %v3429_v13 = vrot.slane %v3427_v34, 5  ;;  %v3447_v60 = vshll.u32 %v4191_v38, 16  ;;  %v3461_v34 = vshll.u32 %v4193_v37, 16  ;;  %v4209_v38 = vld [vmem:[%s4895_s19 + $0x38] sm:$0xe] }
 0x14f   : > { %v3265_v26 = vrot.slane %v3263_v32, 5  ;;  %v3416_v42 = vor.u32 %v3415_v24, %v3412_v17 }
 0x150   : > { %4610 = vmatpush3.bf16.xpose.msra.mxu0 %v3119_v52  ;;  %v3270_v52 = vrot.slane %v3268_v21, 4  ;;  %v4813_v21 = vld [vmem:[%s4895_s19 + $0x58] ss:$8 sps:$4 sm:$0xff]   ;;  %v3430_v2 = vor.u32 %v3429_v13, %v3426_v43  ;;  %v3463_v24 = vrot.slane %v3461_v34, 5 }
 0x151   : > { %4611 = vmatprep.subr.bf16.mxu0 %v4841_v0  ;;  %v3266_v18 = vsel %vm4921_vm4, %v3261_v33, %v3265_v26  ;;  %v1721_v32 = vsel %vm244_vm1, %v4813_v21, 0  ;;  %v4187_v33 = vld [vmem:[%s4895_s19 + $0x74] sm:$0x1]  ;;  %v4189_v26 = vld [vmem:[%s4895_s19 + $0x7c] sm:$0x1] }
 0x152   : > { %v3274_v16 = vor.u32 %v3273_v36, %v3270_v52  ;;  %v4179_v40 = vcombine.low %v3252_v57, %v3266_v18  ;;  %v3952_v36 = vld [vmem:[%s6138_s1 + $0x28] sm:$0xf]  ;;  %v3419_v61 = vshll.u32 %v4187_v33, 16  ;;  %v4194_v21 = vld [vmem:[%s4895_s19 + $0x90] sm:$0xf] }
 0x153   : > { %4470 = vmatmul.mubr.msk.bf16.vlgmr.msra.gmra.mrb[0].mxu1 %vm244_vm1, %v3930_v59  ;;  %v3287_v59 = vrot.slane %v3285_v10, 5  ;;  %v3388_v10 = vor.u32 %v3387_v56, %v3384_v39  ;;  %v3417_v39 = vrot.slane %v3416_v42, 4 }
 0x154   : > { %4474 = vmatpush3.bf16.xpose.msra.mxu1 %v1634_v30  ;;  %4481 = vmatprep.mubr.msk.bf16.mxu1 %vm4842_vm0, %v4841_v0  ;;  %v5989_v30 = vld [vmem:[%s4895_s19 + $0x44] sm:$0x1]  ;;  %v3275_v11 = vrot.slane %v3274_v16, 4  ;;  %v3317_v53 = vsel %vm244_vm1, %v4179_v40, 0  ;;  %v4190_v16 = vld [vmem:[%s4895_s19 + $0x80] sm:$0xf] }
 0x155   : > { %4475 = vmatprep.subr.bf16.mxu1 %v4841_v0  ;;  %v3277_v23 = vshll.u32 %v5989_v30, 16  ;;  %v3438_v57 = vshrl.u32 %v4190_v16, 16  ;;  %v3441_v18 = vshll.u32 %v4190_v16, 16  ;;  %v3421_v56 = vrot.slane %v3419_v61, 5  ;;  %v4195_v16 = vld [vmem:[%s4895_s19 + $0x94] sm:$0x1] }
 0x156   : > { %v3475_v61 = vshll.u32 %v4195_v16, 16 }
 0x157   : > { %v3279_v48 = vrot.slane %v3277_v23, 5  ;;  %v4192_v23 = vld [vmem:[%s4895_s19 + $0x88] sm:$0xf] }
 0x158   : > { %4612 = vmatpush3.bf16.xpose.msra.mxu0 %v3122_v8  ;;  %v3288_v8 = vor.u32 %v3287_v59, %v3284_v41  ;;  %v3389_v41 = vrot.slane %v3388_v10, 4 }
 0x159   : > { %4617 = vmatprep.subr.bf16.mxu0 %v4841_v0  ;;  %v3280_v20 = vsel %vm4921_vm4, %v3275_v11, %v3279_v48  ;;  %v3452_v11 = vshrl.u32 %v4192_v23, 16  ;;  %v3455_v48 = vshll.u32 %v4192_v23, 16  ;;  %v4197_v23 = vld [vmem:[%s4895_s19 + $0x9c] sm:$0x1] }
 0x15b   : > { %v3454_v15 = vrot.slane %v3452_v11, 4  ;;  %v3457_v40 = vrot.slane %v3455_v48, 5  ;;  %v3477_v48 = vrot.slane %v3475_v61, 5 }
 0x15c   : > { %4476 = vmatpush3.bf16.xpose.msra.mxu1 %v1637_v35  ;;  %v3289_v35 = vrot.slane %v3288_v8, 4 }
 0x15d   : > { %4477 = vmatprep.subr.bf16.mxu1 %v4841_v0  ;;  %v3458_v51 = vor.u32 %v3457_v40, %v3454_v15  ;;  %v3635_v15 = vsel %vm244_vm1, %v4221_v9, 0  ;;  %v4208_v40 = vld [vmem:[%s4895_s19 + $0x30] sm:$0xe] }
 0x15e   : > { %v3294_v54 = vsel %vm4921_vm4, %v3289_v35, %v3293_v31  ;;  %v1724_v35 = vsel %vm244_vm1, %v4814_v22, 0  ;;  %v4217_v37 = vrot.slane %v4208_v40, 9 }
 0x15f   : > { %4614 = vmatmul.mubr.msk.bf16.vlgmr.msra.gmra.mrb[0].mxu0 %vm244_vm1, %v4154_v50  ;;  %v3391_v50 = vshll.u32 %v4183_v5, 16  ;;  %v4180_v52 = vcombine.low %v3280_v20, %v3294_v54  ;;  %v3443_v5 = vrot.slane %v3441_v18, 5  ;;  %v4196_v20 = vld [vmem:[%s4895_s19 + $0x98] sm:$0xf]  ;;  %v3459_v17 = vrot.slane %v3458_v51, 4 }
 0x160   : > { %4618 = vmatpush3.bf16.xpose.msra.mxu0 %v3311_v49  ;;  %4625 = vmatprep.mubr.msk.bf16.mxu0 %vm4842_vm0, %v4841_v0  ;;  %v3402_v49 = vor.u32 %v3401_v7, %v3398_v6  ;;  %v3431_v6 = vrot.slane %v3430_v2, 4  ;;  %v4176_v54 = vld [vmem:[%s6138_s1 + $0x58] sm:$0xf] }
 0x161   : > { %4619 = vmatprep.subr.bf16.mxu0 %v4841_v0  ;;  %v3393_v59 = vrot.slane %v3391_v50, 5  ;;  %v3320_v8 = vsel %vm244_vm1, %v4180_v52, 0  ;;  %v4815_v50 = vld [vmem:[%s4895_s19 + $0x78] ss:$8 sps:$4 sm:$0xff]   ;;  %v3480_v52 = vshrl.u32 %v4196_v20, 16 }
 0x163   : > { %v3394_v3 = vsel %vm4921_vm4, %v3389_v41, %v3393_v59  ;;  %v1727_v41 = vsel %vm244_vm1, %v4815_v50, 0  ;;  %v3482_v33 = vrot.slane %v3480_v52, 4  ;;  %v4211_v50 = vld [vmem:[%s4895_s19 + $0x48] sm:$0xe] }
 0x164   : > { %4478 = vmatpush3.bf16.xpose.msra.mxu1 %v1640_v14  ;;  %v3403_v14 = vrot.slane %v3402_v49, 4  ;;  %v3422_v49 = vsel %vm4921_vm4, %v3417_v39, %v3421_v56 }
 0x165   : > { %4479 = vmatprep.subr.bf16.mxu1 %v4841_v0 }
 0x166   : > { %v3408_v19 = vsel %vm4921_vm4, %v3403_v14, %v3407_v12  ;;  %v3449_v12 = vrot.slane %v3447_v60, 5 }
 0x167   : > { %v4199_v31 = vcombine.low %v3394_v3, %v3408_v19  ;;  %v3464_v19 = vsel %vm4921_vm4, %v3459_v17, %v3463_v24 }
 0x168   : > { %4620 = vmatpush3.bf16.xpose.msra.mxu0 %v3314_v45  ;;  %v3433_v45 = vshll.u32 %v4189_v26, 16 }
 0x169   : > { %4621 = vmatprep.subr.bf16.mxu0 %v4841_v0  ;;  %v3509_v10 = vsel %vm244_vm1, %v4199_v31, 0 }
 0x16a   : > { %v3435_v7 = vrot.slane %v3433_v45, 5  ;;  %v3489_v45 = vshll.u32 %v4197_v23, 16 }
 0x16c   : > { %4480 = vmatpush3.bf16.xpose.msra.mxu1 %v1643_v29  ;;  %v3440_v29 = vrot.slane %v3438_v57, 4  ;;  %v3436_v46 = vsel %vm4921_vm4, %v3431_v6, %v3435_v7  ;;  %v3491_v31 = vrot.slane %v3489_v45, 5  ;;  %v3966_v7 = vld [vmem:[%s6138_s1 + $0x2c] sm:$0xf] }
 0x16d   : > { %4485 = vmatprep.subr.bf16.mxu1 %v4841_v0  ;;  %v4200_v59 = vcombine.low %v3422_v49, %v3436_v46  ;;  %v4220_v46 = vrot.slane %v4211_v50, 9 }
 0x16e   : > { %v3444_v58 = vor.u32 %v3443_v5, %v3440_v29 }
 0x16f   : > { %v3512_v22 = vsel %vm244_vm1, %v4200_v59, 0 }
 0x170   : > { %4622 = vmatpush3.bf16.xpose.msra.mxu0 %v3317_v53  ;;  %v3466_v53 = vshrl.u32 %v4194_v21, 16  ;;  %v3445_v14 = vrot.slane %v3444_v58, 4  ;;  %v3618_v58 = vsel %vm5062_vm7, %v4220_v46, %v3617_v25 }
 0x171   : > { %4623 = vmatprep.subr.bf16.mxu0 %v4841_v0 }
 0x172   : > { %v3468_v43 = vrot.slane %v3466_v53, 4  ;;  %v3450_v3 = vsel %vm4921_vm4, %v3445_v14, %v3449_v12 }
 0x173   : > { %4482 = vmatmul.mubr.msk.bf16.vlgmr.msra.gmra.mrb[0].mxu1 %vm244_vm1, %v3952_v36  ;;  %v3483_v36 = vshll.u32 %v4196_v20, 16  ;;  %v4201_v18 = vcombine.low %v3450_v3, %v3464_v19  ;;  %v4218_v20 = vrot.slane %v4209_v38, 9 }
 0x174   : > { %4486 = vmatpush3.bf16.xpose.msra.mxu1 %v1721_v32  ;;  %4493 = vmatprep.mubr.msk.bf16.mxu1 %vm4842_vm0, %v4841_v0  ;;  %v3469_v32 = vshll.u32 %v4194_v21, 16  ;;  %v3605_v21 = vrot.slane %v5970_v62, 5 }
 0x175   : > { %4487 = vmatprep.subr.bf16.mxu1 %v4841_v0  ;;  %v3485_v26 = vrot.slane %v3483_v36, 5  ;;  %v3515_v39 = vsel %vm244_vm1, %v4201_v18, 0 }
 0x176   : > { %v3471_v13 = vrot.slane %v3469_v32, 5  ;;  %v3606_v55 = vsel %vm5062_vm7, %v4217_v37, %v3605_v21 }
 0x177   : > { %v3486_v2 = vor.u32 %v3485_v26, %v3482_v33 }
 0x178   : > { %4624 = vmatpush3.bf16.xpose.msra.mxu0 %v3320_v8  ;;  %v4816_v8 = vld [vmem:[%s4895_s19 + $0x88] ss:$8 sps:$4 sm:$0xff]   ;;  %v3472_v42 = vor.u32 %v3471_v13, %v3468_v43 }
 0x179   : > { %4629 = vmatprep.subr.bf16.mxu0 %v4841_v0  ;;  %v1730_v57 = vsel %vm244_vm1, %v4816_v8, 0 }
 0x17a   : > { %v3473_v11 = vrot.slane %v3472_v42, 4 }
 0x17c   : > { %4488 = vmatpush3.bf16.xpose.msra.mxu1 %v1724_v35  ;;  %v3487_v35 = vrot.slane %v3486_v2, 4  ;;  %v3478_v56 = vsel %vm4921_vm4, %v3473_v11, %v3477_v48 }
 0x17d   : > { %4489 = vmatprep.subr.bf16.mxu1 %v4841_v0 }
 0x17e   : > { %v3492_v6 = vsel %vm4921_vm4, %v3487_v35, %v3491_v31 }
 0x17f   : > { %4626 = vmatmul.mubr.msk.bf16.vlgmr.msra.gmra.mrb[0].mxu0 %vm244_vm1, %v4176_v54  ;;  %v4202_v29 = vcombine.low %v3478_v56, %v3492_v6  ;;  %v3609_v54 = vrot.slane %v5973_v44, 5  ;;  %v3613_v44 = vrot.slane %v5989_v30, 5  ;;  %v4212_v30 = vld [vmem:[%s6138_s1 + $0x60] sm:$0xf] }
 0x180   : > { %4630 = vmatpush3.bf16.xpose.msra.mxu0 %v3509_v10  ;;  %4637 = vmatprep.mubr.msk.bf16.mxu0 %vm4842_vm0, %v4841_v0  ;;  %v4210_v10 = vld [vmem:[%s4895_s19 + $0x40] sm:$0xe] }
 0x181   : > { %4631 = vmatprep.subr.bf16.mxu0 %v4841_v0  ;;  %v3518_v5 = vsel %vm244_vm1, %v4202_v29, 0  ;;  %v3610_v9 = vsel %vm5062_vm7, %v4218_v20, %v3609_v54  ;;  %v4219_v49 = vrot.slane %v4210_v10, 9 }
 0x182   : > { %v4223_v62 = vcombine.low %v3606_v55, %v3610_v9 }
 0x183   : > { %v3614_v27 = vsel %vm5062_vm7, %v4219_v49, %v3613_v44 }
 0x184   : > { %4490 = vmatpush3.bf16.xpose.msra.mxu1 %v1727_v41  ;;  %v3641_v47 = vsel %vm244_vm1, %v4223_v62, 0  ;;  %v4224_v60 = vcombine.low %v3614_v27, %v3618_v58 }
 0x185   : > { %4491 = vmatprep.subr.bf16.mxu1 %v4841_v0 }
 0x186   : > { %v3644_v51 = vsel %vm244_vm1, %v4224_v60, 0 }
 0x188   : > { %4632 = vmatpush3.bf16.xpose.msra.mxu0 %v3512_v22 }
 0x189   : > { %4633 = vmatprep.subr.bf16.mxu0 %v4841_v0 }
 0x18c   : > { %4492 = vmatpush3.bf16.xpose.msra.mxu1 %v1730_v57 }
 0x190   : > { %4634 = vmatpush3.bf16.xpose.msra.mxu0 %v3515_v39 }
 0x191   : > { %4635 = vmatprep.subr.bf16.mxu0 %v4841_v0  ;;  %v3691_v4 = vpop.permute.xlu0 %3690 }
 0x193   : > { %4494 = vmatmul.mubr.msk.bf16.vlgmr.msra.gmra.mrb[0].mxu1 %vm244_vm1, %v3966_v7 }
 0x196   : > { %v3696_v59 = vpop.permute.xlu0 %3695 }
 0x198   : > { %4636 = vmatpush3.bf16.xpose.msra.mxu0 %v3518_v5 }
 0x199   : > { %4641 = vmatprep.subr.bf16.mxu0 %v4841_v0 }
 0x19f   : > { %4638 = vmatmul.mubr.msk.bf16.vlgmr.msra.gmra.mrb[0].mxu0 %vm244_vm1, %v4198_v28 }
 0x1a0   : > { %4642 = vmatpush3.bf16.xpose.msra.mxu0 %v3635_v15  ;;  %4649 = vmatprep.mubr.msk.bf16.mxu0 %vm4842_vm0, %v4841_v0 }
 0x1a1   : > { %4643 = vmatprep.subr.bf16.mxu0 %v4841_v0 }
 0x1a8   : > { %4644 = vmatpush3.bf16.xpose.msra.mxu0 %v3638_v63 }
 0x1a9   : > { %4645 = vmatprep.subr.bf16.mxu0 %v4841_v0 }
 0x1b0   : > { %4646 = vmatpush3.bf16.xpose.msra.mxu0 %v3641_v47 }
 0x1b1   : > { %4647 = vmatprep.subr.bf16.mxu0 %v4841_v0 }
 0x1b8   : > { %4648 = vmatpush3.bf16.xpose.msra.mxu0 %v3644_v51 }
 0x1bf   : > { %4650 = vmatmul.mubr.msk.bf16.vlgmr.msra.gmra.mrb[0].mxu0 %vm244_vm1, %v4212_v30 }
 0x266   : > { %v1766_v1 = vpop.f32.mrb[0].mxu1 }
 0x267   : > { %v4495_v34 = vpop.f32.mrb[1].mxu1 }
 0x268   : > { %v1769_v53 = vpop.f32.mrb[2].mxu1 }
 0x269   : > { %v4496_v32 = vpop.f32.mrb[3].mxu1 }
 0x292   : > { %v3680_v52 = vpop.f32.mrb[0].mxu0 }
 0x293   : > { %v4653_v36 = vadd.f32 %v3680_v52, %v1766_v1  ;;  %v4651_v41 = vpop.f32.mrb[1].mxu0 }
 0x294   : > { %v3683_v0 = vpop.f32.mrb[2].mxu0 }
 0x295   : > { %v4652_v14 = vpop.f32.mrb[3].mxu0  ;;  %v3693_v12 = vmul.f32 %v4653_v36, %v3691_v4 }
 0x297   : > { %v3698_v17 = vadd.f32 %v3696_v59, %v3693_v12 }
 0x299   : > { %v3699_v24 = vmax.f32 %v3698_v17, 0.0 }
 0x29b   : > { %3701 = vst.msk [vmem:[%s202_s30] sm:$0xff] %vm3700_vm8, %v3699_v24 }
 0x29c PF: > { %s13_s14 = sadd.s32 1, %s4839_s14   ;;  %s6150_s12 = smov %s4835_s13 }
 0x29d   : > { %p10_p5 = scmp.ge.s32.totalorder %s13_s14, 4   ;;  %s6151_s13 = smov %s6153_s15 }
 0x29f   :  { %12 = sbr.rel (!%p10_p5) target bundleno = 2 (0x2), region = 95 }

// kernel: basic_conv_forward.2
= control target key start
LH: loop header
LB: loop body
LE: loop exit
PB: predicated region body
PF: predicated region fallthrough
CT: control target
= control target key end

     0   :  { %s4824_s9 = smov 0   ;;  %s4826_s10 = smov 0   ;;  %s6093_s0 = inlined_call_operand.vmem [shape: bf16[2,1,40,10,4], index: 0, kind: input, shape index: {}]   ;;  %s6094_s1 = inlined_call_operand.vmem [shape: bf16[25,8,4], index: 1, kind: input, shape index: {}]   ;;  %s6095_s2 = inlined_call_operand.vmem [shape: f32[2,1,8,2], index: 2, kind: output, shape index: {}]  }
   0x1   :  { %s4828_s11 = smov 0  }
   0x2 LB: > { %s24_s12 = sadd.s32 1, %s4801_s10  ;;  %p3756_p0 = scmp.ge.s32.totalorder %s4805_s11, 1  ;;  %s4805_s11 = sphi %s4828_s11, %s12_s11   ;;  %s4801_s10 = sphi %s4826_s10, %s6106_s10   ;;  %s4797_s9 = sphi %s4824_s9, %s6105_s9  }
   0x3   : > { %p26_p1 = scmp.ge.s32.totalorder %s24_s12, 2  ;;  %p132_p2 = scmp.lt.s32.totalorder %s4805_s11, 3 }
   0x5   : > { %s6108_s12 = smov (%p26_p1, %s24_s12), 0  ;;  %p133_p3 = pnand %p3756_p0, %p132_p2 }
   0x6   : > { %p160_p4 = scmp.lt.s32.totalorder (!%p133_p3), %s4797_s9, 1  ;;  %v4807_v0 = vmov (!%p133_p3), 0.0   ;;  %vm4808_vm0 = vmmov (!%p133_p3), 0   ;;  %vm217_vm1 = vcmask (!%p133_p3), 31744   ;;  %vm366_vm2 = vsmask.f32 (!%p133_p3), 3328 }
   0x7   : > { %136 = sbr.rel (%p133_p3) target bundleno = 809 (0x329), region = 28  ;;  %4323 = vmatprep.subr.bf16.mxu1 (!%p133_p3), %v4807_v0  ;;  %4467 = vmatprep.subr.bf16.mxu0 (!%p133_p3), %v4807_v0  ;;  %vm367_vm3 = vsmask.f32 (!%p133_p3), 7440  ;;  %vm773_vm5 = vcmask (!%p133_p3), 1042432   ;;  %vm774_vm6 = vcmask (!%p133_p3), 1046532   ;;  %vm3660_vm8 = vcmask (!%p133_p3), 523264  }
   0x8   : > { %4331 = vmatprep.mubr.msk.bf16.mxu1 (!%p133_p3), %vm4808_vm0, %v4807_v0  ;;  %4475 = vmatprep.mubr.msk.bf16.mxu0 (!%p133_p3), %vm4808_vm0, %v4807_v0  ;;  %vm4880_vm4 = vmor (!%p133_p3), %vm366_vm2, %vm367_vm3  ;;  %v4168_v28 = vld [vmem:[%s6094_s1 + $0x5c] sm:$0xf] (!%p133_p3)  ;;  %vm3664_vm9 = vcmask (!%p133_p3), 7168   ;;  %vm3670_vm10 = vcmask (!%p133_p3), 15368  }
   0x9   : > { %vm5021_vm7 = vmor (!%p133_p3), %vm773_vm5, %vm774_vm6 }
   0xe   : > { %s6110_s9 = smov (!%p160_p4, %s4797_s9), 1 }
   0xf   : > { %s4716_s13 = smul.u32 320, %s6110_s9  ;;  %s3758_s20 = sshll.u32 %s6110_s9, 3 }
  0x10   : > { %s175_s23 = scalar_lea.vmem %s6095_s2, %s3758_s20 }
  0x11   : > { %s4854_s16 = scalar_lea.vmem %s6093_s0, %s4716_s13 }
  0x12   : > { %v4743_v1 = vld [vmem:[%s4854_s16 + $0x50] ss:$8 sps:$4 sm:$0xff]   ;;  %v4744_v2 = vld [vmem:[%s4854_s16 + $0x60] ss:$8 sps:$4 sm:$0xff]   ;;  %v4861_v5 = vld [vmem:[%s4854_s16 + $0xc] sm:$0x1] }
  0x13   : > { %v222_v3 = vsel %vm217_vm1, %v4743_v1, 0  ;;  %v3942_v4 = vld [vmem:[%s4854_s16 + $0x8] sm:$0xf]  ;;  %v3944_v6 = vld [vmem:[%s4854_s16 + $0x10] sm:$0xf]  ;;  %v1774_v10 = vshll.u32 %v4861_v5, 16 }
  0x14   : > { %4324 = vmatpush3.bf16.xpose.msra.mxu1 %v222_v3  ;;  %v4865_v7 = vld [vmem:[%s4854_s16 + $0x14] sm:$0x1]  ;;  %v1765_v8 = vshrl.u32 %v3942_v4, 16  ;;  %v1768_v9 = vshll.u32 %v3942_v4, 16  ;;  %v1779_v11 = vshrl.u32 %v3944_v6, 16  ;;  %v1782_v12 = vshll.u32 %v3944_v6, 16 }
  0x15   : > { %4325 = vmatprep.subr.bf16.mxu1 %v4807_v0  ;;  %v1788_v14 = vshll.u32 %v4865_v7, 16  ;;  %v225_v18 = vsel %vm217_vm1, %v4744_v2, 0  ;;  %v1776_v19 = vrot.slane %v1774_v10, 5  ;;  %v3946_v20 = vld [vmem:[%s4854_s16 + $0x18] sm:$0xf] }
  0x16   : > { %v1767_v13 = vrot.slane %v1765_v8, 4  ;;  %v1770_v15 = vrot.slane %v1768_v9, 5  ;;  %v1781_v16 = vrot.slane %v1779_v11, 4  ;;  %v1784_v17 = vrot.slane %v1782_v12, 5  ;;  %v4873_v21 = vld [vmem:[%s4854_s16 + $0x1c] sm:$0x1] }
  0x17   : > { %v1790_v24 = vrot.slane %v1788_v14, 5  ;;  %v3948_v25 = vld [vmem:[%s4854_s16 + $0x20] sm:$0xf]  ;;  %v4877_v26 = vld [vmem:[%s4854_s16 + $0x24] sm:$0x1]  ;;  %v1793_v27 = vshrl.u32 %v3946_v20, 16 }
  0x18   : > { %v1771_v22 = vor.u32 %v1770_v15, %v1767_v13  ;;  %v1785_v23 = vor.u32 %v1784_v17, %v1781_v16  ;;  %v1796_v29 = vshll.u32 %v3946_v20, 16  ;;  %v1802_v30 = vshll.u32 %v4873_v21, 16  ;;  %v4745_v37 = vld [vmem:[%s4854_s16 + $0x70] ss:$8 sps:$4 sm:$0xff]   ;;  %v3950_v44 = vld [vmem:[%s4854_s16 + $0x28] sm:$0xf] }
  0x19   : > { %v1807_v31 = vshrl.u32 %v3948_v25, 16  ;;  %v1810_v32 = vshll.u32 %v3948_v25, 16  ;;  %v1795_v35 = vrot.slane %v1793_v27, 4  ;;  %v1816_v36 = vshll.u32 %v4877_v26, 16  ;;  %v4894_v45 = vld [vmem:[%s4854_s16 + $0x2c] sm:$0x1] }
  0x1a   : > { %v1772_v33 = vrot.slane %v1771_v22, 4  ;;  %v1786_v34 = vrot.slane %v1785_v23, 4  ;;  %v1798_v38 = vrot.slane %v1796_v29, 5  ;;  %v1804_v43 = vrot.slane %v1802_v30, 5  ;;  %v3952_v50 = vld [vmem:[%s4854_s16 + $0x30] sm:$0xf] }
  0x1b   : > { %v1809_v39 = vrot.slane %v1807_v31, 4  ;;  %v1812_v40 = vrot.slane %v1810_v32, 5  ;;  %v1818_v49 = vrot.slane %v1816_v36, 5  ;;  %v4898_v51 = vld [vmem:[%s4854_s16 + $0x34] sm:$0x1]  ;;  %v1821_v52 = vshrl.u32 %v3950_v44, 16 }
  0x1c   : > { %4326 = vmatpush3.bf16.xpose.msra.mxu1 %v225_v18  ;;  %v1777_v41 = vsel %vm4880_vm4, %v1772_v33, %v1776_v19  ;;  %v1791_v42 = vsel %vm4880_vm4, %v1786_v34, %v1790_v24  ;;  %v1799_v47 = vor.u32 %v1798_v38, %v1795_v35  ;;  %v1824_v53 = vshll.u32 %v3950_v44, 16  ;;  %v4746_v61 = vld [vmem:[%s4854_s16 + $0x80] ss:$8 sps:$4 sm:$0xff]   ;;  %v3954_v8 = vld [vmem:[%s4854_s16 + $0x38] sm:$0xf] }
  0x1d   : > { %4327 = vmatprep.subr.bf16.mxu1 %v4807_v0  ;;  %v3959_v46 = vcombine.low %v1777_v41, %v1791_v42  ;;  %v1813_v48 = vor.u32 %v1812_v40, %v1809_v39  ;;  %v1830_v54 = vshll.u32 %v4894_v45, 16  ;;  %v1835_v55 = vshrl.u32 %v3952_v50, 16  ;;  %v4912_v9 = vld [vmem:[%s4854_s16 + $0x3c] sm:$0x1]  ;;  %v3956_v13 = vld [vmem:[%s4854_s16 + $0x40] sm:$0xf] }
  0x1e   : > { %v1800_v57 = vrot.slane %v1799_v47, 4  ;;  %v1838_v59 = vshll.u32 %v3952_v50, 16  ;;  %v228_v60 = vsel %vm217_vm1, %v4745_v37, 0  ;;  %v1823_v62 = vrot.slane %v1821_v52, 4  ;;  %v4916_v14 = vld [vmem:[%s4854_s16 + $0x44] sm:$0x1] }
  0x1f   : > { %v1892_v56 = vsel %vm217_vm1, %v3959_v46, 0  ;;  %v1814_v58 = vrot.slane %v1813_v48, 4  ;;  %v1826_v63 = vrot.slane %v1824_v53, 5  ;;  %v1837_v1 = vrot.slane %v1835_v55, 4  ;;  %v3964_v35 = vld [vmem:[%s4854_s16 + $0x58] sm:$0xf] }
  0x20   : > { %4468 = vmatpush3.bf16.xpose.msra.mxu0 %v1892_v56  ;;  %v1805_v2 = vsel %vm4880_vm4, %v1800_v57, %v1804_v43  ;;  %v1840_v4 = vrot.slane %v1838_v59, 5  ;;  %v1844_v6 = vshll.u32 %v4898_v51, 16  ;;  %v1832_v12 = vrot.slane %v1830_v54, 5  ;;  %v3965_v40 = vld [vmem:[%s4854_s16 + $0x5c] sm:$0x1] }
  0x21   : > { %4469 = vmatprep.subr.bf16.mxu0 %v4807_v0  ;;  %v1819_v3 = vsel %vm4880_vm4, %v1814_v58, %v1818_v49  ;;  %v1827_v11 = vor.u32 %v1826_v63, %v1823_v62  ;;  %v1849_v15 = vshrl.u32 %v3954_v8, 16  ;;  %v1852_v18 = vshll.u32 %v3954_v8, 16  ;;  %v3966_v41 = vld [vmem:[%s4854_s16 + $0x60] sm:$0xf]  ;;  %v3967_v43 = vld [vmem:[%s4854_s16 + $0x64] sm:$0x1] }
  0x22   : > { %v3960_v10 = vcombine.low %v1805_v2, %v1819_v3  ;;  %v1841_v16 = vor.u32 %v1840_v4, %v1837_v1  ;;  %v1846_v17 = vrot.slane %v1844_v6, 5  ;;  %v1858_v19 = vshll.u32 %v4912_v9, 16  ;;  %v4747_v56 = vld [vmem:[%s4854_s16] ss:$8 sps:$4 sm:$0xff]   ;;  %v3969_v2 = vld [vmem:[%s4854_s16 + $0x6c] sm:$0x1] }
  0x23   : > { %v2170_v20 = vrot.slane %v4861_v5, 5  ;;  %v1828_v22 = vrot.slane %v1827_v11, 4  ;;  %v1851_v23 = vrot.slane %v1849_v15, 4  ;;  %v1863_v24 = vshrl.u32 %v3956_v13, 16  ;;  %v3970_v4 = vld [vmem:[%s4854_s16 + $0x70] sm:$0xf] }
  0x24   : > { %4328 = vmatpush3.bf16.xpose.msra.mxu1 %v228_v60  ;;  %v1895_v25 = vsel %vm217_vm1, %v3960_v10, 0  ;;  %v1842_v27 = vrot.slane %v1841_v16, 4  ;;  %v1854_v29 = vrot.slane %v1852_v18, 5  ;;  %v1866_v30 = vshll.u32 %v3956_v13, 16  ;;  %v3968_v60 = vld [vmem:[%s4854_s16 + $0x68] sm:$0xf] }
  0x25   : > { %4329 = vmatprep.subr.bf16.mxu1 %v4807_v0  ;;  %v231_v31 = vsel %vm217_vm1, %v4746_v61, 0  ;;  %v1833_v32 = vsel %vm4880_vm4, %v1828_v22, %v1832_v12  ;;  %v1865_v33 = vrot.slane %v1863_v24, 4  ;;  %v1872_v34 = vshll.u32 %v4916_v14, 16  ;;  %v3971_v6 = vld [vmem:[%s4854_s16 + $0x74] sm:$0x1] }
  0x26   : > { %v1847_v36 = vsel %vm4880_vm4, %v1842_v27, %v1846_v17  ;;  %v1855_v37 = vor.u32 %v1854_v29, %v1851_v23  ;;  %v1860_v38 = vrot.slane %v1858_v19, 5  ;;  %v1868_v39 = vrot.slane %v1866_v30, 5  ;;  %v3767_v16 = vld [vmem:[%s6094_s1 + $0x4] sm:$0xf]  ;;  %v3972_v29 = vld [vmem:[%s4854_s16 + $0x78] sm:$0xf] }
  0x27   : > { %v3961_v42 = vcombine.low %v1833_v32, %v1847_v36  ;;  %v1963_v44 = vshrl.u32 %v3964_v35, 16  ;;  %v1966_v46 = vshll.u32 %v3964_v35, 16  ;;  %v1874_v49 = vrot.slane %v1872_v34, 5  ;;  %v4748_v34 = vld [vmem:[%s4854_s16 + $0x10] ss:$8 sps:$4 sm:$0xff]  }
  0x28   : > { %4470 = vmatpush3.bf16.xpose.msra.mxu0 %v1895_v25  ;;  %v1856_v47 = vrot.slane %v1855_v37, 4  ;;  %v1869_v48 = vor.u32 %v1868_v39, %v1865_v33  ;;  %v1977_v50 = vshrl.u32 %v3966_v41, 16  ;;  %v1972_v54 = vshll.u32 %v3965_v40, 16  ;;  %v4749_v35 = vld [vmem:[%s4854_s16 + $0x20] ss:$8 sps:$4 sm:$0xff]  }
  0x29   : > { %4471 = vmatprep.subr.bf16.mxu0 %v4807_v0  ;;  %v1965_v52 = vrot.slane %v1963_v44, 4  ;;  %v1968_v53 = vrot.slane %v1966_v46, 5  ;;  %v1980_v55 = vshll.u32 %v3966_v41, 16  ;;  %v1898_v61 = vsel %vm217_vm1, %v3961_v42, 0  ;;  %v3974_v37 = vld [vmem:[%s4854_s16 + $0x80] sm:$0xf] }
  0x2a   : > { %v1861_v57 = vsel %vm4880_vm4, %v1856_v47, %v1860_v38  ;;  %v1870_v58 = vrot.slane %v1869_v48, 4  ;;  %v1979_v59 = vrot.slane %v1977_v50, 4  ;;  %v1986_v1 = vshll.u32 %v3967_v43, 16  ;;  %v4750_v42 = vld [vmem:[%s4854_s16 + $0x30] ss:$8 sps:$4 sm:$0xff]  }
  0x2b   : > { %v1969_v62 = vor.u32 %v1968_v53, %v1965_v52  ;;  %v1982_v63 = vrot.slane %v1980_v55, 5  ;;  %v1991_v8 = vshrl.u32 %v3968_v60, 16  ;;  %v1994_v10 = vshll.u32 %v3968_v60, 16  ;;  %v3973_v43 = vld [vmem:[%s4854_s16 + $0x7c] sm:$0x1] }
  0x2c   : > { %4330 = vmatpush3.bf16.xpose.msra.mxu1 %v231_v31  ;;  %v1875_v3 = vsel %vm4880_vm4, %v1870_v58, %v1874_v49  ;;  %v1974_v13 = vrot.slane %v1972_v54, 5  ;;  %v2000_v19 = vshll.u32 %v3969_v2, 16  ;;  %v2005_v22 = vshrl.u32 %v3970_v4, 16  ;;  %v3975_v48 = vld [vmem:[%s4854_s16 + $0x84] sm:$0x1] }
  0x2d   : > { %4335 = vmatprep.subr.bf16.mxu1 %v4807_v0  ;;  %v3962_v11 = vcombine.low %v1861_v57, %v1875_v3  ;;  %v1970_v12 = vrot.slane %v1969_v62, 4  ;;  %v1983_v15 = vor.u32 %v1982_v63, %v1979_v59  ;;  %v1993_v17 = vrot.slane %v1991_v8, 4  ;;  %v348_v52 = vld [vmem:[%s4854_s16] sm:$0xf]  ;;  %v350_v57 = vld [vmem:[%s4854_s16 + $0x8] sm:$0xf] }
  0x2e   : > { %v1996_v18 = vrot.slane %v1994_v10, 5  ;;  %v297_v23 = vsel %vm217_vm1, %v4747_v56, 0  ;;  %v1988_v25 = vrot.slane %v1986_v1, 5  ;;  %v2008_v27 = vshll.u32 %v3970_v4, 16  ;;  %v4972_v8 = vld [vmem:[%s4854_s16 + $0x4] sm:$0x1] }
  0x2f   : > { %v1984_v24 = vrot.slane %v1983_v15, 4  ;;  %v2174_v30 = vrot.slane %v4865_v7, 5  ;;  %v2007_v32 = vrot.slane %v2005_v22, 4  ;;  %v2014_v33 = vshll.u32 %v3971_v6, 16 }
  0x30   : > { %4472 = vmatpush3.bf16.xpose.msra.mxu0 %v1898_v61  ;;  %v1997_v31 = vor.u32 %v1996_v18, %v1993_v17  ;;  %v2010_v36 = vrot.slane %v2008_v27, 5  ;;  %v2178_v38 = vrot.slane %v4873_v21, 5  ;;  %v1901_v39 = vsel %vm217_vm1, %v3962_v11, 0  ;;  %v3958_v17 = vld [vmem:[%s6094_s1 + $0x30] sm:$0xf] }
  0x31   : > { %4473 = vmatprep.subr.bf16.mxu0 %v4807_v0  ;;  %v1975_v40 = vsel %vm4880_vm4, %v1970_v12, %v1974_v13  ;;  %v2002_v41 = vrot.slane %v2000_v19, 5  ;;  %v2019_v44 = vshrl.u32 %v3972_v29, 16  ;;  %v1989_v46 = vsel %vm4880_vm4, %v1984_v24, %v1988_v25  ;;  %v4987_v25 = vld [vmem:[%s4854_s16 + $0xc] sm:$0x1] }
  0x32   : > { %v2011_v47 = vor.u32 %v2010_v36, %v2007_v32  ;;  %v2022_v49 = vshll.u32 %v3972_v29, 16  ;;  %v2033_v50 = vshrl.u32 %v3974_v37, 16  ;;  %v1998_v53 = vrot.slane %v1997_v31, 4 }
  0x33   : > { %4332 = vmatmul.mubr.msk.bf16.vlgmr.msra.gmra.mrb[0].mxu1 %vm217_vm1, %v3767_v16  ;;  %v2016_v54 = vrot.slane %v2014_v33, 5  ;;  %v2021_v55 = vrot.slane %v2019_v44, 4  ;;  %v2036_v56 = vshll.u32 %v3974_v37, 16  ;;  %v2028_v60 = vshll.u32 %v3973_v43, 16  ;;  %v3976_v16 = vld [vmem:[%s4854_s16 + $0x88] sm:$0xf] }
  0x34   : > { %4336 = vmatpush3.bf16.xpose.msra.mxu1 %v297_v23  ;;  %4343 = vmatprep.mubr.msk.bf16.mxu1 %vm4808_vm0, %v4807_v0  ;;  %v2012_v58 = vrot.slane %v2011_v47, 4  ;;  %v2024_v59 = vrot.slane %v2022_v49, 5  ;;  %v2035_v61 = vrot.slane %v2033_v50, 4  ;;  %v2042_v63 = vshll.u32 %v3975_v48, 16  ;;  %v352_v48 = vld [vmem:[%s4854_s16 + $0x10] sm:$0xf] }
  0x35   : > { %4337 = vmatprep.subr.bf16.mxu1 %v4807_v0  ;;  %v2038_v62 = vrot.slane %v2036_v56, 5  ;;  %v370_v1 = vshrl.u32 %v348_v52, 16  ;;  %v373_v2 = vshll.u32 %v348_v52, 16  ;;  %v300_v3 = vsel %vm217_vm1, %v4748_v34, 0  ;;  %v3978_v34 = vld [vmem:[%s4854_s16 + $0x90] sm:$0xf] }
  0x36   : > { %v303_v4 = vsel %vm217_vm1, %v4749_v35, 0  ;;  %v2025_v6 = vor.u32 %v2024_v59, %v2021_v55  ;;  %v384_v10 = vshrl.u32 %v350_v57, 16  ;;  %v3981_v11 = vcombine.low %v1975_v40, %v1989_v46 }
  0x37   : > { %v2003_v12 = vsel %vm4880_vm4, %v1998_v53, %v2002_v41  ;;  %v4978_v13 = vsel %vm217_vm1, %v4750_v42, 0  ;;  %v2039_v15 = vor.u32 %v2038_v62, %v2035_v61  ;;  %v2017_v18 = vsel %vm4880_vm4, %v2012_v58, %v2016_v54  ;;  %v3977_v41 = vld [vmem:[%s4854_s16 + $0x8c] sm:$0x1]  ;;  %v3979_v42 = vld [vmem:[%s4854_s16 + $0x94] sm:$0x1] }
  0x38   : > { %4474 = vmatpush3.bf16.xpose.msra.mxu0 %v1901_v39  ;;  %v2030_v19 = vrot.slane %v2028_v60, 5  ;;  %v372_v22 = vrot.slane %v370_v1, 4  ;;  %v375_v23 = vrot.slane %v373_v2, 5  ;;  %v2044_v24 = vrot.slane %v2042_v63, 5  ;;  %v354_v58 = vld [vmem:[%s4854_s16 + $0x18] sm:$0xf] }
  0x39   : > { %4479 = vmatprep.subr.bf16.mxu0 %v4807_v0  ;;  %v379_v27 = vshll.u32 %v4972_v8, 16  ;;  %v386_v29 = vrot.slane %v384_v10, 4  ;;  %v387_v31 = vshll.u32 %v350_v57, 16  ;;  %v2026_v32 = vrot.slane %v2025_v6, 4  ;;  %v5009_v62 = vld [vmem:[%s4854_s16 + $0x14] sm:$0x1] }
  0x3a   : > { %v2040_v33 = vrot.slane %v2039_v15, 4  ;;  %v2047_v35 = vshrl.u32 %v3976_v16, 16  ;;  %v2050_v36 = vshll.u32 %v3976_v16, 16  ;;  %v2090_v37 = vsel %vm217_vm1, %v3981_v11, 0  ;;  %v5013_v6 = vld [vmem:[%s4854_s16 + $0x1c] sm:$0x1] }
  0x3b   : > { %v3982_v39 = vcombine.low %v2003_v12, %v2017_v18  ;;  %v389_v40 = vrot.slane %v387_v31, 5  ;;  %v376_v43 = vor.u32 %v375_v23, %v372_v22  ;;  %v393_v44 = vshll.u32 %v4987_v25, 16  ;;  %v3987_v18 = vld [vmem:[%s4854_s16 + $0x10] sm:$0xe] }
  0x3c   : > { %4338 = vmatpush3.bf16.xpose.msra.mxu1 %v300_v3  ;;  %v2049_v46 = vrot.slane %v2047_v35, 4  ;;  %v2052_v47 = vrot.slane %v2050_v36, 5  ;;  %v4998_v49 = vrot.slane %v379_v27, 5  ;;  %v2061_v52 = vshrl.u32 %v3978_v34, 16  ;;  %v356_v27 = vld [vmem:[%s4854_s16 + $0x20] sm:$0xf] }
  0x3d   : > { %4339 = vmatprep.subr.bf16.mxu1 %v4807_v0  ;;  %v390_v50 = vor.u32 %v389_v40, %v386_v29  ;;  %v2064_v53 = vshll.u32 %v3978_v34, 16  ;;  %v2031_v54 = vsel %vm4880_vm4, %v2026_v32, %v2030_v19  ;;  %v2045_v55 = vsel %vm4880_vm4, %v2040_v33, %v2044_v24 }
  0x3e   : > { %v2053_v56 = vor.u32 %v2052_v47, %v2049_v46  ;;  %v2056_v57 = vshll.u32 %v3977_v41, 16  ;;  %v2063_v59 = vrot.slane %v2061_v52, 4  ;;  %v2070_v61 = vshll.u32 %v3979_v42, 16  ;;  %v358_v42 = vld [vmem:[%s4854_s16 + $0x28] sm:$0xf] }
  0x3f   : > { %4476 = vmatmul.mubr.msk.bf16.vlgmr.msra.gmra.mrb[0].mxu0 %vm217_vm1, %v3958_v17  ;;  %v2066_v60 = vrot.slane %v2064_v53, 5  ;;  %v398_v63 = vshrl.u32 %v352_v48, 16  ;;  %v2093_v1 = vsel %vm217_vm1, %v3982_v39, 0  ;;  %v377_v2 = vrot.slane %v376_v43, 4  ;;  %v3986_v17 = vld [vmem:[%s4854_s16 + $0x8] sm:$0xe] }
  0x40   : > { %4480 = vmatpush3.bf16.xpose.msra.mxu0 %v2090_v37  ;;  %4487 = vmatprep.mubr.msk.bf16.mxu0 %vm4808_vm0, %v4807_v0  ;;  %v395_v3 = vrot.slane %v393_v44, 5  ;;  %v401_v10 = vshll.u32 %v352_v48, 16  ;;  %v3983_v11 = vcombine.low %v2031_v54, %v2045_v55  ;;  %v391_v12 = vrot.slane %v390_v50, 4  ;;  %v5053_v52 = vld [vmem:[%s4854_s16 + $0x24] sm:$0x1] }
  0x41   : > { %4481 = vmatprep.subr.bf16.mxu0 %v4807_v0  ;;  %v2067_v15 = vor.u32 %v2066_v60, %v2063_v59  ;;  %v412_v16 = vshrl.u32 %v354_v58, 16  ;;  %v2054_v19 = vrot.slane %v2053_v56, 4  ;;  %v2058_v22 = vrot.slane %v2056_v57, 5  ;;  %v3988_v53 = vld [vmem:[%s4854_s16 + $0x18] sm:$0xe] }
  0x42   : > { %v400_v23 = vrot.slane %v398_v63, 4  ;;  %v403_v24 = vrot.slane %v401_v10, 5  ;;  %v2072_v31 = vrot.slane %v2070_v61, 5  ;;  %v415_v33 = vshll.u32 %v354_v58, 16  ;;  %v3989_v56 = vld [vmem:[%s4854_s16 + $0x20] sm:$0xe] }
  0x43   : > { %v2068_v29 = vrot.slane %v2067_v15, 4  ;;  %v414_v32 = vrot.slane %v412_v16, 4  ;;  %v382_v34 = vsel %vm4880_vm4, %v377_v2, %v4998_v49  ;;  %v407_v35 = vshll.u32 %v5009_v62, 16  ;;  %v5060_v59 = vld [vmem:[%s4854_s16 + $0x2c] sm:$0x1] }
  0x44   : > { %4340 = vmatpush3.bf16.xpose.msra.mxu1 %v303_v4  ;;  %v3995_v36 = vrot.slane %v3986_v17, 9  ;;  %v3996_v37 = vrot.slane %v3987_v18, 9  ;;  %v396_v39 = vsel %vm4880_vm4, %v391_v12, %v395_v3  ;;  %v417_v40 = vrot.slane %v415_v33, 5  ;;  %v360_v10 = vld [vmem:[%s4854_s16 + $0x30] sm:$0xf] }
  0x45   : > { %4341 = vmatprep.subr.bf16.mxu1 %v4807_v0  ;;  %v421_v41 = vshll.u32 %v5013_v6, 16  ;;  %v426_v43 = vshrl.u32 %v356_v27, 16  ;;  %v2059_v44 = vsel %vm4880_vm4, %v2054_v19, %v2058_v22  ;;  %v404_v46 = vor.u32 %v403_v24, %v400_v23  ;;  %v362_v16 = vld [vmem:[%s4854_s16 + $0x38] sm:$0xf]  ;;  %v185_v23 = vld [vmem:[%s6094_s1] sm:$0xf] }
  0x46   : > { %v5039_v47 = vsel %vm5021_vm7, %v3995_v36, %v2170_v20  ;;  %v5045_v48 = vsel %vm5021_vm7, %v3996_v37, %v2174_v30  ;;  %v2073_v49 = vsel %vm4880_vm4, %v2068_v29, %v2072_v31  ;;  %v418_v50 = vor.u32 %v417_v40, %v414_v32  ;;  %v3990_v33 = vld [vmem:[%s4854_s16 + $0x28] sm:$0xe]  ;;  %v3991_v40 = vld [vmem:[%s4854_s16 + $0x30] sm:$0xe] }
  0x47   : > { %v4003_v5 = vcombine.low %v5039_v47, %v5045_v48  ;;  %v429_v20 = vshll.u32 %v356_v27, 16  ;;  %v2096_v7 = vsel %vm217_vm1, %v3983_v11, 0  ;;  %v3779_v54 = vcombine.low %v382_v34, %v396_v39  ;;  %v5095_v39 = vld [vmem:[%s4854_s16 + $0x3c] sm:$0x1] }
  0x48   : > { %4482 = vmatpush3.bf16.xpose.msra.mxu0 %v2093_v1  ;;  %v428_v30 = vrot.slane %v426_v43, 4  ;;  %v440_v55 = vshrl.u32 %v358_v42, 16  ;;  %v409_v57 = vrot.slane %v407_v35, 5  ;;  %v423_v58 = vrot.slane %v421_v41, 5 }
  0x49   : > { %4483 = vmatprep.subr.bf16.mxu0 %v4807_v0  ;;  %v431_v60 = vrot.slane %v429_v20, 5  ;;  %v443_v61 = vshll.u32 %v358_v42, 16  ;;  %v3984_v63 = vcombine.low %v2059_v44, %v2073_v49  ;;  %v405_v1 = vrot.slane %v404_v46, 4  ;;  %v3784_v46 = vld [vmem:[%s4854_s16 + $0x50] sm:$0xf] }
  0x4a   : > { %v442_v2 = vrot.slane %v440_v55, 4  ;;  %v3997_v3 = vrot.slane %v3988_v53, 9  ;;  %v419_v11 = vrot.slane %v418_v50, 4  ;;  %v435_v12 = vshll.u32 %v5053_v52, 16 }
  0x4b   : > { %v445_v15 = vrot.slane %v443_v61, 5  ;;  %v432_v17 = vor.u32 %v431_v60, %v428_v30  ;;  %v449_v18 = vshll.u32 %v5060_v59, 16  ;;  %v2182_v22 = vrot.slane %v4877_v26, 5  ;;  %v5084_v26 = vld [vmem:[%s4854_s16 + $0x34] sm:$0x1] }
  0x4c   : > { %4342 = vmatpush3.bf16.xpose.msra.mxu1 %v4978_v13  ;;  %v3998_v13 = vrot.slane %v3989_v56, 9  ;;  %v5071_v19 = vsel %vm5021_vm7, %v3997_v3, %v2178_v38  ;;  %v454_v27 = vshrl.u32 %v360_v10, 16  ;;  %v457_v29 = vshll.u32 %v360_v10, 16  ;;  %v3992_v10 = vld [vmem:[%s4854_s16 + $0x38] sm:$0xe] }
  0x4d   : > { %4347 = vmatprep.subr.bf16.mxu1 %v4807_v0  ;;  %v446_v24 = vor.u32 %v445_v15, %v442_v2  ;;  %v497_v31 = vsel %vm217_vm1, %v3779_v54, 0  ;;  %v2099_v21 = vsel %vm217_vm1, %v3984_v63, 0  ;;  %v468_v32 = vshrl.u32 %v362_v16, 16 }
  0x4e   : > { %v5081_v38 = vsel %vm5021_vm7, %v3998_v13, %v2182_v22  ;;  %v410_v34 = vsel %vm4880_vm4, %v405_v1, %v409_v57  ;;  %v424_v35 = vsel %vm4880_vm4, %v419_v11, %v423_v58  ;;  %v437_v36 = vrot.slane %v435_v12, 5  ;;  %v3786_v57 = vld [vmem:[%s4854_s16 + $0x58] sm:$0xf]  ;;  %v3993_v11 = vld [vmem:[%s4854_s16 + $0x40] sm:$0xe] }
  0x4f   : > { %v4004_v37 = vcombine.low %v5071_v19, %v5081_v38  ;;  %v433_v41 = vrot.slane %v432_v17, 4  ;;  %v447_v42 = vrot.slane %v446_v24, 4  ;;  %v451_v43 = vrot.slane %v449_v18, 5 }
  0x50   : > { %4484 = vmatpush3.bf16.xpose.msra.mxu0 %v2096_v7  ;;  %v471_v44 = vshll.u32 %v362_v16, 16  ;;  %v456_v47 = vrot.slane %v454_v27, 4  ;;  %v459_v48 = vrot.slane %v457_v29, 5  ;;  %v470_v49 = vrot.slane %v468_v32, 4  ;;  %v3787_v29 = vld [vmem:[%s4854_s16 + $0x5c] sm:$0x1] }
  0x51   : > { %4485 = vmatprep.subr.bf16.mxu0 %v4807_v0  ;;  %v3999_v50 = vrot.slane %v3990_v33, 9  ;;  %v3780_v20 = vcombine.low %v410_v34, %v424_v35  ;;  %v2216_v53 = vsel %vm217_vm1, %v4003_v5, 0  ;;  %v2186_v54 = vrot.slane %v4894_v45, 5  ;;  %v3785_v45 = vld [vmem:[%s4854_s16 + $0x54] sm:$0x1] }
  0x52   : > { %v473_v7 = vrot.slane %v471_v44, 5  ;;  %v463_v30 = vshll.u32 %v5084_v26, 16  ;;  %v4000_v55 = vrot.slane %v3991_v40, 9  ;;  %v2190_v56 = vrot.slane %v4898_v51, 5 }
  0x53   : > { %4344 = vmatmul.mubr.msk.bf16.vlgmr.msra.gmra.mrb[0].mxu1 %vm217_vm1, %v185_v23  ;;  %v568_v58 = vshrl.u32 %v3784_v46, 16  ;;  %v438_v60 = vsel %vm4880_vm4, %v433_v41, %v437_v36  ;;  %v452_v61 = vsel %vm4880_vm4, %v447_v42, %v451_v43  ;;  %v477_v5 = vshll.u32 %v5095_v39, 16  ;;  %v3788_v23 = vld [vmem:[%s4854_s16 + $0x60] sm:$0xf] }
  0x54   : > { %4348 = vmatpush3.bf16.xpose.msra.mxu1 %v497_v31  ;;  %4355 = vmatprep.mubr.msk.bf16.mxu1 %vm4808_vm0, %v4807_v0  ;;  %v5115_v63 = vsel %vm5021_vm7, %v3999_v50, %v2186_v54  ;;  %v460_v1 = vor.u32 %v459_v48, %v456_v47  ;;  %v474_v2 = vor.u32 %v473_v7, %v470_v49  ;;  %v571_v3 = vshll.u32 %v3784_v46, 16  ;;  %v3790_v48 = vld [vmem:[%s4854_s16 + $0x68] sm:$0xf] }
  0x55   : > { %4349 = vmatprep.subr.bf16.mxu1 %v4807_v0  ;;  %v5120_v51 = vsel %vm5021_vm7, %v4000_v55, %v2190_v56  ;;  %v500_v12 = vsel %vm217_vm1, %v3780_v20, 0  ;;  %v582_v13 = vshrl.u32 %v3786_v57, 16  ;;  %v465_v16 = vrot.slane %v463_v30, 5  ;;  %v3791_v55 = vld [vmem:[%s4854_s16 + $0x6c] sm:$0x1] }
  0x56   : > { %v4005_v15 = vcombine.low %v5115_v63, %v5120_v51  ;;  %v570_v17 = vrot.slane %v568_v58, 4  ;;  %v573_v18 = vrot.slane %v571_v3, 5  ;;  %v585_v22 = vshll.u32 %v3786_v57, 16  ;;  %v3792_v56 = vld [vmem:[%s4854_s16 + $0x70] sm:$0xf] }
  0x57   : > { %v3781_v24 = vcombine.low %v438_v60, %v452_v61  ;;  %v479_v27 = vrot.slane %v477_v5, 5  ;;  %v584_v31 = vrot.slane %v582_v13, 4  ;;  %v4001_v32 = vrot.slane %v3992_v10, 9  ;;  %v750_v51 = vld [vmem:[%s4854_s16 + $0x18] sm:$0xe] }
  0x58   : > { %4486 = vmatpush3.bf16.xpose.msra.mxu0 %v2099_v21  ;;  %v3980_v21 = vld [vmem:[%s6094_s1 + $0x34] sm:$0xf]  ;;  %v461_v33 = vrot.slane %v460_v1, 4  ;;  %v475_v34 = vrot.slane %v474_v2, 4  ;;  %v577_v35 = vshll.u32 %v3785_v45, 16  ;;  %v587_v36 = vrot.slane %v585_v22, 5 }
  0x59   : > { %4491 = vmatprep.subr.bf16.mxu0 %v4807_v0  ;;  %v2194_v40 = vrot.slane %v4912_v9, 5  ;;  %v4002_v41 = vrot.slane %v3993_v11, 9  ;;  %v2198_v42 = vrot.slane %v4916_v14, 5  ;;  %v596_v43 = vshrl.u32 %v3788_v23, 16  ;;  %v3789_v9 = vld [vmem:[%s4854_s16 + $0x64] sm:$0x1] }
  0x5a   : > { %v574_v44 = vor.u32 %v573_v18, %v570_v17  ;;  %v588_v46 = vor.u32 %v587_v36, %v584_v31  ;;  %v591_v47 = vshll.u32 %v3787_v29, 16  ;;  %v599_v49 = vshll.u32 %v3788_v23, 16  ;;  %v3793_v29 = vld [vmem:[%s4854_s16 + $0x74] sm:$0x1] }
  0x5b   : > { %v5139_v50 = vsel %vm5021_vm7, %v4001_v32, %v2194_v40  ;;  %v5143_v20 = vsel %vm5021_vm7, %v4002_v41, %v2198_v42  ;;  %v503_v14 = vsel %vm217_vm1, %v3781_v24, 0  ;;  %v466_v7 = vsel %vm4880_vm4, %v461_v33, %v465_v16  ;;  %v3796_v42 = vld [vmem:[%s4854_s16 + $0x80] sm:$0xf] }
  0x5c   : > { %4350 = vmatpush3.bf16.xpose.msra.mxu1 %v500_v12  ;;  %v480_v54 = vsel %vm4880_vm4, %v475_v34, %v479_v27  ;;  %v4006_v30 = vcombine.low %v5139_v50, %v5143_v20  ;;  %v598_v57 = vrot.slane %v596_v43, 4  ;;  %v601_v58 = vrot.slane %v599_v49, 5  ;;  %v3794_v12 = vld [vmem:[%s4854_s16 + $0x78] sm:$0xf]  ;;  %v3795_v34 = vld [vmem:[%s4854_s16 + $0x7c] sm:$0x1] }
  0x5d   : > { %4351 = vmatprep.subr.bf16.mxu1 %v4807_v0  ;;  %v610_v60 = vshrl.u32 %v3790_v48, 16  ;;  %v613_v61 = vshll.u32 %v3790_v48, 16  ;;  %v575_v5 = vrot.slane %v574_v44, 4  ;;  %v579_v45 = vrot.slane %v577_v35, 5  ;;  %v3798_v20 = vld [vmem:[%s4854_s16 + $0x88] sm:$0xf] }
  0x5e   : > { %v589_v1 = vrot.slane %v588_v46, 4  ;;  %v593_v2 = vrot.slane %v591_v47, 5  ;;  %v3782_v11 = vcombine.low %v466_v7, %v480_v54  ;;  %v624_v13 = vshrl.u32 %v3792_v56, 16  ;;  %v747_v46 = vld [vmem:[%s4854_s16] sm:$0xe] }
  0x5f   : > { %4488 = vmatmul.mubr.msk.bf16.vlgmr.msra.gmra.mrb[0].mxu0 %vm217_vm1, %v3980_v21  ;;  %v612_v3 = vrot.slane %v610_v60, 4  ;;  %v615_v10 = vrot.slane %v613_v61, 5  ;;  %v627_v16 = vshll.u32 %v3792_v56, 16  ;;  %v602_v17 = vor.u32 %v601_v58, %v598_v57  ;;  %v748_v47 = vld [vmem:[%s4854_s16 + $0x8] sm:$0xe] }
  0x60   : > { %4492 = vmatpush3.bf16.xpose.msra.mxu0 %v2216_v53  ;;  %4499 = vmatprep.mubr.msk.bf16.mxu0 %vm4808_vm0, %v4807_v0  ;;  %v605_v53 = vshll.u32 %v3789_v9, 16  ;;  %v619_v22 = vshll.u32 %v3791_v55, 16  ;;  %v2219_v23 = vsel %vm217_vm1, %v4004_v37, 0  ;;  %v580_v24 = vsel %vm4880_vm4, %v575_v5, %v579_v45  ;;  %v749_v9 = vld [vmem:[%s4854_s16 + $0x10] sm:$0xe] }
  0x61   : > { %4493 = vmatprep.subr.bf16.mxu0 %v4807_v0  ;;  %v616_v18 = vor.u32 %v615_v10, %v612_v3  ;;  %v594_v27 = vsel %vm4880_vm4, %v589_v1, %v593_v2  ;;  %v638_v31 = vshrl.u32 %v3794_v12, 16  ;;  %v641_v32 = vshll.u32 %v3794_v12, 16  ;;  %v751_v60 = vld [vmem:[%s4854_s16 + $0x20] sm:$0xe]  ;;  %v752_v1 = vld [vmem:[%s4854_s16 + $0x28] sm:$0xe] }
  0x62   : > { %v506_v21 = vsel %vm217_vm1, %v3782_v11, 0  ;;  %v607_v33 = vrot.slane %v605_v53, 5  ;;  %v626_v35 = vrot.slane %v624_v13, 4  ;;  %v629_v19 = vrot.slane %v627_v16, 5  ;;  %v753_v16 = vld [vmem:[%s4854_s16 + $0x30] sm:$0xe] }
  0x63   : > { %v3801_v38 = vcombine.low %v580_v24, %v594_v27  ;;  %v603_v37 = vrot.slane %v602_v17, 4  ;;  %v617_v36 = vrot.slane %v616_v18, 4  ;;  %v621_v40 = vrot.slane %v619_v22, 5 }
  0x64   : > { %4352 = vmatpush3.bf16.xpose.msra.mxu1 %v503_v14  ;;  %v633_v41 = vshll.u32 %v3793_v29, 16  ;;  %v640_v43 = vrot.slane %v638_v31, 4  ;;  %v643_v44 = vrot.slane %v641_v32, 5  ;;  %v2222_v48 = vsel %vm217_vm1, %v4005_v15, 0  ;;  %v3778_v15 = vld [vmem:[%s6094_s1 + $0x8] sm:$0xf] }
  0x65   : > { %4353 = vmatprep.subr.bf16.mxu1 %v4807_v0  ;;  %v630_v49 = vor.u32 %v629_v19, %v626_v35  ;;  %v647_v50 = vshll.u32 %v3795_v34, 16  ;;  %v695_v14 = vsel %vm217_vm1, %v3801_v38, 0  ;;  %v2225_v7 = vsel %vm217_vm1, %v4006_v30, 0  ;;  %v754_v29 = vld [vmem:[%s4854_s16 + $0x38] sm:$0xe] }
  0x66   : > { %v608_v54 = vsel %vm4880_vm4, %v603_v37, %v607_v33  ;;  %v622_v63 = vsel %vm4880_vm4, %v617_v36, %v621_v40  ;;  %v5193_v55 = vrot.slane %v633_v41, 5  ;;  %v652_v56 = vshrl.u32 %v3796_v42, 16  ;;  %v3797_v33 = vld [vmem:[%s4854_s16 + $0x84] sm:$0x1]  ;;  %v3799_v41 = vld [vmem:[%s4854_s16 + $0x8c] sm:$0x1] }
  0x67   : > { %v655_v57 = vshll.u32 %v3796_v42, 16  ;;  %v3807_v58 = vrot.slane %v747_v46, 9  ;;  %v644_v61 = vor.u32 %v643_v44, %v640_v43  ;;  %v778_v30 = vrot.slane %v4972_v8, 5 }
  0x68   : > { %4494 = vmatpush3.bf16.xpose.msra.mxu0 %v2219_v23  ;;  %v3808_v5 = vrot.slane %v748_v47, 9  ;;  %v782_v45 = vrot.slane %v4987_v25, 5  ;;  %v3802_v2 = vcombine.low %v608_v54, %v622_v63  ;;  %v631_v3 = vrot.slane %v630_v49, 4 }
  0x69   : > { %4495 = vmatprep.subr.bf16.mxu0 %v4807_v0  ;;  %v649_v10 = vrot.slane %v647_v50, 5  ;;  %v3809_v11 = vrot.slane %v749_v9, 9  ;;  %v666_v53 = vshrl.u32 %v3798_v20, 16  ;;  %v5201_v12 = vsel %vm5021_vm7, %v3807_v58, %v778_v30  ;;  %v4752_v58 = vld [vmem:[%s4854_s16 + $0xb8] ss:$8 sps:$4 sm:$0xff]  }
  0x6a   : > { %v5205_v13 = vsel %vm5021_vm7, %v3808_v5, %v782_v45  ;;  %v786_v8 = vrot.slane %v5009_v62, 5  ;;  %v669_v25 = vshll.u32 %v3798_v20, 16  ;;  %v3810_v18 = vrot.slane %v750_v51, 9 }
  0x6b   : > { %v3815_v17 = vcombine.low %v5201_v12, %v5205_v13  ;;  %v790_v22 = vrot.slane %v5013_v6, 5  ;;  %v654_v23 = vrot.slane %v652_v56, 4  ;;  %v3811_v27 = vrot.slane %v751_v60, 9  ;;  %v4036_v13 = vld [vmem:[%s4854_s16 + $0xa8] sm:$0xf] }
  0x6c   : > { %4354 = vmatpush3.bf16.xpose.msra.mxu1 %v506_v21  ;;  %v5216_v24 = vsel %vm5021_vm7, %v3809_v11, %v786_v8  ;;  %v794_v62 = vrot.slane %v5053_v52, 5  ;;  %v645_v31 = vrot.slane %v644_v61, 4  ;;  %v657_v32 = vrot.slane %v655_v57, 5  ;;  %v4754_v11 = vld [vmem:[%s4854_s16 + $0xd8] ss:$8 sps:$4 sm:$0xff]  }
  0x6d   : > { %4359 = vmatprep.subr.bf16.mxu1 %v4807_v0  ;;  %v5224_v6 = vsel %vm5021_vm7, %v3810_v18, %v790_v22  ;;  %v3812_v21 = vrot.slane %v752_v1, 9  ;;  %v668_v34 = vrot.slane %v666_v53, 4  ;;  %v798_v19 = vrot.slane %v5060_v59, 5  ;;  %v4753_v1 = vld [vmem:[%s4854_s16 + $0xc8] ss:$8 sps:$4 sm:$0xff]  }
  0x6e   : > { %v3816_v52 = vcombine.low %v5216_v24, %v5224_v6  ;;  %v5232_v35 = vsel %vm5021_vm7, %v3811_v27, %v794_v62  ;;  %v671_v38 = vrot.slane %v669_v25, 5  ;;  %v3813_v37 = vrot.slane %v753_v16, 9  ;;  %v4755_v8 = vld [vmem:[%s4854_s16 + $0xf8] ss:$8 sps:$4 sm:$0xff]   ;;  %v4038_v16 = vld [vmem:[%s4854_s16 + $0xb0] sm:$0xf] }
  0x6f   : > { %v802_v36 = vrot.slane %v5084_v26, 5  ;;  %v3814_v40 = vrot.slane %v754_v29, 9  ;;  %v5239_v42 = vsel %vm5021_vm7, %v3812_v21, %v798_v19  ;;  %v806_v43 = vrot.slane %v5095_v39, 5  ;;  %v4751_v26 = vld [vmem:[%s4854_s16 + $0xa8] ss:$8 sps:$4 sm:$0xff]  }
  0x70   : > { %4496 = vmatpush3.bf16.xpose.msra.mxu0 %v2222_v48  ;;  %v661_v44 = vshll.u32 %v3797_v33, 16  ;;  %v3817_v46 = vcombine.low %v5232_v35, %v5239_v42  ;;  %v698_v59 = vsel %vm217_vm1, %v3802_v2, 0  ;;  %v636_v48 = vsel %vm4880_vm4, %v631_v3, %v5193_v55  ;;  %v3800_v3 = vld [vmem:[%s6094_s1 + $0xc] sm:$0xf]  ;;  %v4016_v18 = vld [vmem:[%s6094_s1 + $0x3c] sm:$0xf] }
  0x71   : > { %4497 = vmatprep.subr.bf16.mxu0 %v4807_v0  ;;  %v5246_v47 = vsel %vm5021_vm7, %v3813_v37, %v802_v36  ;;  %v658_v49 = vor.u32 %v657_v32, %v654_v23  ;;  %v5255_v39 = vsel %vm5021_vm7, %v3814_v40, %v806_v43  ;;  %v650_v50 = vsel %vm4880_vm4, %v645_v31, %v649_v10  ;;  %v4037_v31 = vld [vmem:[%s4854_s16 + $0xac] sm:$0x1]  ;;  %v4040_v32 = vld [vmem:[%s4854_s16 + $0xb8] sm:$0xf]  ;;  %v4756_v6 = vld [vmem:[%s4854_s16 + $0x108] ss:$8 sps:$4 sm:$0xff]  }
  0x72   : > { %v672_v20 = vor.u32 %v671_v38, %v668_v34  ;;  %v675_v9 = vshll.u32 %v3799_v41, 16  ;;  %v2303_v54 = vsel %vm217_vm1, %v4751_v26, 0  ;;  %v3803_v63 = vcombine.low %v636_v48, %v650_v50  ;;  %v4042_v34 = vld [vmem:[%s4854_s16 + $0xc0] sm:$0xf]  ;;  %v5332_v26 = vld [vmem:[%s4854_s16 + $0xc4] sm:$0x1] }
  0x73   : > { %4356 = vmatmul.mubr.msk.bf16.vlgmr.msra.gmra.mrb[0].mxu1 %vm217_vm1, %v3778_v15  ;;  %v659_v51 = vrot.slane %v658_v49, 4  ;;  %v663_v15 = vrot.slane %v661_v44, 5  ;;  %v2306_v5 = vsel %vm217_vm1, %v4752_v58, 0  ;;  %v2309_v2 = vsel %vm217_vm1, %v4753_v1, 0  ;;  %v4757_v42 = vld [vmem:[%s4854_s16 + $0x118] ss:$8 sps:$4 sm:$0xff]  }
  0x74   : > { %4360 = vmatpush3.bf16.xpose.msra.mxu1 %v695_v14  ;;  %4367 = vmatprep.mubr.msk.bf16.mxu1 %vm4808_vm0, %v4807_v0  ;;  %v3818_v14 = vcombine.low %v5246_v47, %v5255_v39  ;;  %v673_v55 = vrot.slane %v672_v20, 4  ;;  %v677_v56 = vrot.slane %v675_v9, 5  ;;  %v701_v57 = vsel %vm217_vm1, %v3803_v63, 0  ;;  %v4080_v9 = vld [vmem:[%s4854_s16 + $0xa8] sm:$0xe] }
  0x75   : > { %4361 = vmatprep.subr.bf16.mxu1 %v4807_v0  ;;  %v664_v60 = vsel %vm4880_vm4, %v659_v51, %v663_v15  ;;  %v824_v10 = vsel %vm217_vm1, %v3815_v17, 0  ;;  %v2312_v53 = vsel %vm217_vm1, %v4754_v11, 0  ;;  %v827_v12 = vsel %vm217_vm1, %v3816_v52, 0  ;;  %v4039_v52 = vld [vmem:[%s4854_s16 + $0xb4] sm:$0x1] }
  0x76   : > { %v678_v61 = vsel %vm4880_vm4, %v673_v55, %v677_v56  ;;  %v2461_v25 = vshrl.u32 %v4036_v13, 16  ;;  %v2464_v17 = vshll.u32 %v4036_v13, 16  ;;  %v2390_v22 = vsel %vm217_vm1, %v4755_v8, 0  ;;  %v4081_v15 = vld [vmem:[%s4854_s16 + $0xb0] sm:$0xe] }
  0x77   : > { %v3804_v30 = vcombine.low %v664_v60, %v678_v61  ;;  %v2475_v23 = vshrl.u32 %v4038_v16, 16  ;;  %v2478_v24 = vshll.u32 %v4038_v16, 16  ;;  %v830_v29 = vsel %vm217_vm1, %v3817_v46, 0  ;;  %v4758_v46 = vld [vmem:[%s4854_s16 + $0xa0] ss:$8 sps:$4 sm:$0xff]  }
  0x78   : > { %4498 = vmatpush3.bf16.xpose.msra.mxu0 %v2225_v7  ;;  %v3994_v7 = vld [vmem:[%s6094_s1 + $0x38] sm:$0xf]  ;;  %v2463_v27 = vrot.slane %v2461_v25, 4  ;;  %v2466_v62 = vrot.slane %v2464_v17, 5  ;;  %v2470_v19 = vshll.u32 %v4037_v31, 16  ;;  %v2489_v38 = vshrl.u32 %v4040_v32, 16 }
  0x79   : > { %4503 = vmatprep.subr.bf16.mxu0 %v4807_v0  ;;  %v704_v45 = vsel %vm217_vm1, %v3804_v30, 0  ;;  %v2477_v21 = vrot.slane %v2475_v23, 4  ;;  %v2480_v33 = vrot.slane %v2478_v24, 5  ;;  %v2492_v37 = vshll.u32 %v4040_v32, 16  ;;  %v4760_v39 = vld [vmem:[%s4854_s16 + $0xb0] ss:$8 sps:$4 sm:$0xff]  }
  0x7a   : > { %v2467_v35 = vor.u32 %v2466_v62, %v2463_v27  ;;  %v2503_v36 = vshrl.u32 %v4042_v34, 16  ;;  %v2506_v40 = vshll.u32 %v4042_v34, 16  ;;  %v2393_v41 = vsel %vm217_vm1, %v4756_v6, 0  ;;  %v4044_v30 = vld [vmem:[%s4854_s16 + $0xc8] sm:$0xf] }
  0x7b   : > { %v2481_v43 = vor.u32 %v2480_v33, %v2477_v21  ;;  %v2484_v44 = vshll.u32 %v4039_v52, 16  ;;  %v833_v48 = vsel %vm217_vm1, %v3818_v14, 0  ;;  %v2472_v50 = vrot.slane %v2470_v19, 5  ;;  %v4046_v1 = vld [vmem:[%s4854_s16 + $0xd0] sm:$0xf] }
  0x7c   : > { %4362 = vmatpush3.bf16.xpose.msra.mxu1 %v698_v59  ;;  %v5329_v59 = vld [vmem:[%s4854_s16 + $0xbc] sm:$0x1]  ;;  %v2468_v49 = vrot.slane %v2467_v35, 4  ;;  %v2491_v20 = vrot.slane %v2489_v38, 4  ;;  %v2505_v63 = vrot.slane %v2503_v36, 4  ;;  %v2508_v51 = vrot.slane %v2506_v40, 5 }
  0x7d   : > { %4363 = vmatprep.subr.bf16.mxu1 %v4807_v0  ;;  %v2866_v55 = vrot.slane %v4037_v31, 5  ;;  %v2396_v47 = vsel %vm217_vm1, %v4757_v42, 0  ;;  %v2482_v14 = vrot.slane %v2481_v43, 4  ;;  %v2486_v56 = vrot.slane %v2484_v44, 5  ;;  %v3806_v13 = vld [vmem:[%s6094_s1 + $0x10] sm:$0xf] }
  0x7e   : > { %v911_v58 = vsel %vm217_vm1, %v4758_v46, 0  ;;  %v2498_v60 = vshll.u32 %v5329_v59, 16  ;;  %v2512_v61 = vshll.u32 %v5332_v26, 16  ;;  %v2517_v16 = vshrl.u32 %v4044_v30, 16  ;;  %v4082_v27 = vld [vmem:[%s4854_s16 + $0xb8] sm:$0xe] }
  0x7f   : > { %4500 = vmatmul.mubr.msk.bf16.vlgmr.msra.gmra.mrb[0].mxu0 %vm217_vm1, %v3994_v7  ;;  %v4759_v7 = vld [vmem:[%s4854_s16 + $0x128] ss:$8 sps:$4 sm:$0xff]   ;;  %v2487_v8 = vsel %vm4880_vm4, %v2482_v14, %v2486_v56  ;;  %v2520_v25 = vshll.u32 %v4044_v30, 16  ;;  %v2531_v23 = vshrl.u32 %v4046_v1, 16  ;;  %v914_v62 = vsel %vm217_vm1, %v4760_v39, 0 }
  0x80   : > { %4504 = vmatpush3.bf16.xpose.msra.mxu0 %v2303_v54  ;;  %4511 = vmatprep.mubr.msk.bf16.mxu0 %vm4808_vm0, %v4807_v0  ;;  %v2494_v54 = vrot.slane %v2492_v37, 5  ;;  %v5378_v31 = vrot.slane %v2498_v60, 5  ;;  %v5380_v32 = vrot.slane %v2512_v61, 5  ;;  %v4048_v6 = vld [vmem:[%s4854_s16 + $0xd8] sm:$0xf]  ;;  %v2534_v34 = vshll.u32 %v4046_v1, 16 }
  0x81   : > { %4505 = vmatprep.subr.bf16.mxu0 %v4807_v0  ;;  %v4083_v35 = vld [vmem:[%s4854_s16 + $0xc0] sm:$0xe]  ;;  %v5390_v38 = vrot.slane %v2517_v16, 4  ;;  %v5392_v37 = vrot.slane %v2520_v25, 5  ;;  %v4091_v36 = vrot.slane %v4082_v27, 9  ;;  %v2545_v42 = vshrl.u32 %v4048_v6, 16 }
  0x82   : > { %v2495_v11 = vor.u32 %v2494_v54, %v2491_v20  ;;  %v2874_v43 = vrot.slane %v5329_v59, 5  ;;  %v4047_v44 = vld [vmem:[%s4854_s16 + $0xd4] sm:$0x1]  ;;  %v2548_v46 = vshll.u32 %v4048_v6, 16  ;;  %v2878_v20 = vrot.slane %v5332_v26, 5 }
  0x83   : > { %v4084_v59 = vld [vmem:[%s4854_s16 + $0xc8] sm:$0xe]  ;;  %v4085_v60 = vld [vmem:[%s4854_s16 + $0xd0] sm:$0xe]  ;;  %v2540_v30 = vshll.u32 %v4047_v44, 16  ;;  %v2547_v1 = vrot.slane %v2545_v42, 4 }
  0x84   : > { %4364 = vmatpush3.bf16.xpose.msra.mxu1 %v701_v57  ;;  %v4761_v57 = vld [vmem:[%s4854_s16 + $0xc0] ss:$8 sps:$4 sm:$0xff]   ;;  %v5383_v33 = vrot.slane %v2495_v11, 4  ;;  %v4093_v61 = vrot.slane %v4084_v59, 9  ;;  %v4086_v6 = vld [vmem:[%s4854_s16 + $0xd8] sm:$0xe] }
  0x85   : > { %4365 = vmatprep.subr.bf16.mxu1 %v4807_v0 }
  0x86   : > { %v2501_v26 = vsel %vm4880_vm4, %v5383_v33, %v5378_v31 }
  0x88   : > { %4506 = vmatpush3.bf16.xpose.msra.mxu0 %v2306_v5  ;;  %v4089_v5 = vrot.slane %v4080_v9, 9  ;;  %v4060_v9 = vld [vmem:[%s4854_s16 + $0x100] sm:$0xf] }
  0x89   : > { %4507 = vmatprep.subr.bf16.mxu0 %v4807_v0 }
  0x8c   : > { %4366 = vmatpush3.bf16.xpose.msra.mxu1 %v704_v45  ;;  %v5350_v45 = vld [vmem:[%s4854_s16 + $0xcc] sm:$0x1] }
  0x8d   : > { %4371 = vmatprep.subr.bf16.mxu1 %v4807_v0 }
  0x90   : > { %4508 = vmatpush3.bf16.xpose.msra.mxu0 %v2309_v2  ;;  %v4090_v2 = vrot.slane %v4081_v15, 9 }
  0x91   : > { %4509 = vmatprep.subr.bf16.mxu0 %v4807_v0 }
  0x93   : > { %4368 = vmatmul.mubr.msk.bf16.vlgmr.msra.gmra.mrb[0].mxu1 %vm217_vm1, %v3800_v3  ;;  %v2870_v3 = vrot.slane %v4039_v52, 5  ;;  %v4050_v52 = vld [vmem:[%s4854_s16 + $0xe0] sm:$0xf] }
  0x94   : > { %4372 = vmatpush3.bf16.xpose.msra.mxu1 %v824_v10  ;;  %4379 = vmatprep.mubr.msk.bf16.mxu1 %vm4808_vm0, %v4807_v0  ;;  %v2473_v10 = vsel %vm4880_vm4, %v2468_v49, %v2472_v50  ;;  %v4058_v49 = vld [vmem:[%s4854_s16 + $0xf8] sm:$0xf]  ;;  %v4092_v50 = vrot.slane %v4083_v35, 9 }
  0x95   : > { %4373 = vmatprep.subr.bf16.mxu1 %v4807_v0  ;;  %v5367_v17 = vsel %vm5021_vm7, %v4090_v2, %v2870_v3  ;;  %v4053_v21 = vcombine.low %v2473_v10, %v2487_v8  ;;  %v2659_v39 = vshrl.u32 %v4058_v49, 16  ;;  %v2662_v56 = vshll.u32 %v4058_v49, 16 }
  0x96   : > { %v5415_v15 = vsel %vm5021_vm7, %v4092_v50, %v2878_v20  ;;  %v2550_v2 = vrot.slane %v2548_v46, 5  ;;  %v2523_v10 = vor.u32 %v5392_v37, %v5390_v38  ;;  %v2882_v8 = vrot.slane %v5350_v45, 5  ;;  %v4062_v37 = vld [vmem:[%s4854_s16 + $0x108] sm:$0xf]  ;;  %v4064_v20 = vld [vmem:[%s4854_s16 + $0x110] sm:$0xf] }
  0x97   : > { %v2588_v54 = vsel %vm217_vm1, %v4053_v21, 0  ;;  %v2661_v25 = vrot.slane %v2659_v39, 4  ;;  %v2687_v39 = vshrl.u32 %v4062_v37, 16 }
  0x98   : > { %4510 = vmatpush3.bf16.xpose.msra.mxu0 %v2312_v53  ;;  %v2509_v53 = vor.u32 %v2508_v51, %v2505_v63  ;;  %v2536_v63 = vrot.slane %v2534_v34, 5  ;;  %v2562_v51 = vshll.u32 %v4050_v52, 16  ;;  %v2551_v21 = vor.u32 %v2550_v2, %v2547_v1 }
  0x99   : > { %4515 = vmatprep.subr.bf16.mxu0 %v4807_v0  ;;  %v2524_v35 = vrot.slane %v2523_v10, 4 }
  0x9a   : > { %v5388_v19 = vrot.slane %v2509_v53, 4  ;;  %v2564_v53 = vrot.slane %v2562_v51, 5  ;;  %v2552_v59 = vrot.slane %v2551_v21, 4 }
  0x9c   : > { %4374 = vmatpush3.bf16.xpose.msra.mxu1 %v827_v12  ;;  %v5358_v12 = vsel %vm5021_vm7, %v4089_v5, %v2866_v55  ;;  %v2515_v55 = vsel %vm4880_vm4, %v5388_v19, %v5380_v32  ;;  %v5432_v5 = vld [vmem:[%s4854_s16 + $0xe4] sm:$0x1]  ;;  %v5443_v32 = vsel %vm5021_vm7, %v4093_v61, %v2882_v8  ;;  %v2542_v19 = vrot.slane %v2540_v30, 5 }
  0x9d   : > { %4375 = vmatprep.subr.bf16.mxu1 %v4807_v0  ;;  %v4097_v24 = vcombine.low %v5358_v12, %v5367_v17  ;;  %v2568_v33 = vshll.u32 %v5432_v5, 16 }
  0x9f   : > { %4512 = vmatmul.mubr.msk.bf16.vlgmr.msra.gmra.mrb[0].mxu0 %vm217_vm1, %v4016_v18  ;;  %v2399_v18 = vsel %vm217_vm1, %v4759_v7, 0  ;;  %v5409_v7 = vsel %vm5021_vm7, %v4091_v36, %v2874_v43  ;;  %v4087_v43 = vld [vmem:[%s4854_s16 + $0xe0] sm:$0xe] }
  0xa0   : > { %4516 = vmatpush3.bf16.xpose.msra.mxu0 %v2390_v22  ;;  %4523 = vmatprep.mubr.msk.bf16.mxu0 %vm4808_vm0, %v4807_v0  ;;  %v2526_v22 = vshll.u32 %v5350_v45, 16  ;;  %v4098_v14 = vcombine.low %v5409_v7, %v5415_v15  ;;  %v4030_v45 = vld [vmem:[%s6094_s1 + $0x40] sm:$0xf] }
  0xa1   : > { %4517 = vmatprep.subr.bf16.mxu0 %v4807_v0 }
  0xa2   : > { %v5395_v40 = vrot.slane %v2526_v22, 5  ;;  %v2886_v22 = vrot.slane %v4047_v44, 5  ;;  %v4095_v44 = vrot.slane %v4086_v6, 9  ;;  %v4765_v6 = vld [vmem:[%s4854_s16 + $0x110] ss:$8 sps:$4 sm:$0xff]  }
  0xa4   : > { %4376 = vmatpush3.bf16.xpose.msra.mxu1 %v830_v29  ;;  %v5376_v29 = vsel %vm217_vm1, %v4761_v57, 0  ;;  %v2673_v57 = vshrl.u32 %v4060_v9, 16 }
  0xa5   : > { %4377 = vmatprep.subr.bf16.mxu1 %v4807_v0 }
  0xa6   : > { %v2675_v27 = vrot.slane %v2673_v57, 4  ;;  %v2894_v57 = vrot.slane %v5432_v5, 5 }
  0xa8   : > { %4518 = vmatpush3.bf16.xpose.msra.mxu0 %v2393_v41  ;;  %v5397_v41 = vrot.slane %v2531_v23, 4  ;;  %v2664_v23 = vrot.slane %v2662_v56, 5  ;;  %v4096_v56 = vrot.slane %v4087_v43, 9 }
  0xa9   : > { %4519 = vmatprep.subr.bf16.mxu0 %v4807_v0 }
  0xaa   : > { %v2537_v11 = vor.u32 %v2536_v63, %v5397_v41  ;;  %v4054_v41 = vcombine.low %v2501_v26, %v2515_v55  ;;  %v2570_v63 = vrot.slane %v2568_v33, 5  ;;  %v5475_v2 = vsel %vm5021_vm7, %v4096_v56, %v2894_v57 }
  0xac   : > { %4378 = vmatpush3.bf16.xpose.msra.mxu1 %v833_v48  ;;  %v2559_v48 = vshrl.u32 %v4050_v52, 16  ;;  %v2538_v42 = vrot.slane %v2537_v11, 4  ;;  %v2591_v5 = vsel %vm217_vm1, %v4054_v41, 0 }
  0xad   : > { %4383 = vmatprep.subr.bf16.mxu1 %v4807_v0 }
  0xae   : > { %v2561_v3 = vrot.slane %v2559_v48, 4  ;;  %v2665_v48 = vor.u32 %v2664_v23, %v2661_v25  ;;  %v2543_v11 = vsel %vm4880_vm4, %v2538_v42, %v2542_v19  ;;  %v4764_v25 = vld [vmem:[%s4854_s16 + $0x100] ss:$8 sps:$4 sm:$0xff]  }
  0xb0   : > { %4520 = vmatpush3.bf16.xpose.msra.mxu0 %v2396_v47  ;;  %v5426_v47 = vld [vmem:[%s4854_s16 + $0xdc] sm:$0x1]  ;;  %v2565_v38 = vor.u32 %v2564_v53, %v2561_v3  ;;  %v4763_v53 = vld [vmem:[%s4854_s16 + $0xf0] ss:$8 sps:$4 sm:$0xff]  }
  0xb1   : > { %4521 = vmatprep.subr.bf16.mxu0 %v4807_v0  ;;  %v2554_v16 = vshll.u32 %v5426_v47, 16  ;;  %v2890_v26 = vrot.slane %v5426_v47, 5  ;;  %v2666_v47 = vrot.slane %v2665_v48, 4  ;;  %v998_v19 = vsel %vm217_vm1, %v4763_v53, 0  ;;  %v3893_v53 = vld [vmem:[%s4854_s16 + $0xa8] sm:$0xe] }
  0xb2   : > { %v2566_v55 = vrot.slane %v2565_v38, 4 }
  0xb3   : > { %4380 = vmatmul.mubr.msk.bf16.vlgmr.msra.gmra.mrb[0].mxu1 %vm217_vm1, %v3806_v13  ;;  %v4059_v13 = vld [vmem:[%s4854_s16 + $0xfc] sm:$0x1]  ;;  %v2556_v46 = vrot.slane %v2554_v16, 5  ;;  %v5470_v61 = vsel %vm5021_vm7, %v4095_v44, %v2890_v26  ;;  %v4063_v16 = vld [vmem:[%s4854_s16 + $0x10c] sm:$0x1] }
  0xb4   : > { %4384 = vmatpush3.bf16.xpose.msra.mxu1 %v911_v58  ;;  %4391 = vmatprep.mubr.msk.bf16.mxu1 %vm4808_vm0, %v4807_v0  ;;  %v2676_v58 = vshll.u32 %v4060_v9, 16  ;;  %v2668_v34 = vshll.u32 %v4059_v13, 16  ;;  %v4762_v9 = vld [vmem:[%s4854_s16 + $0xd0] ss:$8 sps:$4 sm:$0xff]   ;;  %v2571_v8 = vsel %vm4880_vm4, %v2566_v55, %v2570_v63  ;;  %v2696_v38 = vshll.u32 %v4063_v16, 16 }
  0xb5   : > { %4385 = vmatprep.subr.bf16.mxu1 %v4807_v0  ;;  %v920_v3 = vsel %vm217_vm1, %v4762_v9, 0  ;;  %v2557_v13 = vsel %vm4880_vm4, %v2552_v59, %v2556_v46  ;;  %v5509_v9 = vsel %vm217_vm1, %v4764_v25, 0  ;;  %v5512_v59 = vsel %vm217_vm1, %v4765_v6, 0  ;;  %v3828_v63 = vld [vmem:[%s6094_s1 + $0x14] sm:$0xf] }
  0xb6   : > { %v2678_v31 = vrot.slane %v2676_v58, 5  ;;  %v2670_v51 = vrot.slane %v2668_v34, 5  ;;  %v2690_v58 = vshll.u32 %v4062_v37, 16  ;;  %v4056_v33 = vcombine.low %v2557_v13, %v2571_v8  ;;  %v4067_v34 = vld [vmem:[%s4854_s16 + $0x11c] sm:$0x1] }
  0xb7   : > { %v2724_v48 = vshll.u32 %v4067_v34, 16  ;;  %v5518_v26 = vld [vmem:[%s4854_s16 + $0x124] sm:$0x1] }
  0xb8   : > { %4522 = vmatpush3.bf16.xpose.msra.mxu0 %v2399_v18  ;;  %v4094_v18 = vrot.slane %v4085_v60, 9  ;;  %v2679_v49 = vor.u32 %v2678_v31, %v2675_v27  ;;  %v2701_v60 = vshrl.u32 %v4064_v20, 16  ;;  %v2738_v8 = vshll.u32 %v5518_v26, 16 }
  0xb9   : > { %4527 = vmatprep.subr.bf16.mxu0 %v4807_v0 }
  0xba   : > { %v5454_v52 = vsel %vm5021_vm7, %v4094_v18, %v2886_v22  ;;  %v2680_v30 = vrot.slane %v2679_v49, 4  ;;  %v2689_v18 = vrot.slane %v2687_v39, 4  ;;  %v2692_v22 = vrot.slane %v2690_v58, 5  ;;  %v5521_v39 = vld [vmem:[%s4854_s16 + $0xa0] sm:$0xf] }
  0xbb   : > { %v4099_v36 = vcombine.low %v5443_v32, %v5454_v52  ;;  %v2703_v23 = vrot.slane %v2701_v60, 4  ;;  %v1069_v16 = vshrl.u32 %v5521_v39, 16 }
  0xbc   : > { %4386 = vmatpush3.bf16.xpose.msra.mxu1 %v914_v62  ;;  %v4061_v62 = vld [vmem:[%s4854_s16 + $0x104] sm:$0x1]  ;;  %v2693_v41 = vor.u32 %v2692_v22, %v2689_v18  ;;  %v3894_v18 = vld [vmem:[%s4854_s16 + $0xb0] sm:$0xe]  ;;  %v1072_v22 = vshll.u32 %v5521_v39, 16 }
  0xbd   : > { %4387 = vmatprep.subr.bf16.mxu1 %v4807_v0  ;;  %v2682_v50 = vshll.u32 %v4061_v62, 16  ;;  %v4066_v62 = vld [vmem:[%s4854_s16 + $0x118] sm:$0xf] }
  0xbe   : > { %v2715_v44 = vshrl.u32 %v4066_v62, 16  ;;  %v2718_v46 = vshll.u32 %v4066_v62, 16  ;;  %v2694_v57 = vrot.slane %v2693_v41, 4  ;;  %v3896_v62 = vld [vmem:[%s4854_s16 + $0xc0] sm:$0xe] }
  0xbf   : > { %4524 = vmatmul.mubr.msk.bf16.vlgmr.msra.gmra.mrb[0].mxu0 %vm217_vm1, %v4030_v45  ;;  %v2684_v1 = vrot.slane %v2682_v50, 5  ;;  %v4065_v45 = vld [vmem:[%s4854_s16 + $0x114] sm:$0x1]  ;;  %v5580_v41 = vld [vmem:[%s4854_s16 + $0xcc] sm:$0x1] }
  0xc0   : > { %4528 = vmatpush3.bf16.xpose.msra.mxu0 %v2588_v54  ;;  %4535 = vmatprep.mubr.msk.bf16.mxu0 %vm4808_vm0, %v4807_v0  ;;  %v2704_v54 = vshll.u32 %v4064_v20, 16  ;;  %v2710_v43 = vshll.u32 %v4065_v45, 16  ;;  %v2597_v20 = vsel %vm217_vm1, %v4056_v33, 0  ;;  %v5565_v45 = vld [vmem:[%s4854_s16 + $0xbc] sm:$0x1] }
  0xc1   : > { %4529 = vmatprep.subr.bf16.mxu0 %v4807_v0  ;;  %v2685_v31 = vsel %vm4880_vm4, %v2680_v30, %v2684_v1  ;;  %v5529_v30 = vrot.slane %v2718_v46, 5  ;;  %v5531_v1 = vrot.slane %v2724_v48, 5  ;;  %v4070_v48 = vld [vmem:[%s4854_s16 + $0x128] sm:$0xf] }
  0xc2   : > { %v2706_v27 = vrot.slane %v2704_v54, 5  ;;  %v2712_v60 = vrot.slane %v2710_v43, 5  ;;  %v3892_v54 = vld [vmem:[%s4854_s16 + $0xa0] sm:$0xe] }
  0xc3   : > { %v3901_v25 = vrot.slane %v3892_v54, 9  ;;  %v5602_v54 = vrot.slane %v1069_v16, 4 }
  0xc4   : > { %4388 = vmatpush3.bf16.xpose.msra.mxu1 %v5376_v29  ;;  %v2529_v29 = vsel %vm4880_vm4, %v2524_v35, %v5395_v40  ;;  %v2671_v40 = vsel %vm4880_vm4, %v2666_v47, %v2670_v51  ;;  %v4068_v35 = vld [vmem:[%s4854_s16 + $0x120] sm:$0xf]  ;;  %v2707_v42 = vor.u32 %v2706_v27, %v2703_v23  ;;  %v2698_v51 = vrot.slane %v2696_v38, 5  ;;  %v5554_v23 = vld [vmem:[%s4854_s16 + $0xb4] sm:$0x1] }
  0xc5   : > { %4389 = vmatprep.subr.bf16.mxu1 %v4807_v0  ;;  %v4055_v21 = vcombine.low %v2529_v29, %v2543_v11  ;;  %v4075_v37 = vcombine.low %v2671_v40, %v2685_v31  ;;  %v2729_v49 = vshrl.u32 %v4068_v35, 16  ;;  %v2732_v55 = vshll.u32 %v4068_v35, 16  ;;  %v5539_v29 = vld [vmem:[%s4854_s16 + $0xa8] sm:$0xf]  ;;  %v5542_v11 = vld [vmem:[%s4854_s16 + $0xac] sm:$0x1] }
  0xc6   : > { %v2708_v58 = vrot.slane %v2707_v42, 4  ;;  %v5527_v47 = vrot.slane %v2715_v44, 4  ;;  %v3895_v40 = vld [vmem:[%s4854_s16 + $0xb8] sm:$0xe]  ;;  %v2699_v31 = vsel %vm4880_vm4, %v2694_v57, %v2698_v51  ;;  %v1478_v33 = vrot.slane %v5542_v11, 5 }
  0xc7   : > { %v2594_v50 = vsel %vm217_vm1, %v4055_v21, 0  ;;  %v5524_v56 = vsel %vm217_vm1, %v4075_v37, 0  ;;  %v5546_v13 = vrot.slane %v2732_v55, 5  ;;  %v3902_v21 = vrot.slane %v3893_v53, 9  ;;  %v5572_v35 = vld [vmem:[%s4854_s16 + $0xc4] sm:$0x1] }
  0xc8   : > { %4530 = vmatpush3.bf16.xpose.msra.mxu0 %v2591_v5  ;;  %v5533_v5 = vrot.slane %v2729_v49, 4  ;;  %v2713_v6 = vsel %vm4880_vm4, %v2708_v58, %v2712_v60  ;;  %v1083_v34 = vshrl.u32 %v5539_v29, 16  ;;  %v3903_v38 = vrot.slane %v3894_v18, 9  ;;  %v3897_v37 = vld [vmem:[%s4854_s16 + $0xc8] sm:$0xe] }
  0xc9   : > { %4531 = vmatprep.subr.bf16.mxu0 %v4807_v0  ;;  %v5584_v42 = vsel %vm5021_vm7, %v3902_v21, %v1478_v33  ;;  %v1482_v43 = vrot.slane %v5554_v23, 5  ;;  %v3904_v44 = vrot.slane %v3895_v40, 9  ;;  %v5587_v46 = vcombine.low %v2699_v31, %v2713_v6  ;;  %v3898_v51 = vld [vmem:[%s4854_s16 + $0xd0] sm:$0xe]  ;;  %v3899_v55 = vld [vmem:[%s4854_s16 + $0xd8] sm:$0xe] }
  0xca   : > { %v2721_v39 = vor.u32 %v5529_v30, %v5527_v47  ;;  %v1490_v58 = vrot.slane %v5572_v35, 5  ;;  %v3906_v60 = vrot.slane %v3897_v37, 9  ;;  %v1086_v53 = vshll.u32 %v5539_v29, 16  ;;  %v5616_v40 = vld [vmem:[%s4854_s16 + $0xd4] sm:$0x1] }
  0xcb   : > { %v5599_v57 = vsel %vm5021_vm7, %v3903_v38, %v1482_v43  ;;  %v1494_v47 = vrot.slane %v5580_v41, 5  ;;  %v2735_v30 = vor.u32 %v5546_v13, %v5533_v5  ;;  %v3907_v16 = vrot.slane %v3898_v51, 9  ;;  %v4052_v31 = vld [vmem:[%s6094_s1 + $0x44] sm:$0xf]  ;;  %v5628_v21 = vld [vmem:[%s4854_s16 + $0xdc] sm:$0x1] }
  0xcc   : > { %4390 = vmatpush3.bf16.xpose.msra.mxu1 %v920_v3  ;;  %v5536_v3 = vld [vmem:[%s4854_s16 + $0xa4] sm:$0x1]  ;;  %v1074_v6 = vrot.slane %v1072_v22, 5  ;;  %v1498_v13 = vrot.slane %v5616_v40, 5  ;;  %v3908_v33 = vrot.slane %v3899_v55, 9  ;;  %v2743_v38 = vshrl.u32 %v4070_v48, 16 }
  0xcd   : > { %4395 = vmatprep.subr.bf16.mxu1 %v4807_v0  ;;  %v1474_v27 = vrot.slane %v5536_v3, 5  ;;  %v5632_v5 = vsel %vm5021_vm7, %v3906_v60, %v1494_v47  ;;  %v3854_v37 = vld [vmem:[%s4854_s16 + $0xb8] sm:$0xf]  ;;  %v1502_v22 = vrot.slane %v5628_v21, 5  ;;  %v4766_v60 = vld [vmem:[%s4854_s16 + $0x120] ss:$8 sps:$4 sm:$0xff]  }
  0xce   : > { %v5643_v51 = vsel %vm5021_vm7, %v3907_v16, %v1498_v13  ;;  %v2740_v47 = vrot.slane %v2738_v8, 5  ;;  %v1111_v13 = vshrl.u32 %v3854_v37, 16  ;;  %v1114_v43 = vshll.u32 %v3854_v37, 16  ;;  %v4071_v8 = vld [vmem:[%s4854_s16 + $0x12c] sm:$0x1] }
  0xd0   : > { %4532 = vmatpush3.bf16.xpose.msra.mxu0 %v2594_v50  ;;  %v1486_v50 = vrot.slane %v5565_v45, 5 }
  0xd1   : > { %4533 = vmatprep.subr.bf16.mxu0 %v4807_v0 }
  0xd2   : > { %v5608_v18 = vsel %vm5021_vm7, %v3904_v44, %v1486_v50  ;;  %v1088_v44 = vrot.slane %v1086_v53, 5  ;;  %v2746_v50 = vshll.u32 %v4070_v48, 16  ;;  %v1078_v53 = vshll.u32 %v5536_v3, 16 }
  0xd3   : > { %4392 = vmatmul.mubr.msk.bf16.vlgmr.msra.gmra.mrb[0].mxu1 %vm217_vm1, %v3828_v63  ;;  %v3905_v63 = vrot.slane %v3896_v62, 9  ;;  %v1085_v62 = vrot.slane %v1083_v34, 4  ;;  %v5647_v34 = vsel %vm5021_vm7, %v3908_v33, %v1502_v22  ;;  %v1092_v48 = vshll.u32 %v5542_v11, 16  ;;  %v4073_v11 = vld [vmem:[%s4854_s16 + $0x134] sm:$0x1] }
  0xd4   : > { %4396 = vmatpush3.bf16.xpose.msra.mxu1 %v998_v19  ;;  %4403 = vmatprep.mubr.msk.bf16.mxu1 %vm4808_vm0, %v4807_v0  ;;  %v5576_v19 = vsel %vm5021_vm7, %v3901_v25, %v1474_v27  ;;  %v4072_v25 = vld [vmem:[%s4854_s16 + $0x130] sm:$0xf]  ;;  %v1075_v33 = vor.u32 %v1074_v6, %v5602_v54  ;;  %v2745_v22 = vrot.slane %v2743_v38, 4  ;;  %v2748_v3 = vrot.slane %v2746_v50, 5 }
  0xd5   : > { %4397 = vmatprep.subr.bf16.mxu1 %v4807_v0  ;;  %v3852_v27 = vld [vmem:[%s4854_s16 + $0xb0] sm:$0xf]  ;;  %v5622_v29 = vsel %vm5021_vm7, %v3905_v63, %v1490_v58  ;;  %v2757_v63 = vshrl.u32 %v4072_v25, 16  ;;  %v2760_v55 = vshll.u32 %v4072_v25, 16  ;;  %v2722_v25 = vrot.slane %v2721_v39, 4 }
  0xd6   : > { %v1097_v58 = vshrl.u32 %v3852_v27, 16  ;;  %v1089_v26 = vor.u32 %v1088_v44, %v1085_v62  ;;  %v1007_v54 = vsel %vm217_vm1, %v4766_v60, 0  ;;  %v1080_v6 = vrot.slane %v1078_v53, 5  ;;  %v3858_v60 = vld [vmem:[%s4854_s16 + $0xc8] sm:$0xf] }
  0xd7   : > { %v2762_v39 = vrot.slane %v2760_v55, 5  ;;  %v1094_v62 = vrot.slane %v1092_v48, 5  ;;  %v2727_v38 = vsel %vm4880_vm4, %v2722_v25, %v5531_v1  ;;  %v1113_v44 = vrot.slane %v1111_v13, 4 }
  0xd8   : > { %4534 = vmatpush3.bf16.xpose.msra.mxu0 %v2597_v20  ;;  %v1116_v50 = vrot.slane %v1114_v43, 5  ;;  %v1076_v55 = vrot.slane %v1075_v33, 4  ;;  %v2749_v53 = vor.u32 %v2748_v3, %v2745_v22  ;;  %v1106_v20 = vshll.u32 %v5554_v23, 16 }
  0xd9   : > { %4539 = vmatprep.subr.bf16.mxu0 %v4807_v0  ;;  %v1139_v43 = vshrl.u32 %v3858_v60, 16 }
  0xda   : > { %v1117_v10 = vor.u32 %v1116_v50, %v1113_v44  ;;  %v1081_v13 = vsel %vm4880_vm4, %v1076_v55, %v1080_v6  ;;  %v2750_v23 = vrot.slane %v2749_v53, 4  ;;  %v1108_v3 = vrot.slane %v1106_v20, 5  ;;  %v3862_v20 = vld [vmem:[%s4854_s16 + $0xd8] sm:$0xf] }
  0xdb   : > { %v1134_v50 = vshll.u32 %v5572_v35, 16  ;;  %v3842_v55 = vld [vmem:[%s6094_s1 + $0x18] sm:$0xf]  ;;  %v1167_v53 = vshrl.u32 %v3862_v20, 16 }
  0xdc   : > { %4398 = vmatpush3.bf16.xpose.msra.mxu1 %v5509_v9  ;;  %v1100_v9 = vshll.u32 %v3852_v27, 16  ;;  %v2736_v27 = vrot.slane %v2735_v30, 4  ;;  %v1099_v30 = vrot.slane %v1097_v58, 4  ;;  %v2752_v58 = vshll.u32 %v4071_v8, 16 }
  0xdd   : > { %4399 = vmatprep.subr.bf16.mxu1 %v4807_v0 }
  0xde   : > { %v1102_v16 = vrot.slane %v1100_v9, 5  ;;  %v2741_v37 = vsel %vm4880_vm4, %v2736_v27, %v2740_v47  ;;  %v2766_v9 = vshll.u32 %v4073_v11, 16  ;;  %v1120_v47 = vshll.u32 %v5565_v45, 16 }
  0xdf   : > { %4536 = vmatmul.mubr.msk.bf16.vlgmr.msra.gmra.mrb[0].mxu0 %vm217_vm1, %v4052_v31  ;;  %v2759_v31 = vrot.slane %v2757_v63, 4  ;;  %v3856_v63 = vld [vmem:[%s4854_s16 + $0xc0] sm:$0xf]  ;;  %v4077_v49 = vcombine.low %v2727_v38, %v2741_v37  ;;  %v1142_v27 = vshll.u32 %v3858_v60, 16 }
  0xe0   : > { %4540 = vmatpush3.bf16.xpose.msra.mxu0 %v5524_v56  ;;  %4547 = vmatprep.mubr.msk.bf16.mxu0 %vm4808_vm0, %v4807_v0  ;;  %v2789_v56 = vsel %vm217_vm1, %v5587_v46, 0  ;;  %v1090_v46 = vrot.slane %v1089_v26, 4  ;;  %v1125_v1 = vshrl.u32 %v3856_v63, 16  ;;  %v1128_v25 = vshll.u32 %v3856_v63, 16 }
  0xe1   : > { %4541 = vmatprep.subr.bf16.mxu0 %v4807_v0  ;;  %v2763_v48 = vor.u32 %v2762_v39, %v2759_v31  ;;  %v2754_v26 = vrot.slane %v2752_v58, 5  ;;  %v1118_v31 = vrot.slane %v1117_v10, 4  ;;  %v1122_v39 = vrot.slane %v1120_v47, 5 }
  0xe2   : > { %v1095_v33 = vsel %vm4880_vm4, %v1090_v46, %v1094_v62  ;;  %v1127_v45 = vrot.slane %v1125_v1, 4  ;;  %v1130_v11 = vrot.slane %v1128_v25, 5  ;;  %v3860_v62 = vld [vmem:[%s4854_s16 + $0xd0] sm:$0xf]  ;;  %v2792_v38 = vsel %vm217_vm1, %v4077_v49, 0 }
  0xe3   : > { %v2764_v8 = vrot.slane %v2763_v48, 4  ;;  %v3865_v6 = vcombine.low %v1081_v13, %v1095_v33  ;;  %v2755_v37 = vsel %vm4880_vm4, %v2750_v23, %v2754_v26  ;;  %v1148_v63 = vshll.u32 %v5580_v41, 16  ;;  %v3870_v26 = vld [vmem:[%s4854_s16 + $0xf0] sm:$0xf]  ;;  %v3872_v23 = vld [vmem:[%s4854_s16 + $0xf8] sm:$0xf] }
  0xe4   : > { %4400 = vmatpush3.bf16.xpose.msra.mxu1 %v5512_v59  ;;  %v1103_v59 = vor.u32 %v1102_v16, %v1099_v30  ;;  %v2768_v16 = vrot.slane %v2766_v9, 5  ;;  %v1141_v30 = vrot.slane %v1139_v43, 4  ;;  %v1131_v10 = vor.u32 %v1130_v11, %v1127_v45 }
  0xe5   : > { %4401 = vmatprep.subr.bf16.mxu1 %v4807_v0  ;;  %v1123_v49 = vsel %vm4880_vm4, %v1118_v31, %v1122_v39  ;;  %v1153_v58 = vshrl.u32 %v3860_v62, 16  ;;  %v1156_v9 = vshll.u32 %v3860_v62, 16  ;;  %v1196_v60 = vsel %vm217_vm1, %v3865_v6, 0 }
  0xe6   : > { %v1104_v22 = vrot.slane %v1103_v59, 4  ;;  %v2769_v44 = vsel %vm4880_vm4, %v2764_v8, %v2768_v16  ;;  %v1170_v48 = vshll.u32 %v3862_v20, 16  ;;  %v1132_v59 = vrot.slane %v1131_v10, 4  ;;  %v3871_v20 = vld [vmem:[%s4854_s16 + $0xf4] sm:$0x1] }
  0xe7   : > { %v4078_v35 = vcombine.low %v2755_v37, %v2769_v44  ;;  %v1136_v1 = vrot.slane %v1134_v50, 5  ;;  %v1150_v47 = vrot.slane %v1148_v63, 5  ;;  %v1155_v43 = vrot.slane %v1153_v58, 4  ;;  %v3873_v58 = vld [vmem:[%s4854_s16 + $0xfc] sm:$0x1] }
  0xe8   : > { %4542 = vmatpush3.bf16.xpose.msra.mxu0 %v2789_v56  ;;  %v1144_v56 = vrot.slane %v1142_v27, 5  ;;  %v1158_v27 = vrot.slane %v1156_v9, 5  ;;  %v1169_v13 = vrot.slane %v1167_v53, 4  ;;  %v1172_v33 = vrot.slane %v1170_v48, 5 }
  0xe9   : > { %4543 = vmatprep.subr.bf16.mxu0 %v4807_v0  ;;  %v2795_v16 = vsel %vm217_vm1, %v4078_v35, 0  ;;  %v1176_v31 = vshll.u32 %v5628_v21, 16  ;;  %v1267_v39 = vshrl.u32 %v3870_v26, 16  ;;  %v1281_v6 = vshrl.u32 %v3872_v23, 16 }
  0xea   : > { %v1145_v46 = vor.u32 %v1144_v56, %v1141_v30  ;;  %v1159_v11 = vor.u32 %v1158_v27, %v1155_v43  ;;  %v1173_v30 = vor.u32 %v1172_v33, %v1169_v13  ;;  %v1270_v56 = vshll.u32 %v3870_v26, 16 }
  0xeb   : > { %v1284_v62 = vshll.u32 %v3872_v23, 16  ;;  %v1178_v21 = vrot.slane %v1176_v31, 5  ;;  %v1283_v63 = vrot.slane %v1281_v6, 4  ;;  %v1276_v48 = vshll.u32 %v3871_v20, 16  ;;  %v3875_v23 = vld [vmem:[%s4854_s16 + $0x104] sm:$0x1] }
  0xec   : > { %4402 = vmatpush3.bf16.xpose.msra.mxu1 %v1007_v54  ;;  %v1109_v54 = vsel %vm4880_vm4, %v1104_v22, %v1108_v3  ;;  %v1146_v25 = vrot.slane %v1145_v46, 4  ;;  %v1137_v22 = vsel %vm4880_vm4, %v1132_v59, %v1136_v1  ;;  %v1162_v3 = vshll.u32 %v5616_v40, 16  ;;  %v4074_v40 = vld [vmem:[%s6094_s1 + $0x48] sm:$0xf]  ;;  %v3880_v31 = vld [vmem:[%s4854_s16 + $0x118] sm:$0xf] }
  0xed   : > { %4407 = vmatprep.subr.bf16.mxu1 %v4807_v0  ;;  %v3866_v41 = vcombine.low %v1109_v54, %v1123_v49  ;;  %v1160_v37 = vrot.slane %v1159_v11, 4  ;;  %v1269_v54 = vrot.slane %v1267_v39, 4  ;;  %v1174_v10 = vrot.slane %v1173_v30, 4  ;;  %v3874_v49 = vld [vmem:[%s4854_s16 + $0x100] sm:$0xf] }
  0xee   : > { %v1151_v45 = vsel %vm4880_vm4, %v1146_v25, %v1150_v47  ;;  %v1164_v44 = vrot.slane %v1162_v3, 5  ;;  %v1272_v50 = vrot.slane %v1270_v56, 5  ;;  %v2912_v46 = vsel %vm217_vm1, %v4097_v24, 0  ;;  %v3877_v11 = vld [vmem:[%s4854_s16 + $0x10c] sm:$0x1] }
  0xef   : > { %v1199_v8 = vsel %vm217_vm1, %v3866_v41, 0  ;;  %v1295_v35 = vshrl.u32 %v3874_v49, 16  ;;  %v1298_v41 = vshll.u32 %v3874_v49, 16  ;;  %v1179_v59 = vsel %vm4880_vm4, %v1174_v10, %v1178_v21 }
  0xf0   : > { %4544 = vmatpush3.bf16.xpose.msra.mxu0 %v2792_v38  ;;  %v3867_v38 = vcombine.low %v1137_v22, %v1151_v45  ;;  %v1165_v53 = vsel %vm4880_vm4, %v1160_v37, %v1164_v44  ;;  %v1273_v1 = vor.u32 %v1272_v50, %v1269_v54  ;;  %v1290_v17 = vshll.u32 %v3873_v58, 16  ;;  %v3878_v45 = vld [vmem:[%s4854_s16 + $0x110] sm:$0xf]  ;;  %v3879_v54 = vld [vmem:[%s4854_s16 + $0x114] sm:$0x1] }
  0xf1   : > { %4545 = vmatprep.subr.bf16.mxu0 %v4807_v0  ;;  %v3868_v47 = vcombine.low %v1165_v53, %v1179_v59  ;;  %v1297_v43 = vrot.slane %v1295_v35, 4  ;;  %v1300_v27 = vrot.slane %v1298_v41, 5  ;;  %v1278_v33 = vrot.slane %v1276_v48, 5  ;;  %v3881_v50 = vld [vmem:[%s4854_s16 + $0x11c] sm:$0x1] }
  0xf2   : > { %v1202_v9 = vsel %vm217_vm1, %v3867_v38, 0  ;;  %v1274_v13 = vrot.slane %v1273_v1, 4  ;;  %v1304_v56 = vshll.u32 %v3875_v23, 16  ;;  %v1323_v15 = vshrl.u32 %v3878_v45, 16  ;;  %v3884_v53 = vld [vmem:[%s4854_s16 + $0x128] sm:$0xf] }
  0xf3   : > { %4404 = vmatmul.mubr.msk.bf16.vlgmr.msra.gmra.mrb[0].mxu1 %vm217_vm1, %v3842_v55  ;;  %v1286_v55 = vrot.slane %v1284_v62, 5  ;;  %v1205_v39 = vsel %vm217_vm1, %v3868_v47, 0  ;;  %v1301_v30 = vor.u32 %v1300_v27, %v1297_v43  ;;  %v1337_v38 = vshrl.u32 %v3880_v31, 16  ;;  %v3864_v48 = vld [vmem:[%s6094_s1 + $0x1c] sm:$0xf] }
  0xf4   : > { %4408 = vmatpush3.bf16.xpose.msra.mxu1 %v1196_v60  ;;  %4415 = vmatprep.mubr.msk.bf16.mxu1 %vm4808_vm0, %v4807_v0  ;;  %v3876_v60 = vld [vmem:[%s4854_s16 + $0x108] sm:$0xf]  ;;  %v1279_v6 = vsel %vm4880_vm4, %v1274_v13, %v1278_v33  ;;  %v1340_v37 = vshll.u32 %v3880_v31, 16  ;;  %v1306_v20 = vrot.slane %v1304_v56, 5  ;;  %v2918_v10 = vsel %vm217_vm1, %v4099_v36, 0 }
  0xf5   : > { %4409 = vmatprep.subr.bf16.mxu1 %v4807_v0  ;;  %v1287_v12 = vor.u32 %v1286_v55, %v1283_v63  ;;  %v1309_v24 = vshrl.u32 %v3876_v60, 16  ;;  %v1312_v25 = vshll.u32 %v3876_v60, 16  ;;  %v1302_v21 = vrot.slane %v1301_v30, 4  ;;  %v3882_v60 = vld [vmem:[%s4854_s16 + $0x120] sm:$0xf] }
  0xf6   : > { %v1325_v63 = vrot.slane %v1323_v15, 4  ;;  %v1339_v58 = vrot.slane %v1337_v38, 4  ;;  %v1332_v52 = vshll.u32 %v3879_v54, 16  ;;  %v1346_v41 = vshll.u32 %v3881_v50, 16  ;;  %v5784_v30 = vld [vmem:[%s4854_s16 + $0x14] sm:$0x1] }
  0xf7   : > { %v1288_v26 = vrot.slane %v1287_v12, 4  ;;  %v1311_v22 = vrot.slane %v1309_v24, 4  ;;  %v1314_v3 = vrot.slane %v1312_v25, 5  ;;  %v1307_v32 = vsel %vm4880_vm4, %v1302_v21, %v1306_v20  ;;  %v4088_v54 = vld [vmem:[%s6094_s1 + $0x4c] sm:$0xf] }
  0xf8   : > { %4546 = vmatpush3.bf16.xpose.msra.mxu0 %v2795_v16  ;;  %v1292_v16 = vrot.slane %v1290_v17, 5  ;;  %v1351_v59 = vshrl.u32 %v3882_v60, 16  ;;  %v1354_v1 = vshll.u32 %v3882_v60, 16  ;;  %v1365_v24 = vshrl.u32 %v3884_v53, 16  ;;  %v4768_v60 = vld [vmem:[%s4854_s16 + $0x20] ss:$8 sps:$4 sm:$0xff]  }
  0xf9   : > { %4551 = vmatprep.subr.bf16.mxu0 %v4807_v0  ;;  %v1315_v62 = vor.u32 %v1314_v3, %v1311_v22  ;;  %v1368_v25 = vshll.u32 %v3884_v53, 16  ;;  %v6100_v47 = vcombine.low %v5470_v61, %v5475_v2  ;;  %v1334_v27 = vrot.slane %v1332_v52, 5  ;;  %v3885_v22 = vld [vmem:[%s4854_s16 + $0x12c] sm:$0x1] }
  0xfa   : > { %v1293_v7 = vsel %vm4880_vm4, %v1288_v26, %v1292_v16  ;;  %v1348_v26 = vrot.slane %v1346_v41, 5  ;;  %v3883_v16 = vld [vmem:[%s4854_s16 + $0x124] sm:$0x1]  ;;  %v1353_v23 = vrot.slane %v1351_v59, 4  ;;  %v1356_v3 = vrot.slane %v1354_v1, 5 }
  0xfb   : > { %v3887_v44 = vcombine.low %v1279_v6, %v1293_v7  ;;  %v1316_v49 = vrot.slane %v1315_v62, 4  ;;  %v2921_v43 = vsel %vm217_vm1, %v6100_v47, 0  ;;  %v1367_v61 = vrot.slane %v1365_v24, 4  ;;  %v4174_v62 = vld [vmem:[%s4854_s16 + $0x10] sm:$0xe] }
  0xfc   : > { %4410 = vmatpush3.bf16.xpose.msra.mxu1 %v1199_v8  ;;  %v2915_v8 = vsel %vm217_vm1, %v4098_v14, 0  ;;  %v1326_v14 = vshll.u32 %v3878_v45, 16  ;;  %v1370_v2 = vrot.slane %v1368_v25, 5  ;;  %v4767_v45 = vld [vmem:[%s4854_s16 + $0x10] ss:$8 sps:$4 sm:$0xff]   ;;  %v1360_v31 = vshll.u32 %v3883_v16, 16 }
  0xfd   : > { %4411 = vmatprep.subr.bf16.mxu1 %v4807_v0  ;;  %v1394_v35 = vsel %vm217_vm1, %v3887_v44, 0  ;;  %v1357_v7 = vor.u32 %v1356_v3, %v1353_v23  ;;  %v4183_v38 = vrot.slane %v4174_v62, 9  ;;  %v2999_v20 = vsel %vm217_vm1, %v4767_v45, 0  ;;  %v4177_v41 = vld [vmem:[%s4854_s16 + $0x28] sm:$0xe] }
  0xfe   : > { %v1328_v55 = vrot.slane %v1326_v14, 5  ;;  %v1371_v15 = vor.u32 %v1370_v2, %v1367_v61  ;;  %v5792_v14 = vld [vmem:[%s4854_s16 + $0x1c] sm:$0x1]  ;;  %v1362_v50 = vrot.slane %v1360_v31, 5  ;;  %v3886_v16 = vld [vmem:[%s6094_s1 + $0x20] sm:$0xf]  ;;  %v6101_v23 = vcombine.low %v5576_v19, %v5584_v42 }
  0xff   : > { %4548 = vmatmul.mubr.msk.bf16.vlgmr.msra.gmra.mrb[0].mxu0 %vm217_vm1, %v4074_v40  ;;  %v1318_v40 = vshll.u32 %v3877_v11, 16  ;;  %v3566_v21 = vrot.slane %v5792_v14, 5  ;;  %v6102_v19 = vcombine.low %v5599_v57, %v5608_v18  ;;  %v4771_v61 = vld [vmem:[%s4854_s16 + $0x60] ss:$8 sps:$4 sm:$0xff]   ;;  %v4110_v2 = vld [vmem:[%s6094_s1 + $0x50] sm:$0xf]  ;;  %v6103_v57 = vcombine.low %v5622_v29, %v5632_v5 }
 0x100   : > { %4552 = vmatpush3.bf16.xpose.msra.mxu0 %v2912_v46  ;;  %4559 = vmatprep.mubr.msk.bf16.mxu0 %vm4808_vm0, %v4807_v0  ;;  %v1329_v36 = vor.u32 %v1328_v55, %v1325_v63  ;;  %v3086_v45 = vsel %vm217_vm1, %v4771_v61, 0  ;;  %v4772_v31 = vld [vmem:[%s4854_s16 + $0x70] ss:$8 sps:$4 sm:$0xff]   ;;  %v6104_v62 = vcombine.low %v5643_v51, %v5647_v34 }
 0x101   : > { %4553 = vmatprep.subr.bf16.mxu0 %v4807_v0  ;;  %v1320_v46 = vrot.slane %v1318_v40, 5  ;;  %v4175_v40 = vld [vmem:[%s4854_s16 + $0x18] sm:$0xe]  ;;  %v1523_v42 = vsel %vm217_vm1, %v6102_v19, 0  ;;  %v1526_v18 = vsel %vm217_vm1, %v6103_v57, 0 }
 0x102   : > { %v1330_v33 = vrot.slane %v1329_v36, 4  ;;  %v4184_v44 = vrot.slane %v4175_v40, 9  ;;  %v4176_v36 = vld [vmem:[%s4854_s16 + $0x20] sm:$0xe]  ;;  %v1529_v40 = vsel %vm217_vm1, %v6104_v62, 0 }
 0x103   : > { %v1321_v12 = vsel %vm4880_vm4, %v1316_v49, %v1320_v46  ;;  %v1358_v49 = vrot.slane %v1357_v7, 4  ;;  %v1372_v46 = vrot.slane %v1371_v15, 4  ;;  %v3089_v7 = vsel %vm217_vm1, %v4772_v31, 0 }
 0x104   : > { %4412 = vmatpush3.bf16.xpose.msra.mxu1 %v1202_v9  ;;  %v1342_v9 = vrot.slane %v1340_v37, 5  ;;  %v3888_v13 = vcombine.low %v1307_v32, %v1321_v12  ;;  %v1335_v56 = vsel %vm4880_vm4, %v1330_v33, %v1334_v27  ;;  %v3562_v37 = vrot.slane %v5784_v30, 5  ;;  %v4769_v33 = vld [vmem:[%s4854_s16 + $0x30] ss:$8 sps:$4 sm:$0xff]  }
 0x105   : > { %4413 = vmatprep.subr.bf16.mxu1 %v4807_v0  ;;  %v5809_v55 = vsel %vm5021_vm7, %v4184_v44, %v3566_v21  ;;  %v1363_v32 = vsel %vm4880_vm4, %v1358_v49, %v1362_v50  ;;  %v4185_v12 = vrot.slane %v4176_v36, 9  ;;  %v4773_v21 = vld [vmem:[%s4854_s16 + $0x80] ss:$8 sps:$4 sm:$0xff]   ;;  %v3166_v50 = vshll.u32 %v5784_v30, 16  ;;  %v4775_v36 = vld [vmem:[%s4854_s16 + $0x90] ss:$8 sps:$4 sm:$0xff]  }
 0x106   : > { %v1343_v17 = vor.u32 %v1342_v9, %v1339_v58  ;;  %v1397_v11 = vsel %vm217_vm1, %v3888_v13, 0  ;;  %v5805_v63 = vsel %vm5021_vm7, %v4183_v38, %v3562_v37  ;;  %v3180_v49 = vshll.u32 %v5792_v14, 16 }
 0x107   : > { %v4191_v9 = vcombine.low %v5805_v63, %v5809_v55  ;;  %v3168_v14 = vrot.slane %v3166_v50, 5 }
 0x108   : > { %4554 = vmatpush3.bf16.xpose.msra.mxu0 %v2915_v8  ;;  %v1344_v8 = vrot.slane %v1343_v17, 4  ;;  %v4186_v17 = vrot.slane %v4177_v41, 9  ;;  %v3182_v41 = vrot.slane %v3180_v49, 5 }
 0x109   : > { %4555 = vmatprep.subr.bf16.mxu0 %v4807_v0 }
 0x10a   : > { %v1349_v6 = vsel %vm4880_vm4, %v1344_v8, %v1348_v26  ;;  %v3005_v26 = vsel %vm217_vm1, %v4769_v33, 0  ;;  %v1520_v8 = vsel %vm217_vm1, %v6101_v23, 0  ;;  %v4140_v33 = vld [vmem:[%s4854_s16 + $0x38] sm:$0xf] }
 0x10c   : > { %4414 = vmatpush3.bf16.xpose.msra.mxu1 %v1205_v39  ;;  %v1374_v39 = vshll.u32 %v3885_v22, 16  ;;  %v4770_v22 = vld [vmem:[%s4854_s16 + $0x40] ss:$8 sps:$4 sm:$0xff]  }
 0x10d   : > { %4419 = vmatprep.subr.bf16.mxu1 %v4807_v0  ;;  %v3008_v3 = vsel %vm217_vm1, %v4770_v22, 0 }
 0x10e   : > { %v1376_v58 = vrot.slane %v1374_v39, 5  ;;  %v4132_v39 = vld [vmem:[%s4854_s16 + $0x18] sm:$0xf] }
 0x10f   : > { %v3171_v29 = vshrl.u32 %v4132_v39, 16  ;;  %v3174_v5 = vshll.u32 %v4132_v39, 16 }
 0x110   : > { %4556 = vmatpush3.bf16.xpose.msra.mxu0 %v2918_v10  ;;  %v3889_v10 = vcombine.low %v1335_v56, %v1349_v6  ;;  %v1377_v52 = vsel %vm4880_vm4, %v1372_v46, %v1376_v58 }
 0x111   : > { %4557 = vmatprep.subr.bf16.mxu0 %v4807_v0  ;;  %v3890_v24 = vcombine.low %v1363_v32, %v1377_v52  ;;  %v3173_v37 = vrot.slane %v3171_v29, 4  ;;  %v3176_v44 = vrot.slane %v3174_v5, 5  ;;  %v3900_v52 = vld [vmem:[%s6094_s1 + $0x24] sm:$0xf]  ;;  %v5926_v5 = vld [vmem:[%s4854_s16 + $0x34] sm:$0x1] }
 0x112   : > { %v1400_v53 = vsel %vm217_vm1, %v3889_v10, 0  ;;  %v4774_v10 = vld [vmem:[%s4854_s16 + $0x8] ss:$8 sps:$4 sm:$0xff]   ;;  %v3222_v49 = vshll.u32 %v5926_v5, 16 }
 0x113   : > { %4416 = vmatmul.mubr.msk.bf16.vlgmr.msra.gmra.mrb[0].mxu1 %vm217_vm1, %v3864_v48  ;;  %v5819_v48 = vld [vmem:[%s4854_s16 + $0x24] sm:$0x1]  ;;  %v1403_v13 = vsel %vm217_vm1, %v3890_v24, 0  ;;  %v3177_v34 = vor.u32 %v3176_v44, %v3173_v37  ;;  %v1607_v30 = vsel %vm217_vm1, %v4774_v10, 0  ;;  %v4777_v10 = vld [vmem:[%s4854_s16 + $0x28] ss:$8 sps:$4 sm:$0xff]  }
 0x114   : > { %4420 = vmatpush3.bf16.xpose.msra.mxu1 %v1394_v35  ;;  %4427 = vmatprep.mubr.msk.bf16.mxu1 %vm4808_vm0, %v4807_v0  ;;  %v5822_v35 = vld [vmem:[%s4854_s16 + $0x2c] sm:$0x1]  ;;  %v3570_v59 = vrot.slane %v5819_v48, 5  ;;  %v3194_v23 = vshll.u32 %v5819_v48, 16  ;;  %v3230_v48 = vshll.u32 %v4140_v33, 16 }
 0x115   : > { %4421 = vmatprep.subr.bf16.mxu1 %v4807_v0  ;;  %v3574_v1 = vrot.slane %v5822_v35, 5 }
 0x116   : > { %v5836_v25 = vsel %vm5021_vm7, %v4185_v12, %v3570_v59  ;;  %v3196_v57 = vrot.slane %v3194_v23, 5  ;;  %v3232_v62 = vrot.slane %v3230_v48, 5 }
 0x117   : > { %v5840_v47 = vsel %vm5021_vm7, %v4186_v17, %v3574_v1  ;;  %v3178_v1 = vrot.slane %v3177_v34, 4 }
 0x118   : > { %4558 = vmatpush3.bf16.xpose.msra.mxu0 %v2921_v43  ;;  %v3002_v43 = vsel %vm217_vm1, %v4768_v60, 0  ;;  %v4192_v27 = vcombine.low %v5836_v25, %v5840_v47  ;;  %v3092_v60 = vsel %vm217_vm1, %v4773_v21, 0 }
 0x119   : > { %4563 = vmatprep.subr.bf16.mxu0 %v4807_v0 }
 0x11a   : > { %v3611_v63 = vsel %vm217_vm1, %v4192_v27, 0 }
 0x11c   : > { %4422 = vmatpush3.bf16.xpose.msra.mxu1 %v1397_v11  ;;  %v4130_v11 = vld [vmem:[%s4854_s16 + $0x10] sm:$0xf] }
 0x11d   : > { %4423 = vmatprep.subr.bf16.mxu1 %v4807_v0  ;;  %v3157_v56 = vshrl.u32 %v4130_v11, 16  ;;  %v3160_v6 = vshll.u32 %v4130_v11, 16  ;;  %v4144_v11 = vld [vmem:[%s4854_s16 + $0x48] sm:$0xf] }
 0x11e   : > { %v3255_v44 = vshrl.u32 %v4144_v11, 16  ;;  %v3258_v21 = vshll.u32 %v4144_v11, 16 }
 0x11f   : > { %4560 = vmatmul.mubr.msk.bf16.vlgmr.msra.gmra.mrb[0].mxu0 %vm217_vm1, %v4088_v54  ;;  %v3159_v15 = vrot.slane %v3157_v56, 4  ;;  %v3162_v38 = vrot.slane %v3160_v6, 5  ;;  %v4136_v54 = vld [vmem:[%s4854_s16 + $0x28] sm:$0xf] }
 0x120   : > { %4564 = vmatpush3.bf16.xpose.msra.mxu0 %v2999_v20  ;;  %4571 = vmatprep.mubr.msk.bf16.mxu0 %vm4808_vm0, %v4807_v0  ;;  %v4134_v20 = vld [vmem:[%s4854_s16 + $0x20] sm:$0xf]  ;;  %v3202_v32 = vshll.u32 %v4136_v54, 16 }
 0x121   : > { %4565 = vmatprep.subr.bf16.mxu0 %v4807_v0  ;;  %v3163_v51 = vor.u32 %v3162_v38, %v3159_v15  ;;  %v3185_v46 = vshrl.u32 %v4134_v20, 16  ;;  %v3188_v58 = vshll.u32 %v4134_v20, 16  ;;  %v4124_v20 = vld [vmem:[%s6094_s1 + $0x54] sm:$0xf] }
 0x123   : > { %v3164_v59 = vrot.slane %v3163_v51, 4  ;;  %v3187_v12 = vrot.slane %v3185_v46, 4  ;;  %v3190_v17 = vrot.slane %v3188_v58, 5 }
 0x124   : > { %4424 = vmatpush3.bf16.xpose.msra.mxu1 %v1400_v53  ;;  %v3199_v53 = vshrl.u32 %v4136_v54, 16 }
 0x125   : > { %4425 = vmatprep.subr.bf16.mxu1 %v4807_v0  ;;  %v3169_v22 = vsel %vm4880_vm4, %v3164_v59, %v3168_v14  ;;  %v3191_v19 = vor.u32 %v3190_v17, %v3187_v12  ;;  %v1613_v14 = vsel %vm217_vm1, %v4777_v10, 0  ;;  %v4152_v59 = vld [vmem:[%s4854_s16 + $0x60] sm:$0xf] }
 0x126   : > { %v3201_v24 = vrot.slane %v3199_v53, 4  ;;  %v3355_v23 = vshrl.u32 %v4152_v59, 16 }
 0x127   : > { %v3192_v39 = vrot.slane %v3191_v19, 4  ;;  %v4778_v19 = vld [vmem:[%s4854_s16 + $0x38] ss:$8 sps:$4 sm:$0xff]  }
 0x128   : > { %4566 = vmatpush3.bf16.xpose.msra.mxu0 %v3002_v43  ;;  %v3204_v43 = vrot.slane %v3202_v32, 5  ;;  %v3257_v32 = vrot.slane %v3255_v44, 4 }
 0x129   : > { %4567 = vmatprep.subr.bf16.mxu0 %v4807_v0  ;;  %v3197_v50 = vsel %vm4880_vm4, %v3192_v39, %v3196_v57 }
 0x12a   : > { %v3205_v61 = vor.u32 %v3204_v43, %v3201_v24 }
 0x12c   : > { %4426 = vmatpush3.bf16.xpose.msra.mxu1 %v1403_v13  ;;  %v4138_v13 = vld [vmem:[%s4854_s16 + $0x30] sm:$0xf]  ;;  %v3206_v29 = vrot.slane %v3205_v61, 4 }
 0x12d   : > { %4431 = vmatprep.subr.bf16.mxu1 %v4807_v0 }
 0x130   : > { %4568 = vmatpush3.bf16.xpose.msra.mxu0 %v3005_v26  ;;  %v3095_v26 = vsel %vm217_vm1, %v4775_v36, 0  ;;  %v5948_v36 = vld [vmem:[%s4854_s16 + $0x4c] sm:$0x1] }
 0x131   : > { %4569 = vmatprep.subr.bf16.mxu0 %v4807_v0  ;;  %v3590_v25 = vrot.slane %v5948_v36, 5 }
 0x133   : > { %4428 = vmatmul.mubr.msk.bf16.vlgmr.msra.gmra.mrb[0].mxu1 %vm217_vm1, %v3886_v16  ;;  %v4776_v16 = vld [vmem:[%s4854_s16 + $0x18] ss:$8 sps:$4 sm:$0xff]  }
 0x134   : > { %4432 = vmatpush3.bf16.xpose.msra.mxu1 %v1520_v8  ;;  %4439 = vmatprep.mubr.msk.bf16.mxu1 %vm4808_vm0, %v4807_v0  ;;  %v3208_v8 = vshll.u32 %v5822_v35, 16  ;;  %v1610_v35 = vsel %vm217_vm1, %v4776_v16, 0  ;;  %v3264_v16 = vshll.u32 %v5948_v36, 16 }
 0x135   : > { %4433 = vmatprep.subr.bf16.mxu1 %v4807_v0 }
 0x136   : > { %v3210_v56 = vrot.slane %v3208_v8, 5  ;;  %v3358_v8 = vshll.u32 %v4152_v59, 16  ;;  %v3266_v57 = vrot.slane %v3264_v16, 5  ;;  %v4780_v16 = vld [vmem:[%s4854_s16 + $0x68] ss:$8 sps:$4 sm:$0xff]  }
 0x138   : > { %4570 = vmatpush3.bf16.xpose.msra.mxu0 %v3008_v3  ;;  %v3183_v3 = vsel %vm4880_vm4, %v3178_v1, %v3182_v41  ;;  %v3211_v51 = vsel %vm4880_vm4, %v3206_v29, %v3210_v56  ;;  %v3224_v41 = vrot.slane %v3222_v49, 5  ;;  %v4154_v1 = vld [vmem:[%s4854_s16 + $0x68] sm:$0xf]  ;;  %v3360_v11 = vrot.slane %v3358_v8, 5  ;;  %v4155_v29 = vld [vmem:[%s4854_s16 + $0x6c] sm:$0x1] }
 0x139   : > { %4575 = vmatprep.subr.bf16.mxu0 %v4807_v0  ;;  %v4147_v31 = vcombine.low %v3169_v22, %v3183_v3  ;;  %v4148_v12 = vcombine.low %v3197_v50, %v3211_v51  ;;  %v3369_v22 = vshrl.u32 %v4154_v1, 16  ;;  %v3372_v3 = vshll.u32 %v4154_v1, 16 }
 0x13a   : > { %v1616_v56 = vsel %vm217_vm1, %v4778_v19, 0  ;;  %v3378_v10 = vshll.u32 %v4155_v29, 16 }
 0x13b   : > { %v3284_v54 = vsel %vm217_vm1, %v4147_v31, 0  ;;  %v3371_v31 = vrot.slane %v3369_v22, 4  ;;  %v3374_v39 = vrot.slane %v3372_v3, 5 }
 0x13c   : > { %4434 = vmatpush3.bf16.xpose.msra.mxu1 %v1523_v42  ;;  %v3213_v42 = vshrl.u32 %v4138_v13, 16 }
 0x13d   : > { %4435 = vmatprep.subr.bf16.mxu1 %v4807_v0 }
 0x13e   : > { %v3215_v6 = vrot.slane %v3213_v42, 4  ;;  %v3287_v42 = vsel %vm217_vm1, %v4148_v12, 0 }
 0x13f   : > { %4572 = vmatmul.mubr.msk.bf16.vlgmr.msra.gmra.mrb[0].mxu0 %vm217_vm1, %v4110_v2  ;;  %v3216_v2 = vshll.u32 %v4138_v13, 16 }
 0x140   : > { %4576 = vmatpush3.bf16.xpose.msra.mxu0 %v3086_v45  ;;  %4583 = vmatprep.mubr.msk.bf16.mxu0 %vm4808_vm0, %v4807_v0  ;;  %v3227_v45 = vshrl.u32 %v4140_v33, 16 }
 0x141   : > { %4577 = vmatprep.subr.bf16.mxu0 %v4807_v0 }
 0x142   : > { %v3229_v15 = vrot.slane %v3227_v45, 4 }
 0x144   : > { %4436 = vmatpush3.bf16.xpose.msra.mxu1 %v1526_v18  ;;  %v4142_v18 = vld [vmem:[%s4854_s16 + $0x40] sm:$0xf]  ;;  %v3233_v46 = vor.u32 %v3232_v62, %v3229_v15  ;;  %v4156_v15 = vld [vmem:[%s4854_s16 + $0x70] sm:$0xf]  ;;  %v4158_v62 = vld [vmem:[%s4854_s16 + $0x78] sm:$0xf] }
 0x145   : > { %4437 = vmatprep.subr.bf16.mxu1 %v4807_v0  ;;  %v3241_v38 = vshrl.u32 %v4142_v18, 16  ;;  %v3244_v37 = vshll.u32 %v4142_v18, 16  ;;  %v3357_v18 = vrot.slane %v3355_v23, 4  ;;  %v3383_v50 = vshrl.u32 %v4156_v15, 16 }
 0x146   : > { %v3234_v24 = vrot.slane %v3233_v46, 4  ;;  %v3386_v49 = vshll.u32 %v4156_v15, 16  ;;  %v3397_v51 = vshrl.u32 %v4158_v62, 16  ;;  %v4161_v15 = vld [vmem:[%s4854_s16 + $0x84] sm:$0x1] }
 0x147   : > { %v3246_v53 = vrot.slane %v3244_v37, 5  ;;  %v3385_v59 = vrot.slane %v3383_v50, 4 }
 0x148   : > { %4578 = vmatpush3.bf16.xpose.msra.mxu0 %v3089_v7  ;;  %v3218_v7 = vrot.slane %v3216_v2, 5  ;;  %v3388_v1 = vrot.slane %v3386_v49, 5  ;;  %v3399_v12 = vrot.slane %v3397_v51, 4  ;;  %v3420_v49 = vshll.u32 %v4161_v15, 16  ;;  %v4179_v15 = vld [vmem:[%s4854_s16 + $0x38] sm:$0xe] }
 0x149   : > { %4579 = vmatprep.subr.bf16.mxu0 %v4807_v0 }
 0x14a   : > { %v3219_v34 = vor.u32 %v3218_v7, %v3215_v6  ;;  %v4153_v6 = vld [vmem:[%s4854_s16 + $0x64] sm:$0x1]  ;;  %v3389_v22 = vor.u32 %v3388_v1, %v3385_v59 }
 0x14c   : > { %4438 = vmatpush3.bf16.xpose.msra.mxu1 %v1529_v40  ;;  %v5929_v40 = vld [vmem:[%s4854_s16 + $0x3c] sm:$0x1]  ;;  %v3220_v17 = vrot.slane %v3219_v34, 4  ;;  %v3400_v34 = vshll.u32 %v4158_v62, 16  ;;  %v4163_v62 = vld [vmem:[%s4854_s16 + $0x8c] sm:$0x1] }
 0x14d   : > { %4443 = vmatprep.subr.bf16.mxu1 %v4807_v0  ;;  %v3236_v58 = vshll.u32 %v5929_v40, 16 }
 0x14e   : > { %v3225_v61 = vsel %vm4880_vm4, %v3220_v17, %v3224_v41  ;;  %v3380_v41 = vrot.slane %v3378_v10, 5  ;;  %v3402_v17 = vrot.slane %v3400_v34, 5  ;;  %v3434_v34 = vshll.u32 %v4163_v62, 16 }
 0x14f   : > { %v3238_v43 = vrot.slane %v3236_v58, 5 }
 0x150   : > { %4580 = vmatpush3.bf16.xpose.msra.mxu0 %v3092_v60  ;;  %v3243_v60 = vrot.slane %v3241_v38, 4  ;;  %v4779_v38 = vld [vmem:[%s4854_s16 + $0x58] ss:$8 sps:$4 sm:$0xff]   ;;  %v3403_v19 = vor.u32 %v3402_v17, %v3399_v12  ;;  %v3436_v1 = vrot.slane %v3434_v34, 5 }
 0x151   : > { %4581 = vmatprep.subr.bf16.mxu0 %v4807_v0  ;;  %v3239_v2 = vsel %vm4880_vm4, %v3234_v24, %v3238_v43  ;;  %v1694_v58 = vsel %vm217_vm1, %v4779_v38, 0  ;;  %v4157_v24 = vld [vmem:[%s4854_s16 + $0x74] sm:$0x1]  ;;  %v4159_v43 = vld [vmem:[%s4854_s16 + $0x7c] sm:$0x1] }
 0x152   : > { %v3247_v13 = vor.u32 %v3246_v53, %v3243_v60  ;;  %v4149_v7 = vcombine.low %v3225_v61, %v3239_v2  ;;  %v3922_v53 = vld [vmem:[%s6094_s1 + $0x28] sm:$0xf]  ;;  %v3392_v3 = vshll.u32 %v4157_v24, 16  ;;  %v4164_v38 = vld [vmem:[%s4854_s16 + $0x90] sm:$0xf] }
 0x153   : > { %4440 = vmatmul.mubr.msk.bf16.vlgmr.msra.gmra.mrb[0].mxu1 %vm217_vm1, %v3900_v52  ;;  %v3260_v52 = vrot.slane %v3258_v21, 5  ;;  %v3361_v21 = vor.u32 %v3360_v11, %v3357_v18  ;;  %v3390_v18 = vrot.slane %v3389_v22, 4 }
 0x154   : > { %4444 = vmatpush3.bf16.xpose.msra.mxu1 %v1607_v30  ;;  %4451 = vmatprep.mubr.msk.bf16.mxu1 %vm4808_vm0, %v4807_v0  ;;  %v5945_v30 = vld [vmem:[%s4854_s16 + $0x44] sm:$0x1]  ;;  %v3248_v45 = vrot.slane %v3247_v13, 4  ;;  %v3290_v46 = vsel %vm217_vm1, %v4149_v7, 0  ;;  %v4160_v13 = vld [vmem:[%s4854_s16 + $0x80] sm:$0xf] }
 0x155   : > { %4445 = vmatprep.subr.bf16.mxu1 %v4807_v0  ;;  %v3250_v33 = vshll.u32 %v5945_v30, 16  ;;  %v3411_v61 = vshrl.u32 %v4160_v13, 16  ;;  %v3414_v2 = vshll.u32 %v4160_v13, 16  ;;  %v3394_v11 = vrot.slane %v3392_v3, 5  ;;  %v4165_v13 = vld [vmem:[%s4854_s16 + $0x94] sm:$0x1] }
 0x156   : > { %v3448_v3 = vshll.u32 %v4165_v13, 16 }
 0x157   : > { %v3252_v48 = vrot.slane %v3250_v33, 5  ;;  %v4162_v33 = vld [vmem:[%s4854_s16 + $0x88] sm:$0xf] }
 0x158   : > { %4582 = vmatpush3.bf16.xpose.msra.mxu0 %v3095_v26  ;;  %v3261_v26 = vor.u32 %v3260_v52, %v3257_v32  ;;  %v3362_v32 = vrot.slane %v3361_v21, 4 }
 0x159   : > { %4587 = vmatprep.subr.bf16.mxu0 %v4807_v0  ;;  %v3253_v37 = vsel %vm4880_vm4, %v3248_v45, %v3252_v48  ;;  %v3425_v45 = vshrl.u32 %v4162_v33, 16  ;;  %v3428_v48 = vshll.u32 %v4162_v33, 16  ;;  %v4167_v33 = vld [vmem:[%s4854_s16 + $0x9c] sm:$0x1] }
 0x15b   : > { %v3427_v29 = vrot.slane %v3425_v45, 4  ;;  %v3430_v7 = vrot.slane %v3428_v48, 5  ;;  %v3450_v48 = vrot.slane %v3448_v3, 5 }
 0x15c   : > { %4446 = vmatpush3.bf16.xpose.msra.mxu1 %v1610_v35  ;;  %v3262_v35 = vrot.slane %v3261_v26, 4 }
 0x15d   : > { %4447 = vmatprep.subr.bf16.mxu1 %v4807_v0  ;;  %v3431_v51 = vor.u32 %v3430_v7, %v3427_v29  ;;  %v3608_v29 = vsel %vm217_vm1, %v4191_v9, 0  ;;  %v4178_v7 = vld [vmem:[%s4854_s16 + $0x30] sm:$0xe] }
 0x15e   : > { %v3267_v44 = vsel %vm4880_vm4, %v3262_v35, %v3266_v57  ;;  %v1697_v35 = vsel %vm217_vm1, %v4780_v16, 0  ;;  %v4187_v62 = vrot.slane %v4178_v7, 9 }
 0x15f   : > { %4584 = vmatmul.mubr.msk.bf16.vlgmr.msra.gmra.mrb[0].mxu0 %vm217_vm1, %v4124_v20  ;;  %v3364_v20 = vshll.u32 %v4153_v6, 16  ;;  %v4150_v60 = vcombine.low %v3253_v37, %v3267_v44  ;;  %v3416_v6 = vrot.slane %v3414_v2, 5  ;;  %v4166_v37 = vld [vmem:[%s4854_s16 + $0x98] sm:$0xf]  ;;  %v3432_v59 = vrot.slane %v3431_v51, 4 }
 0x160   : > { %4588 = vmatpush3.bf16.xpose.msra.mxu0 %v3284_v54  ;;  %4595 = vmatprep.mubr.msk.bf16.mxu0 %vm4808_vm0, %v4807_v0  ;;  %v3375_v54 = vor.u32 %v3374_v39, %v3371_v31  ;;  %v3404_v31 = vrot.slane %v3403_v19, 4  ;;  %v4146_v44 = vld [vmem:[%s6094_s1 + $0x58] sm:$0xf] }
 0x161   : > { %4589 = vmatprep.subr.bf16.mxu0 %v4807_v0  ;;  %v3366_v52 = vrot.slane %v3364_v20, 5  ;;  %v3293_v26 = vsel %vm217_vm1, %v4150_v60, 0  ;;  %v4781_v20 = vld [vmem:[%s4854_s16 + $0x78] ss:$8 sps:$4 sm:$0xff]   ;;  %v3453_v60 = vshrl.u32 %v4166_v37, 16 }
 0x163   : > { %v3367_v23 = vsel %vm4880_vm4, %v3362_v32, %v3366_v52  ;;  %v1700_v32 = vsel %vm217_vm1, %v4781_v20, 0  ;;  %v3455_v24 = vrot.slane %v3453_v60, 4  ;;  %v4181_v20 = vld [vmem:[%s4854_s16 + $0x48] sm:$0xe] }
 0x164   : > { %4448 = vmatpush3.bf16.xpose.msra.mxu1 %v1613_v14  ;;  %v3376_v14 = vrot.slane %v3375_v54, 4  ;;  %v3395_v54 = vsel %vm4880_vm4, %v3390_v18, %v3394_v11 }
 0x165   : > { %4449 = vmatprep.subr.bf16.mxu1 %v4807_v0 }
 0x166   : > { %v3381_v8 = vsel %vm4880_vm4, %v3376_v14, %v3380_v41  ;;  %v3422_v41 = vrot.slane %v3420_v49, 5 }
 0x167   : > { %v4169_v57 = vcombine.low %v3367_v23, %v3381_v8  ;;  %v3437_v8 = vsel %vm4880_vm4, %v3432_v59, %v3436_v1 }
 0x168   : > { %4590 = vmatpush3.bf16.xpose.msra.mxu0 %v3287_v42  ;;  %v3406_v42 = vshll.u32 %v4159_v43, 16 }
 0x169   : > { %4591 = vmatprep.subr.bf16.mxu0 %v4807_v0  ;;  %v3482_v21 = vsel %vm217_vm1, %v4169_v57, 0 }
 0x16a   : > { %v3408_v39 = vrot.slane %v3406_v42, 5  ;;  %v3462_v42 = vshll.u32 %v4167_v33, 16 }
 0x16c   : > { %4450 = vmatpush3.bf16.xpose.msra.mxu1 %v1616_v56  ;;  %v3413_v56 = vrot.slane %v3411_v61, 4  ;;  %v3409_v10 = vsel %vm4880_vm4, %v3404_v31, %v3408_v39  ;;  %v3464_v57 = vrot.slane %v3462_v42, 5  ;;  %v3936_v39 = vld [vmem:[%s6094_s1 + $0x2c] sm:$0xf] }
 0x16d   : > { %4455 = vmatprep.subr.bf16.mxu1 %v4807_v0  ;;  %v4170_v52 = vcombine.low %v3395_v54, %v3409_v10  ;;  %v4190_v10 = vrot.slane %v4181_v20, 9 }
 0x16e   : > { %v3417_v50 = vor.u32 %v3416_v6, %v3413_v56 }
 0x16f   : > { %v3485_v16 = vsel %vm217_vm1, %v4170_v52, 0 }
 0x170   : > { %4592 = vmatpush3.bf16.xpose.msra.mxu0 %v3290_v46  ;;  %v3439_v46 = vshrl.u32 %v4164_v38, 16  ;;  %v3418_v14 = vrot.slane %v3417_v50, 4  ;;  %v3591_v50 = vsel %vm5021_vm7, %v4190_v10, %v3590_v25 }
 0x171   : > { %4593 = vmatprep.subr.bf16.mxu0 %v4807_v0 }
 0x172   : > { %v3441_v12 = vrot.slane %v3439_v46, 4  ;;  %v3423_v23 = vsel %vm4880_vm4, %v3418_v14, %v3422_v41 }
 0x173   : > { %4452 = vmatmul.mubr.msk.bf16.vlgmr.msra.gmra.mrb[0].mxu1 %vm217_vm1, %v3922_v53  ;;  %v3456_v53 = vshll.u32 %v4166_v37, 16  ;;  %v4171_v2 = vcombine.low %v3423_v23, %v3437_v8  ;;  %v4188_v37 = vrot.slane %v4179_v15, 9 }
 0x174   : > { %4456 = vmatpush3.bf16.xpose.msra.mxu1 %v1694_v58  ;;  %4463 = vmatprep.mubr.msk.bf16.mxu1 %vm4808_vm0, %v4807_v0  ;;  %v3442_v58 = vshll.u32 %v4164_v38, 16  ;;  %v3578_v38 = vrot.slane %v5926_v5, 5 }
 0x175   : > { %4457 = vmatprep.subr.bf16.mxu1 %v4807_v0  ;;  %v3458_v43 = vrot.slane %v3456_v53, 5  ;;  %v3488_v18 = vsel %vm217_vm1, %v4171_v2, 0 }
 0x176   : > { %v3444_v17 = vrot.slane %v3442_v58, 5  ;;  %v3579_v55 = vsel %vm5021_vm7, %v4187_v62, %v3578_v38 }
 0x177   : > { %v3459_v19 = vor.u32 %v3458_v43, %v3455_v24 }
 0x178   : > { %4594 = vmatpush3.bf16.xpose.msra.mxu0 %v3293_v26  ;;  %v4782_v26 = vld [vmem:[%s4854_s16 + $0x88] ss:$8 sps:$4 sm:$0xff]   ;;  %v3445_v22 = vor.u32 %v3444_v17, %v3441_v12 }
 0x179   : > { %4599 = vmatprep.subr.bf16.mxu0 %v4807_v0  ;;  %v1703_v61 = vsel %vm217_vm1, %v4782_v26, 0 }
 0x17a   : > { %v3446_v45 = vrot.slane %v3445_v22, 4 }
 0x17c   : > { %4458 = vmatpush3.bf16.xpose.msra.mxu1 %v1697_v35  ;;  %v3460_v35 = vrot.slane %v3459_v19, 4  ;;  %v3451_v11 = vsel %vm4880_vm4, %v3446_v45, %v3450_v48 }
 0x17d   : > { %4459 = vmatprep.subr.bf16.mxu1 %v4807_v0 }
 0x17e   : > { %v3465_v31 = vsel %vm4880_vm4, %v3460_v35, %v3464_v57 }
 0x17f   : > { %4596 = vmatmul.mubr.msk.bf16.vlgmr.msra.gmra.mrb[0].mxu0 %vm217_vm1, %v4146_v44  ;;  %v4172_v56 = vcombine.low %v3451_v11, %v3465_v31  ;;  %v3582_v44 = vrot.slane %v5929_v40, 5  ;;  %v3586_v40 = vrot.slane %v5945_v30, 5  ;;  %v4182_v30 = vld [vmem:[%s6094_s1 + $0x60] sm:$0xf] }
 0x180   : > { %4600 = vmatpush3.bf16.xpose.msra.mxu0 %v3482_v21  ;;  %4607 = vmatprep.mubr.msk.bf16.mxu0 %vm4808_vm0, %v4807_v0  ;;  %v4180_v21 = vld [vmem:[%s4854_s16 + $0x40] sm:$0xe] }
 0x181   : > { %4601 = vmatprep.subr.bf16.mxu0 %v4807_v0  ;;  %v3491_v6 = vsel %vm217_vm1, %v4172_v56, 0  ;;  %v3583_v9 = vsel %vm5021_vm7, %v4188_v37, %v3582_v44  ;;  %v4189_v54 = vrot.slane %v4180_v21, 9 }
 0x182   : > { %v4193_v5 = vcombine.low %v3579_v55, %v3583_v9 }
 0x183   : > { %v3587_v27 = vsel %vm5021_vm7, %v4189_v54, %v3586_v40 }
 0x184   : > { %4460 = vmatpush3.bf16.xpose.msra.mxu1 %v1700_v32  ;;  %v3614_v47 = vsel %vm217_vm1, %v4193_v5, 0  ;;  %v4194_v49 = vcombine.low %v3587_v27, %v3591_v50 }
 0x185   : > { %4461 = vmatprep.subr.bf16.mxu1 %v4807_v0 }
 0x186   : > { %v3617_v51 = vsel %vm217_vm1, %v4194_v49, 0 }
 0x188   : > { %4602 = vmatpush3.bf16.xpose.msra.mxu0 %v3485_v16 }
 0x189   : > { %4603 = vmatprep.subr.bf16.mxu0 %v4807_v0 }
 0x18c   : > { %4462 = vmatpush3.bf16.xpose.msra.mxu1 %v1703_v61 }
 0x190   : > { %4604 = vmatpush3.bf16.xpose.msra.mxu0 %v3488_v18 }
 0x191   : > { %4605 = vmatprep.subr.bf16.mxu0 %v4807_v0 }
 0x193   : > { %4464 = vmatmul.mubr.msk.bf16.vlgmr.msra.gmra.mrb[0].mxu1 %vm217_vm1, %v3936_v39 }
 0x198   : > { %4606 = vmatpush3.bf16.xpose.msra.mxu0 %v3491_v6 }
 0x199   : > { %4611 = vmatprep.subr.bf16.mxu0 %v4807_v0 }
 0x19f   : > { %4608 = vmatmul.mubr.msk.bf16.vlgmr.msra.gmra.mrb[0].mxu0 %vm217_vm1, %v4168_v28 }
 0x1a0   : > { %4612 = vmatpush3.bf16.xpose.msra.mxu0 %v3608_v29  ;;  %4619 = vmatprep.mubr.msk.bf16.mxu0 %vm4808_vm0, %v4807_v0 }
 0x1a1   : > { %4613 = vmatprep.subr.bf16.mxu0 %v4807_v0 }
 0x1a8   : > { %4614 = vmatpush3.bf16.xpose.msra.mxu0 %v3611_v63 }
 0x1a9   : > { %4615 = vmatprep.subr.bf16.mxu0 %v4807_v0 }
 0x1b0   : > { %4616 = vmatpush3.bf16.xpose.msra.mxu0 %v3614_v47 }
 0x1b1   : > { %4617 = vmatprep.subr.bf16.mxu0 %v4807_v0 }
 0x1b8   : > { %4618 = vmatpush3.bf16.xpose.msra.mxu0 %v3617_v51 }
 0x1bf   : > { %4620 = vmatmul.mubr.msk.bf16.vlgmr.msra.gmra.mrb[0].mxu0 %vm217_vm1, %v4182_v30 }
 0x266   : > { %v1739_v36 = vpop.f32.mrb[0].mxu1 }
 0x267   : > { %v4465_v34 = vpop.f32.mrb[1].mxu1 }
 0x268   : > { %v1742_v46 = vpop.f32.mrb[2].mxu1 }
 0x269   : > { %v4466_v58 = vpop.f32.mrb[3].mxu1 }
 0x292   : > { %v3653_v4 = vpop.f32.mrb[0].mxu0 }
 0x293   : > { %v4623_v60 = vadd.f32 %v3653_v4, %v1739_v36  ;;  %v4621_v53 = vpop.f32.mrb[1].mxu0 }
 0x294   : > { %v3656_v0 = vpop.f32.mrb[2].mxu0 }
 0x295   : > { %v4622_v32 = vpop.f32.mrb[3].mxu0  ;;  %v3661_v52 = vsel %vm3660_vm8, %v4623_v60, 0.0  ;;  %v3666_v14 = vmul.f32 %v4623_v60, %v4623_v60 }
 0x296   : > { %3662 = vadd.xlane.f32.xlu0 %v3661_v52 }
 0x297   : > { %v3667_v41 = vsel %vm3660_vm8, %v3666_v14, 0.0 }
 0x29a   : > { %3668 = vadd.xlane.f32.xlu0 %v3667_v41 }
 0x323   : > { %v3663_v59 = vpop.xlane.xlu0 %3662 }
 0x324   : > { %3665 = vst.msk [vmem:[%s175_s23] sm:$0xff] %vm3664_vm9, %v3663_v59 }
 0x327   : > { %v3669_v1 = vpop.xlane.xlu0 %3668 }
 0x328   : > { %3671 = vst.msk [vmem:[%s175_s23] sm:$0xff] %vm3670_vm10, %v3669_v1 }
 0x329 PF: > { %s12_s11 = sadd.s32 1, %s4805_s11   ;;  %s6105_s9 = smov %s4801_s10 }
 0x32a   : > { %p9_p5 = scmp.ge.s32.totalorder %s12_s11, 4   ;;  %s6106_s10 = smov %s6108_s12 }
 0x32c   :  { %11 = sbr.rel (!%p9_p5) target bundleno = 2 (0x2), region = 91 }

</bundles_post_ra>
